<compile_context>
chip_gen: v6e
topology: v6e:2x2x1
jax: 0.10.0
libtpu: 0.0.40
codegen_flags: <defaults>
</compile_context>

<pallas_src>
import math

import jax
import jax.numpy as jnp
from jax.experimental import pallas as pl
from jax.experimental.pallas import tpu as pltpu

DIM = 384
HIDDEN = 512
INV_SQRT2 = 1.0 / math.sqrt(2.0)


def _modality_kernel(t_ref, v_ref, w1g_ref, b1g_ref, w2_ref, b2_ref,
                     to_ref, vo_ref):
    """One batch-tile grid step: runs both GatedMLPs (text, vision).

    t_ref/v_ref   : (block_b, DIM)        f32 input rows for this batch tile
    w1g_ref       : (2, DIM, 2*HIDDEN)    bf16, fc1 || gate weights per modality
    b1g_ref       : (2, 1, 2*HIDDEN)      f32, fc1 || gate biases
    w2_ref        : (2, HIDDEN, DIM)      bf16
    b2_ref        : (2, 1, DIM)           f32
    to_ref/vo_ref : (block_b, DIM)        f32 outputs
    """
    for m, (x_ref, o_ref) in enumerate(((t_ref, to_ref), (v_ref, vo_ref))):
        x = x_ref[...].astype(jnp.bfloat16)

        # Single N=1024 first-stage matmul (fc1 || gate), bf16 operands,
        # f32 accumulation; split afterwards at a 128-lane boundary.
        h = jnp.dot(x, w1g_ref[m], preferred_element_type=jnp.float32)
        h = h + b1g_ref[m]
        h1 = h[:, :HIDDEN]   # fc1 pre-activation
        hg = h[:, HIDDEN:]   # gate pre-activation

        # Exact erf-based GELU (torch.nn.GELU() default), f32 elementwise math.
        gelu = 0.5 * h1 * (1.0 + jax.lax.erf(h1 * INV_SQRT2))
        # sigmoid via exp (EUP) + approx reciprocal (EUP) -> divide off the VALU.
        gate = pl.reciprocal(1.0 + jnp.exp(-hg), approx=True)
        act = (gelu * gate).astype(jnp.bfloat16)

        out = jnp.dot(act, w2_ref[m], preferred_element_type=jnp.float32)
        o_ref[...] = (out + b2_ref[m]).astype(o_ref.dtype)


def _choose_block_b(B):
    # Small batches: one block (single grid step, block == full array dims so
    # the (8,128) divisibility rule is satisfied trivially).
    if B <= 512:
        return B
    for cand in (512, 256, 128):
        if B % cand == 0:
            return cand
    return 512  # tail is zero-padded


def fused_gated_mlps(text_emb, vision_emb, params):
    """Apply both per-modality GatedMLPs in one pallas_call.

    text_emb, vision_emb: (B, DIM) float32
    params: stacked weights with leading modality axis (0=text, 1=vision):
        w1g (2, DIM, 2*HIDDEN) bf16, b1g (2, 1, 2*HIDDEN) f32,
        w2  (2, HIDDEN, DIM)   bf16, b2  (2, 1, DIM)       f32
    """
    B, D = text_emb.shape
    assert D == DIM and vision_emb.shape == (B, DIM)

    block_b = _choose_block_b(B)
    Bp = pl.cdiv(B, block_b) * block_b
    if Bp != B:
        pad = ((0, Bp - B), (0, 0))
        text_emb = jnp.pad(text_emb, pad)
        vision_emb = jnp.pad(vision_emb, pad)
    nb = Bp // block_b

    def weight_spec(shape):
        # Full stacked weight slab, constant across batch tiles (DMA'd once).
        return pl.BlockSpec(shape, lambda i: (0,) * len(shape))

    act_spec = pl.BlockSpec((block_b, DIM), lambda i: (i, 0))

    t_out, v_out = pl.pallas_call(
        _modality_kernel,
        out_shape=(jax.ShapeDtypeStruct((Bp, DIM), jnp.float32),
                   jax.ShapeDtypeStruct((Bp, DIM), jnp.float32)),
        grid_spec=pl.GridSpec(
            grid=(nb,),  # batch tiles; both modalities handled per step
            in_specs=[
                act_spec,                               # text tile
                act_spec,                               # vision tile
                weight_spec((2, DIM, 2 * HIDDEN)),      # w1 || wg (bf16)
                weight_spec((2, 1, 2 * HIDDEN)),        # b1 || bg (f32)
                weight_spec((2, HIDDEN, DIM)),          # w2 (bf16)
                weight_spec((2, 1, DIM)),               # b2 (f32)
            ],
            out_specs=[act_spec, act_spec],
        ),
        compiler_params=pltpu.CompilerParams(
            dimension_semantics=("parallel",),
            # Headroom for big tiles (f32 intermediates for both modalities);
            # small-batch path stays within the default scoped limit.
            vmem_limit_bytes=(48 * 1024 * 1024 if block_b > 256 else None),
        ),
    )(text_emb, vision_emb,
      params["w1g"], params["b1g"], params["w2"], params["b2"])

    if Bp != B:
        t_out = t_out[:B]
        v_out = v_out[:B]
    return t_out, v_out


@jax.jit
def modality_processor(params, text_emb, vision_emb):
    """Forward pass matching the PyTorch ModalityProcessor."""
    return fused_gated_mlps(text_emb, vision_emb, params)


# ----------------------------- parameters ---------------------------------

def _init_linear(key, fan_in, fan_out):
    # Mimics torch.nn.Linear default init (uniform +/- 1/sqrt(fan_in)),
    # stored as (in, out) so the kernel computes y = x @ W + b.
    kw, kb = jax.random.split(key)
    bound = 1.0 / math.sqrt(fan_in)
    w = jax.random.uniform(kw, (fan_in, fan_out), jnp.float32, -bound, bound)
    b = jax.random.uniform(kb, (1, fan_out), jnp.float32, -bound, bound)
    return w, b


def init_gated_mlp_params(key):
    k1, k2, k3 = jax.random.split(key, 3)
    w1, b1 = _init_linear(k1, DIM, HIDDEN)
    wg, bg = _init_linear(k2, DIM, HIDDEN)
    w2, b2 = _init_linear(k3, HIDDEN, DIM)
    return {"w1": w1, "b1": b1, "wg": wg, "bg": bg, "w2": w2, "b2": b2}


def stack_modality_params(per_modality):
    """Done ONCE at init: concat fc1/gate along N, stack modalities on axis 0.

    Matmul weights are stored in bf16 (halves the weight DMA that dominates
    small-batch cost); biases stay f32 and are added after the f32-accumulated
    matmul.
    """
    w1g = jnp.stack(
        [jnp.concatenate([p["w1"], p["wg"]], axis=1) for p in per_modality]
    ).astype(jnp.bfloat16)
    b1g = jnp.stack(
        [jnp.concatenate([p["b1"], p["bg"]], axis=1) for p in per_modality]
    )
    w2 = jnp.stack([p["w2"] for p in per_modality]).astype(jnp.bfloat16)
    b2 = jnp.stack([p["b2"] for p in per_modality])
    return {"w1g": w1g, "b1g": b1g, "w2": w2, "b2": b2}


def init_modality_processor(key):
    kt, kv = jax.random.split(key)
    raw = {
        "text_mlp": init_gated_mlp_params(kt),
        "vision_mlp": init_gated_mlp_params(kv),
    }
    return raw, stack_modality_params([raw["text_mlp"], raw["vision_mlp"]])


# ----------------------------- reference ----------------------------------

def _gated_mlp_ref(x, p):
    """Pure-JAX f32 reference of the torch GatedMLP forward."""
    h1 = x @ p["w1"] + p["b1"]
    gelu = 0.5 * h1 * (1.0 + jax.lax.erf(h1 / jnp.sqrt(2.0)))
    gate = jax.nn.sigmoid(x @ p["wg"] + p["bg"])
    return (gelu * gate) @ p["w2"] + p["b2"]


if __name__ == "__main__":
    key = jax.random.PRNGKey(0)
    kp, k1, k2 = jax.random.split(key, 3)

    batch = 8  # small batch; whole batch is a single MXU block / grid step
    text_emb = jax.random.normal(k1, (batch, DIM), jnp.float32)
    vision_emb = jax.random.normal(k2, (batch, DIM), jnp.float32)

    raw_params, params = init_modality_processor(kp)

    t_out, v_out = modality_processor(params, text_emb, vision_emb)
    jax.block_until_ready((t_out, v_out))

    # Correctness check against the f32 reference of the torch module.
    # Tolerance reflects bf16 MXU operands (f32 accumulation) + approx recip.
    t_ref = _gated_mlp_ref(text_emb, raw_params["text_mlp"])
    v_ref = _gated_mlp_ref(vision_emb, raw_params["vision_mlp"])
    assert t_out.shape == (batch, DIM) and v_out.shape == (batch, DIM)
    assert jnp.allclose(t_out, t_ref, atol=3e-2, rtol=3e-2)
    assert jnp.allclose(v_out, v_ref, atol=3e-2, rtol=3e-2)

    print("KERNEL_OK")
</pallas_src>

<mosaic_0001>
module attributes {stable_mosaic.version = 11 : i64} {
  func.func @_modality_kernel(%arg0: i32, %arg1: memref<8x384xf32, #tpu.memory_space<vmem>>, %arg2: memref<8x384xf32, #tpu.memory_space<vmem>>, %arg3: memref<2x384x1024xbf16, #tpu.memory_space<vmem>>, %arg4: memref<2x1x1024xf32, #tpu.memory_space<vmem>>, %arg5: memref<2x512x384xbf16, #tpu.memory_space<vmem>>, %arg6: memref<2x1x384xf32, #tpu.memory_space<vmem>>, %arg7: memref<8x384xf32, #tpu.memory_space<vmem>>, %arg8: memref<8x384xf32, #tpu.memory_space<vmem>>) attributes {dimension_semantics = [#tpu.dimension_semantics<parallel>], iteration_bounds = array<i64: 1>, scalar_prefetch = 0 : i64, scratch_operands = 0 : i64, tpu.core_type = #tpu.core_type<tc>, window_params = [{transform_indices = @transform_0, window_bounds = array<i64: 8, 384>}, {transform_indices = @transform_1, window_bounds = array<i64: 8, 384>}, {pipeline_mode = #tpu.pipeline_mode<synchronous>, transform_indices = @transform_2, window_bounds = array<i64: 2, 384, 1024>}, {pipeline_mode = #tpu.pipeline_mode<synchronous>, transform_indices = @transform_3, window_bounds = array<i64: 2, 1, 1024>}, {pipeline_mode = #tpu.pipeline_mode<synchronous>, transform_indices = @transform_4, window_bounds = array<i64: 2, 512, 384>}, {pipeline_mode = #tpu.pipeline_mode<synchronous>, transform_indices = @transform_5, window_bounds = array<i64: 2, 1, 384>}, {transform_indices = @transform_6, window_bounds = array<i64: 8, 384>}, {transform_indices = @transform_7, window_bounds = array<i64: 8, 384>}]} {
    %c0 = arith.constant 0 : index
    %c0_0 = arith.constant 0 : index
    %0 = vector.load %arg1[%c0, %c0_0] : memref<8x384xf32, #tpu.memory_space<vmem>>, vector<8x384xf32>
    %1 = arith.truncf %0 : vector<8x384xf32> to vector<8x384xbf16>
    %c0_1 = arith.constant 0 : index
    %c0_2 = arith.constant 0 : index
    %c0_3 = arith.constant 0 : index
    %2 = vector.load %arg3[%c0_1, %c0_2, %c0_3] : memref<2x384x1024xbf16, #tpu.memory_space<vmem>>, vector<1x384x1024xbf16>
    %3 = vector.shape_cast %2 : vector<1x384x1024xbf16> to vector<384x1024xbf16>
    %cst = arith.constant dense<0.000000e+00> : vector<8x1024xf32>
    %4 = tpu.matmul %1, %3, %cst {dimension_numbers = #tpu.dot_dimension_numbers<[1], [0], [0], [1], [0, 0, 1, 1], [], []>} : vector<8x384xbf16>, vector<384x1024xbf16>, vector<8x1024xf32> -> vector<8x1024xf32>
    %c0_4 = arith.constant 0 : index
    %c0_5 = arith.constant 0 : index
    %c0_6 = arith.constant 0 : index
    %5 = vector.load %arg4[%c0_4, %c0_5, %c0_6] : memref<2x1x1024xf32, #tpu.memory_space<vmem>>, vector<1x1x1024xf32>
    %6 = vector.shape_cast %5 : vector<1x1x1024xf32> to vector<1x1024xf32>
    %7 = vector.broadcast %6 : vector<1x1024xf32> to vector<8x1024xf32>
    %8 = arith.addf %4, %7 : vector<8x1024xf32>
    %9 = vector.extract_strided_slice %8 {offsets = [0, 0], sizes = [8, 512], strides = [1, 1]} : vector<8x1024xf32> to vector<8x512xf32>
    %10 = vector.extract_strided_slice %8 {offsets = [0, 512], sizes = [8, 512], strides = [1, 1]} : vector<8x1024xf32> to vector<8x512xf32>
    %cst_7 = arith.constant 5.000000e-01 : f32
    %11 = vector.broadcast %cst_7 : f32 to vector<8x512xf32>
    %12 = arith.mulf %11, %9 : vector<8x512xf32>
    %cst_8 = arith.constant 0.707106769 : f32
    %13 = vector.broadcast %cst_8 : f32 to vector<8x512xf32>
    %14 = arith.mulf %9, %13 : vector<8x512xf32>
    %15 = math.erf %14 : vector<8x512xf32>
    %cst_9 = arith.constant 1.000000e+00 : f32
    %16 = vector.broadcast %cst_9 : f32 to vector<8x512xf32>
    %17 = arith.addf %16, %15 : vector<8x512xf32>
    %18 = arith.mulf %12, %17 : vector<8x512xf32>
    %cst_10 = arith.constant 0.000000e+00 : f32
    %19 = vector.broadcast %cst_10 : f32 to vector<8x512xf32>
    %20 = arith.subf %19, %10 : vector<8x512xf32>
    %21 = math.exp %20 : vector<8x512xf32>
    %cst_11 = arith.constant 1.000000e+00 : f32
    %22 = vector.broadcast %cst_11 : f32 to vector<8x512xf32>
    %23 = arith.addf %22, %21 : vector<8x512xf32>
    %24 = tpu.reciprocal %23 {approx = true} : vector<8x512xf32> -> vector<8x512xf32>
    %25 = arith.mulf %18, %24 : vector<8x512xf32>
    %26 = arith.truncf %25 : vector<8x512xf32> to vector<8x512xbf16>
    %c0_12 = arith.constant 0 : index
    %c0_13 = arith.constant 0 : index
    %c0_14 = arith.constant 0 : index
    %27 = vector.load %arg5[%c0_12, %c0_13, %c0_14] : memref<2x512x384xbf16, #tpu.memory_space<vmem>>, vector<1x512x384xbf16>
    %28 = vector.shape_cast %27 : vector<1x512x384xbf16> to vector<512x384xbf16>
    %cst_15 = arith.constant dense<0.000000e+00> : vector<8x384xf32>
    %29 = tpu.matmul %26, %28, %cst_15 {dimension_numbers = #tpu.dot_dimension_numbers<[1], [0], [0], [1], [0, 0, 1, 1], [], []>} : vector<8x512xbf16>, vector<512x384xbf16>, vector<8x384xf32> -> vector<8x384xf32>
    %c0_16 = arith.constant 0 : index
    %c0_17 = arith.constant 0 : index
    %c0_18 = arith.constant 0 : index
    %30 = vector.load %arg6[%c0_16, %c0_17, %c0_18] : memref<2x1x384xf32, #tpu.memory_space<vmem>>, vector<1x1x384xf32>
    %31 = vector.shape_cast %30 : vector<1x1x384xf32> to vector<1x384xf32>
    %32 = vector.broadcast %31 : vector<1x384xf32> to vector<8x384xf32>
    %33 = arith.addf %29, %32 : vector<8x384xf32>
    %c0_19 = arith.constant 0 : index
    %c0_20 = arith.constant 0 : index
    %34 = vector.load %arg7[%c0_19, %c0_20] : memref<8x384xf32, #tpu.memory_space<vmem>>, vector<8x384xf32>
    tpu.vector_store %arg7[%c0_19, %c0_20], %33 {strides = array<i32>} : memref<8x384xf32, #tpu.memory_space<vmem>>, vector<8x384xf32>,
    %c0_21 = arith.constant 0 : index
    %c0_22 = arith.constant 0 : index
    %35 = vector.load %arg2[%c0_21, %c0_22] : memref<8x384xf32, #tpu.memory_space<vmem>>, vector<8x384xf32>
    %36 = arith.truncf %35 : vector<8x384xf32> to vector<8x384xbf16>
    %c1 = arith.constant 1 : index
    %c0_23 = arith.constant 0 : index
    %c0_24 = arith.constant 0 : index
    %37 = vector.load %arg3[%c1, %c0_23, %c0_24] : memref<2x384x1024xbf16, #tpu.memory_space<vmem>>, vector<1x384x1024xbf16>
    %38 = vector.shape_cast %37 : vector<1x384x1024xbf16> to vector<384x1024xbf16>
    %cst_25 = arith.constant dense<0.000000e+00> : vector<8x1024xf32>
    %39 = tpu.matmul %36, %38, %cst_25 {dimension_numbers = #tpu.dot_dimension_numbers<[1], [0], [0], [1], [0, 0, 1, 1], [], []>} : vector<8x384xbf16>, vector<384x1024xbf16>, vector<8x1024xf32> -> vector<8x1024xf32>
    %c1_26 = arith.constant 1 : index
    %c0_27 = arith.constant 0 : index
    %c0_28 = arith.constant 0 : index
    %40 = vector.load %arg4[%c1_26, %c0_27, %c0_28] : memref<2x1x1024xf32, #tpu.memory_space<vmem>>, vector<1x1x1024xf32>
    %41 = vector.shape_cast %40 : vector<1x1x1024xf32> to vector<1x1024xf32>
    %42 = vector.broadcast %41 : vector<1x1024xf32> to vector<8x1024xf32>
    %43 = arith.addf %39, %42 : vector<8x1024xf32>
    %44 = vector.extract_strided_slice %43 {offsets = [0, 0], sizes = [8, 512], strides = [1, 1]} : vector<8x1024xf32> to vector<8x512xf32>
    %45 = vector.extract_strided_slice %43 {offsets = [0, 512], sizes = [8, 512], strides = [1, 1]} : vector<8x1024xf32> to vector<8x512xf32>
    %cst_29 = arith.constant 5.000000e-01 : f32
    %46 = vector.broadcast %cst_29 : f32 to vector<8x512xf32>
    %47 = arith.mulf %46, %44 : vector<8x512xf32>
    %cst_30 = arith.constant 0.707106769 : f32
    %48 = vector.broadcast %cst_30 : f32 to vector<8x512xf32>
    %49 = arith.mulf %44, %48 : vector<8x512xf32>
    %50 = math.erf %49 : vector<8x512xf32>
    %cst_31 = arith.constant 1.000000e+00 : f32
    %51 = vector.broadcast %cst_31 : f32 to vector<8x512xf32>
    %52 = arith.addf %51, %50 : vector<8x512xf32>
    %53 = arith.mulf %47, %52 : vector<8x512xf32>
    %cst_32 = arith.constant 0.000000e+00 : f32
    %54 = vector.broadcast %cst_32 : f32 to vector<8x512xf32>
    %55 = arith.subf %54, %45 : vector<8x512xf32>
    %56 = math.exp %55 : vector<8x512xf32>
    %cst_33 = arith.constant 1.000000e+00 : f32
    %57 = vector.broadcast %cst_33 : f32 to vector<8x512xf32>
    %58 = arith.addf %57, %56 : vector<8x512xf32>
    %59 = tpu.reciprocal %58 {approx = true} : vector<8x512xf32> -> vector<8x512xf32>
    %60 = arith.mulf %53, %59 : vector<8x512xf32>
    %61 = arith.truncf %60 : vector<8x512xf32> to vector<8x512xbf16>
    %c1_34 = arith.constant 1 : index
    %c0_35 = arith.constant 0 : index
    %c0_36 = arith.constant 0 : index
    %62 = vector.load %arg5[%c1_34, %c0_35, %c0_36] : memref<2x512x384xbf16, #tpu.memory_space<vmem>>, vector<1x512x384xbf16>
    %63 = vector.shape_cast %62 : vector<1x512x384xbf16> to vector<512x384xbf16>
    %cst_37 = arith.constant dense<0.000000e+00> : vector<8x384xf32>
    %64 = tpu.matmul %61, %63, %cst_37 {dimension_numbers = #tpu.dot_dimension_numbers<[1], [0], [0], [1], [0, 0, 1, 1], [], []>} : vector<8x512xbf16>, vector<512x384xbf16>, vector<8x384xf32> -> vector<8x384xf32>
    %c1_38 = arith.constant 1 : index
    %c0_39 = arith.constant 0 : index
    %c0_40 = arith.constant 0 : index
    %65 = vector.load %arg6[%c1_38, %c0_39, %c0_40] : memref<2x1x384xf32, #tpu.memory_space<vmem>>, vector<1x1x384xf32>
    %66 = vector.shape_cast %65 : vector<1x1x384xf32> to vector<1x384xf32>
    %67 = vector.broadcast %66 : vector<1x384xf32> to vector<8x384xf32>
    %68 = arith.addf %64, %67 : vector<8x384xf32>
    %c0_41 = arith.constant 0 : index
    %c0_42 = arith.constant 0 : index
    %69 = vector.load %arg8[%c0_41, %c0_42] : memref<8x384xf32, #tpu.memory_space<vmem>>, vector<8x384xf32>
    tpu.vector_store %arg8[%c0_41, %c0_42], %68 {strides = array<i32>} : memref<8x384xf32, #tpu.memory_space<vmem>>, vector<8x384xf32>,
    return
  }
  func.func @transform_0(%arg0: i32) -> (i32, i32) {
    %c0_i32 = arith.constant 0 : i32
    %c0_i32_0 = arith.constant 0 : i32
    return %arg0, %c0_i32 : i32, i32
  }
  func.func @transform_1(%arg0: i32) -> (i32, i32) {
    %c0_i32 = arith.constant 0 : i32
    %c0_i32_0 = arith.constant 0 : i32
    return %arg0, %c0_i32 : i32, i32
  }
  func.func @transform_2(%arg0: i32) -> (i32, i32, i32) {
    %c0_i32 = arith.constant 0 : i32
    %c0_i32_0 = arith.constant 0 : i32
    %c0_i32_1 = arith.constant 0 : i32
    %c0_i32_2 = arith.constant 0 : i32
    return %c0_i32, %c0_i32_0, %c0_i32_1 : i32, i32, i32
  }
  func.func @transform_3(%arg0: i32) -> (i32, i32, i32) {
    %c0_i32 = arith.constant 0 : i32
    %c0_i32_0 = arith.constant 0 : i32
    %c0_i32_1 = arith.constant 0 : i32
    %c0_i32_2 = arith.constant 0 : i32
    return %c0_i32, %c0_i32_0, %c0_i32_1 : i32, i32, i32
  }
  func.func @transform_4(%arg0: i32) -> (i32, i32, i32) {
    %c0_i32 = arith.constant 0 : i32
    %c0_i32_0 = arith.constant 0 : i32
    %c0_i32_1 = arith.constant 0 : i32
    %c0_i32_2 = arith.constant 0 : i32
    return %c0_i32, %c0_i32_0, %c0_i32_1 : i32, i32, i32
  }
  func.func @transform_5(%arg0: i32) -> (i32, i32, i32) {
    %c0_i32 = arith.constant 0 : i32
    %c0_i32_0 = arith.constant 0 : i32
    %c0_i32_1 = arith.constant 0 : i32
    %c0_i32_2 = arith.constant 0 : i32
    return %c0_i32, %c0_i32_0, %c0_i32_1 : i32, i32, i32
  }
  func.func @transform_6(%arg0: i32) -> (i32, i32) {
    %c0_i32 = arith.constant 0 : i32
    %c0_i32_0 = arith.constant 0 : i32
    return %arg0, %c0_i32 : i32, i32
  }
  func.func @transform_7(%arg0: i32) -> (i32, i32) {
    %c0_i32 = arith.constant 0 : i32
    %c0_i32_0 = arith.constant 0 : i32
    return %arg0, %c0_i32 : i32, i32
  }
}

</mosaic_0001>

<bundles_post_ra>
// kernel: modality_processor.1
= control target key start
LH: loop header
LB: loop body
LE: loop exit
PB: predicated region body
PF: predicated region fallthrough
CT: control target
= control target key end

     0   :  { %13 = vsyncpa [#allocation3], 0  ;;  %s6351_s0 = inlined_call_operand.hbm [shape: f32[8,384], index: 0, kind: input, shape index: {}]   ;;  %s6352_s1 = inlined_call_operand.hbm [shape: f32[8,384], index: 1, kind: input, shape index: {}]   ;;  %s6353_s2 = inlined_call_operand.hbm [shape: bf16[2,384,1024], index: 2, kind: input, shape index: {}]   ;;  %s6354_s3 = inlined_call_operand.hbm [shape: f32[2,1,1024], index: 3, kind: input, shape index: {}]   ;;  %s6355_s4 = inlined_call_operand.hbm [shape: bf16[2,512,384], index: 4, kind: input, shape index: {}]   ;;  %s6356_s5 = inlined_call_operand.hbm [shape: f32[2,1,384], index: 5, kind: input, shape index: {}]   ;;  %s6357_s6 = inlined_call_operand.hbm [shape: f32[8,384], index: 6, kind: output, shape index: {0}]   ;;  %s6358_s7 = inlined_call_operand.hbm [shape: f32[8,384], index: 7, kind: output, shape index: {1}]  }
   0x1   :  { %14 = vsyncpa [#allocation6], 0 }
   0x2   :  { %15 = vsyncpa [#allocation9], 0 }
   0x3   :  { %16 = vsyncpa [#allocation12], 0 }
   0x4   :  { %17 = vsyncpa [#allocation4], 0 }
   0x5   :  { %18 = vsyncpa [#allocation15], 0  ;;  %s6095_s24 = smov [#allocation5]   ;;  %s6096_s26 = smov [#allocation8]  }
   0x6   :  { %s35_s25 = sshll.u32 %s6095_s24, 4  ;;  %s56_s27 = sshll.u32 %s6096_s26, 4  ;;  %s36_s25 = int_to_ptr.vmem [resolvable:$true] %s35_s25  ;;  %s57_s27 = int_to_ptr.vmem [resolvable:$true] %s56_s27 }
   0x7   :  { %s5931_s28 = scalar_lea.vmem %s36_s25, 384  ;;  %p5936_p1 = scmp.lt.s32.totalorder %s36_s25, %s36_s25 }
   0x8   :  { %p5932_p0 = scmp.ne.s32.totalorder %s36_s25, %s5931_s28  ;;  %p5937_p2 = scmp.lt.s32.totalorder %s5931_s28, %s5931_s28 }
   0xa   :  { %p5938_p3 = por %p5937_p2, %p5936_p1 }
   0xc   :  { %p5939_p4 = pnand %p5938_p3, %p5932_p0 }
   0xe   :  { %5942 = shalt.err (!%p5939_p4)
}
   0xf   :  { %38 = dma.hbm_to_vmem [thread:$0]  %s6352_s1, 384, %s36_s25, [#allocation6]  }
  0x10   :  { %s5951_s8 = scalar_lea.vmem %s57_s27, 256  ;;  %p5956_p6 = scmp.lt.s32.totalorder %s57_s27, %s57_s27 }
  0x11   :  { %p5952_p5 = scmp.ne.s32.totalorder %s57_s27, %s5951_s8  ;;  %p5957_p7 = scmp.lt.s32.totalorder %s5951_s8, %s5951_s8 }
  0x13   :  { %p5958_p8 = por %p5957_p7, %p5956_p6 }
  0x15   :  { %p5959_p9 = pnand %p5958_p8, %p5952_p5 }
  0x17   :  { %5962 = shalt.err (!%p5959_p9)
}
  0x18   :  { %s6097_s9 = smov 128   ;;  %s6098_s10 = smov 8  }
  0x19   :  { %62 = dma.hbm_to_vmem [thread:$0]  %s6354_s3, 256, %s57_s27, [#allocation9], %s6097_s9, %s6097_s9, %s6098_s10  }
  0x1a   :  { %s6099_s13 = smov [#allocation2]   ;;  %s6100_s15 = smov [#allocation7]  }
  0x1b   :  { %s25_s14 = sshll.u32 %s6099_s13, 4  ;;  %s44_s16 = sshll.u32 %s6100_s15, 4  ;;  %s26_s14 = int_to_ptr.vmem [resolvable:$true] %s25_s14  ;;  %s45_s16 = int_to_ptr.vmem [resolvable:$true] %s44_s16 }
  0x1c   :  { %s5971_s1 = scalar_lea.vmem %s26_s14, 384  ;;  %p5976_p11 = scmp.lt.s32.totalorder %s26_s14, %s26_s14 }
  0x1d   :  { %p5972_p10 = scmp.ne.s32.totalorder %s26_s14, %s5971_s1  ;;  %p5977_p12 = scmp.lt.s32.totalorder %s5971_s1, %s5971_s1 }
  0x1f   :  { %p5978_p13 = por %p5977_p12, %p5976_p11 }
  0x21   :  { %p5979_p0 = pnand %p5978_p13, %p5972_p10 }
  0x23   :  { %5982 = shalt.err (!%p5979_p0)
}
  0x24   :  { %28 = dma.hbm_to_vmem [thread:$0]  %s6351_s0, 384, %s26_s14, [#allocation3]  }
  0x25   :  { %s5991_s19 = scalar_lea.vmem %s45_s16, 49152  ;;  %p5996_p2 = scmp.lt.s32.totalorder %s45_s16, %s45_s16 }
  0x26   :  { %p5992_p1 = scmp.ne.s32.totalorder %s45_s16, %s5991_s19  ;;  %p5997_p3 = scmp.lt.s32.totalorder %s5991_s19, %s5991_s19 }
  0x28   :  { %p5998_p4 = por %p5997_p3, %p5996_p2 }
  0x2a   :  { %p5999_p5 = pnand %p5998_p4, %p5992_p1 }
  0x2c   :  { %6002 = shalt.err (!%p5999_p5)
}
  0x2d   :  { %s6101_s3 = smov 512   ;;  %s6102_s20 = smov 32  }
  0x2e   :  { %50 = dma.hbm_to_vmem [thread:$0]  %s6353_s2, 49152, %s45_s16, [#allocation6], %s6101_s3, %s6101_s3, %s6102_s20  }
  0x2f   :  { %s6103_s23 = smov [#allocation10]  }
  0x30   :  { %s68_s24 = sshll.u32 %s6103_s23, 4  ;;  %s69_s24 = int_to_ptr.vmem [resolvable:$true] %s68_s24 }
  0x31   :  { %s6011_s25 = scalar_lea.vmem %s69_s24, 24576  ;;  %p6016_p7 = scmp.lt.s32.totalorder %s69_s24, %s69_s24 }
  0x32   :  { %p6012_p6 = scmp.ne.s32.totalorder %s69_s24, %s6011_s25  ;;  %p6017_p8 = scmp.lt.s32.totalorder %s6011_s25, %s6011_s25 }
  0x34   :  { %p6018_p9 = por %p6017_p8, %p6016_p7 }
  0x36   :  { %p6019_p10 = pnand %p6018_p9, %p6012_p6 }
  0x38   :  { %6022 = shalt.err (!%p6019_p10)
}
  0x39   :  { %s6104_s0 = smov 192   ;;  %s6105_s26 = smov 12  }
  0x3a   :  { %74 = dma.hbm_to_vmem [thread:$0]  %s6355_s4, 24576, %s69_s24, [#allocation9], %s6104_s0, %s6104_s0, %s6105_s26  }
  0x3b   :  { %s6106_s29 = smov [#allocation11]  }
  0x3c   :  { %s80_s30 = sshll.u32 %s6106_s29, 4  ;;  %s81_s30 = int_to_ptr.vmem [resolvable:$true] %s80_s30 }
  0x3d   :  { %s6031_s2 = scalar_lea.vmem %s81_s30, 96  ;;  %p6036_p12 = scmp.lt.s32.totalorder %s81_s30, %s81_s30 }
  0x3e   :  { %p6032_p11 = scmp.ne.s32.totalorder %s81_s30, %s6031_s2  ;;  %p6037_p13 = scmp.lt.s32.totalorder %s6031_s2, %s6031_s2 }
  0x40   :  { %p6038_p0 = por %p6037_p13, %p6036_p12 }
  0x42   :  { %p6039_p1 = pnand %p6038_p0, %p6032_p11 }
  0x44   :  { %6042 = shalt.err (!%p6039_p1)
}
  0x45   :  { %s6107_s8 = smov 48   ;;  %s6108_s9 = smov 3  }
  0x46   :  { %86 = dma.hbm_to_vmem [thread:$0]  %s6356_s5, 96, %s81_s30, [#allocation12], %s6107_s8, %s6107_s8, %s6108_s9  }
  0x47   :  { %6083 = dma.done.wait [#allocation3], 384  }
  0x48   :  { %6084 = vsyncadd [#allocation3], 4294966912 }
  0x49   :  { %6085 = dma.done.wait [#allocation6], 49536  }
  0x4a   :  { %6086 = vsyncadd [#allocation6], 4294917760 }
  0x4b   :  { %6087 = dma.done.wait [#allocation9], 24832  }
  0x4c   :  { %6088 = vsyncadd [#allocation9], 4294942464 }
  0x4d   :  { %6089 = dma.done.wait [#allocation12], 96  }
  0x4e   :  { %6090 = vsyncadd [#allocation12], 4294967200  ;;  %v6109_v0 = vmov 0   ;;  %v168_v1 = vld [vmem:[#allocation7 + $0x1c0] sm:$0xff]  ;;  %v107_v54 = vld [vmem:[#allocation2 + $0x8] sm:$0xff]  ;;  %s6110_s4 = smov [#allocation13]  }
  0x4f   :  { %1379 = vmatprep.mubr.bf16.mxu1 %v6109_v0  ;;  %v172_v2 = vld [vmem:[#allocation7 + $0x1e0] sm:$0xff]  ;;  %v6171_v58 = vpack.c.bf16 %v107_v54, %v107_v54  ;;  %v121_v54 = vld [vmem:[#allocation7 + $0x48] sm:$0xff]  ;;  %s4912_s5 = sshll.u32 %s6110_s4, 4  ;;  %s4913_s5 = int_to_ptr.vmem [resolvable:$true] %s4912_s5 }
  0x50   :  { %v296_v3 = vld [vmem:[#allocation7 + $0x5c0] sm:$0xff]  ;;  %v4995_v4 = vcombine.high %v168_v1, %v172_v2  ;;  %v4994_v6 = vcombine.low %v168_v1, %v172_v2  ;;  %s6043_s12 = scalar_lea.vmem %s4913_s5, 384  ;;  %p6048_p3 = scmp.lt.s32.totalorder %s4913_s5, %s4913_s5 }
  0x51   :  { %v300_v5 = vld [vmem:[#allocation7 + $0x5e0] sm:$0xff]  ;;  %1338 = vmatprep.mubr.bf16.mxu0 %v6171_v58  ;;  %p6044_p2 = scmp.ne.s32.totalorder %s4913_s5, %s6043_s12  ;;  %p6049_p4 = scmp.lt.s32.totalorder %s6043_s12, %s6043_s12 }
  0x52   :  { %v160_v7 = vld [vmem:[#allocation7 + $0x180] sm:$0xff]  ;;  %v5123_v9 = vcombine.high %v296_v3, %v300_v5  ;;  %v5122_v10 = vcombine.low %v296_v3, %v300_v5  ;;  %1306 = vmatprep.subr.bf16.mxu0 %v4995_v4  ;;  %v169_v4 = vld [vmem:[#allocation7 + $0x1c8] sm:$0xff] }
  0x53   :  { %v164_v8 = vld [vmem:[#allocation7 + $0x1a0] sm:$0xff]  ;;  %1307 = vmatpush1.bf16.msra.mxu0 %v4994_v6  ;;  %v173_v5 = vld [vmem:[#allocation7 + $0x1e8] sm:$0xff]  ;;  %p6050_p5 = por %p6049_p4, %p6048_p3 }
  0x54   :  { %v4987_v11 = vcombine.high %v160_v7, %v164_v8  ;;  %v288_v12 = vld [vmem:[#allocation7 + $0x580] sm:$0xff]  ;;  %1347 = vmatprep.subr.bf16.mxu1 %v5123_v9  ;;  %v4986_v19 = vcombine.low %v160_v7, %v164_v8 }
  0x55   :  { %v292_v13 = vld [vmem:[#allocation7 + $0x5a0] sm:$0xff]  ;;  %1348 = vmatpush1.bf16.msra.mxu1 %v5122_v10  ;;  %v4997_v10 = vcombine.high %v169_v4, %v173_v5  ;;  %p6051_p6 = pnand %p6050_p5, %p6044_p2 }
  0x56   :  { %v152_v14 = vld [vmem:[#allocation7 + $0x140] sm:$0xff]  ;;  %v5115_v15 = vcombine.high %v288_v12, %v292_v13  ;;  %1308 = vmatprep.subr.bf16.mxu0 %v4987_v11  ;;  %v5114_v20 = vcombine.low %v288_v12, %v292_v13  ;;  %v161_v13 = vld [vmem:[#allocation7 + $0x188] sm:$0xff] }
  0x57   :  { %v156_v16 = vld [vmem:[#allocation7 + $0x160] sm:$0xff]  ;;  %1309 = vmatpush1.bf16.msra.mxu0 %v4986_v19 }
  0x58   :  { %v280_v17 = vld [vmem:[#allocation7 + $0x540] sm:$0xff]  ;;  %v4979_v21 = vcombine.high %v152_v14, %v156_v16  ;;  %1349 = vmatprep.subr.bf16.mxu1 %v5115_v15  ;;  %v4978_v27 = vcombine.low %v152_v14, %v156_v16  ;;  %v165_v14 = vld [vmem:[#allocation7 + $0x1a8] sm:$0xff] }
  0x59   :  { %v284_v18 = vld [vmem:[#allocation7 + $0x560] sm:$0xff]  ;;  %1350 = vmatpush1.bf16.msra.mxu1 %v5114_v20  ;;  %v4989_v19 = vcombine.high %v161_v13, %v165_v14 }
  0x5a   :  { %v5107_v22 = vcombine.high %v280_v17, %v284_v18  ;;  %v144_v23 = vld [vmem:[#allocation7 + $0x100] sm:$0xff]  ;;  %1310 = vmatprep.subr.bf16.mxu0 %v4979_v21  ;;  %v5106_v28 = vcombine.low %v280_v17, %v284_v18  ;;  %v4996_v17 = vcombine.low %v169_v4, %v173_v5 }
  0x5b   :  { %v148_v24 = vld [vmem:[#allocation7 + $0x120] sm:$0xff]  ;;  %1311 = vmatpush1.bf16.msra.mxu0 %v4978_v27 }
  0x5c   :  { %v272_v25 = vld [vmem:[#allocation7 + $0x500] sm:$0xff]  ;;  %v4971_v29 = vcombine.high %v144_v23, %v148_v24  ;;  %1351 = vmatprep.subr.bf16.mxu1 %v5107_v22  ;;  %v4970_v35 = vcombine.low %v144_v23, %v148_v24  ;;  %v153_v22 = vld [vmem:[#allocation7 + $0x148] sm:$0xff] }
  0x5d   :  { %v276_v26 = vld [vmem:[#allocation7 + $0x520] sm:$0xff]  ;;  %1352 = vmatpush1.bf16.msra.mxu1 %v5106_v28  ;;  %v157_v23 = vld [vmem:[#allocation7 + $0x168] sm:$0xff] }
  0x5e   :  { %v5099_v30 = vcombine.high %v272_v25, %v276_v26  ;;  %v136_v31 = vld [vmem:[#allocation7 + $0xc0] sm:$0xff]  ;;  %1312 = vmatprep.subr.bf16.mxu0 %v4971_v29  ;;  %v5098_v36 = vcombine.low %v272_v25, %v276_v26  ;;  %v4988_v25 = vcombine.low %v161_v13, %v165_v14  ;;  %v4981_v27 = vcombine.high %v153_v22, %v157_v23 }
  0x5f   :  { %v140_v32 = vld [vmem:[#allocation7 + $0xe0] sm:$0xff]  ;;  %1313 = vmatpush1.bf16.msra.mxu0 %v4970_v35 }
  0x60   :  { %v264_v33 = vld [vmem:[#allocation7 + $0x4c0] sm:$0xff]  ;;  %v4963_v37 = vcombine.high %v136_v31, %v140_v32  ;;  %1353 = vmatprep.subr.bf16.mxu1 %v5099_v30  ;;  %v4962_v43 = vcombine.low %v136_v31, %v140_v32  ;;  %v145_v30 = vld [vmem:[#allocation7 + $0x108] sm:$0xff] }
  0x61   :  { %v268_v34 = vld [vmem:[#allocation7 + $0x4e0] sm:$0xff]  ;;  %1354 = vmatpush1.bf16.msra.mxu1 %v5098_v36  ;;  %v149_v31 = vld [vmem:[#allocation7 + $0x128] sm:$0xff] }
  0x62   :  { %v5091_v38 = vcombine.high %v264_v33, %v268_v34  ;;  %v128_v39 = vld [vmem:[#allocation7 + $0x80] sm:$0xff]  ;;  %1314 = vmatprep.subr.bf16.mxu0 %v4963_v37  ;;  %v5090_v44 = vcombine.low %v264_v33, %v268_v34  ;;  %v4980_v33 = vcombine.low %v153_v22, %v157_v23  ;;  %v4973_v35 = vcombine.high %v145_v30, %v149_v31  ;;  %v281_v22 = vld [vmem:[#allocation7 + $0x548] sm:$0xff] }
  0x63   :  { %v132_v40 = vld [vmem:[#allocation7 + $0xa0] sm:$0xff]  ;;  %1315 = vmatpush1.bf16.msra.mxu0 %v4962_v43  ;;  %v285_v23 = vld [vmem:[#allocation7 + $0x568] sm:$0xff] }
  0x64   :  { %v256_v41 = vld [vmem:[#allocation7 + $0x480] sm:$0xff]  ;;  %v4955_v45 = vcombine.high %v128_v39, %v132_v40  ;;  %1355 = vmatprep.subr.bf16.mxu1 %v5091_v38  ;;  %v4954_v51 = vcombine.low %v128_v39, %v132_v40  ;;  %v137_v38 = vld [vmem:[#allocation7 + $0xc8] sm:$0xff] }
  0x65   :  { %v260_v42 = vld [vmem:[#allocation7 + $0x4a0] sm:$0xff]  ;;  %1356 = vmatpush1.bf16.msra.mxu1 %v5090_v44  ;;  %v141_v39 = vld [vmem:[#allocation7 + $0xe8] sm:$0xff] }
  0x66   :  { %v5083_v46 = vcombine.high %v256_v41, %v260_v42  ;;  %v120_v47 = vld [vmem:[#allocation7 + $0x40] sm:$0xff]  ;;  %1316 = vmatprep.subr.bf16.mxu0 %v4955_v45  ;;  %v5082_v52 = vcombine.low %v256_v41, %v260_v42  ;;  %v4972_v41 = vcombine.low %v145_v30, %v149_v31  ;;  %v4965_v43 = vcombine.high %v137_v38, %v141_v39  ;;  %v273_v30 = vld [vmem:[#allocation7 + $0x508] sm:$0xff] }
  0x67   :  { %v124_v48 = vld [vmem:[#allocation7 + $0x60] sm:$0xff]  ;;  %1317 = vmatpush1.bf16.msra.mxu0 %v4954_v51  ;;  %v277_v31 = vld [vmem:[#allocation7 + $0x528] sm:$0xff] }
  0x68   :  { %v248_v49 = vld [vmem:[#allocation7 + $0x440] sm:$0xff]  ;;  %v4947_v53 = vcombine.high %v120_v47, %v124_v48  ;;  %1357 = vmatprep.subr.bf16.mxu1 %v5083_v46  ;;  %v4946_v61 = vcombine.low %v120_v47, %v124_v48  ;;  %v129_v46 = vld [vmem:[#allocation7 + $0x88] sm:$0xff] }
  0x69   :  { %v252_v50 = vld [vmem:[#allocation7 + $0x460] sm:$0xff]  ;;  %1358 = vmatpush1.bf16.msra.mxu1 %v5082_v52  ;;  %v133_v47 = vld [vmem:[#allocation7 + $0xa8] sm:$0xff] }
  0x6a   :  { %v5075_v55 = vcombine.high %v248_v49, %v252_v50  ;;  %v112_v56 = vld [vmem:[#allocation7] sm:$0xff]  ;;  %1318 = vmatprep.subr.bf16.mxu0 %v4947_v53  ;;  %v5074_v62 = vcombine.low %v248_v49, %v252_v50  ;;  %v4964_v49 = vcombine.low %v137_v38, %v141_v39  ;;  %v4957_v51 = vcombine.high %v129_v46, %v133_v47  ;;  %v265_v38 = vld [vmem:[#allocation7 + $0x4c8] sm:$0xff] }
  0x6b   :  { %v116_v57 = vld [vmem:[#allocation7 + $0x20] sm:$0xff]  ;;  %1319 = vmatpush1.bf16.msra.mxu0 %v4946_v61  ;;  %v269_v39 = vld [vmem:[#allocation7 + $0x4e8] sm:$0xff] }
  0x6c   :  { %v240_v59 = vld [vmem:[#allocation7 + $0x400] sm:$0xff]  ;;  %v4939_v63 = vcombine.high %v112_v56, %v116_v57  ;;  %1359 = vmatprep.subr.bf16.mxu1 %v5075_v55  ;;  %v4938_v6 = vcombine.low %v112_v56, %v116_v57  ;;  %v125_v55 = vld [vmem:[#allocation7 + $0x68] sm:$0xff]  ;;  %v4956_v57 = vcombine.low %v129_v46, %v133_v47 }
  0x6d   :  { %v244_v60 = vld [vmem:[#allocation7 + $0x420] sm:$0xff]  ;;  %1360 = vmatpush1.bf16.msra.mxu1 %v5074_v62  ;;  %v257_v46 = vld [vmem:[#allocation7 + $0x488] sm:$0xff] }
  0x6e   :  { %v5067_v1 = vcombine.high %v240_v59, %v244_v60  ;;  %v232_v2 = vld [vmem:[#allocation7 + $0x3c0] sm:$0xff]  ;;  %1320 = vmatprep.subr.bf16.mxu0 %v4939_v63  ;;  %v5066_v7 = vcombine.low %v240_v59, %v244_v60  ;;  %v4949_v60 = vcombine.high %v121_v54, %v125_v55  ;;  %v113_v63 = vld [vmem:[#allocation7 + $0x8] sm:$0xff] }
  0x6f   :  { %v236_v3 = vld [vmem:[#allocation7 + $0x3e0] sm:$0xff]  ;;  %1321 = vmatpush1.bf16.msra.mxu0 %v4938_v6  ;;  %v297_v6 = vld [vmem:[#allocation7 + $0x5c8] sm:$0xff] }
  0x70   :  { %v5059_v8 = vcombine.high %v232_v2, %v236_v3  ;;  %v108_v9 = vld [vmem:[#allocation2 + $0x10] sm:$0xff]  ;;  %1361 = vmatprep.subr.bf16.mxu1 %v5067_v1  ;;  %v5058_v16 = vcombine.low %v232_v2, %v236_v3  ;;  %v117_v1 = vld [vmem:[#allocation7 + $0x28] sm:$0xff]  ;;  %v4948_v3 = vcombine.low %v121_v54, %v125_v55 }
  0x71   :  { %v224_v11 = vld [vmem:[#allocation7 + $0x380] sm:$0xff]  ;;  %v6174_v15 = vpack.c.bf16 %v108_v9, %v108_v9  ;;  %1362 = vmatpush1.bf16.msra.mxu1 %v5066_v7  ;;  %v4941_v5 = vcombine.high %v113_v63, %v117_v1  ;;  %v301_v7 = vld [vmem:[#allocation7 + $0x5e8] sm:$0xff] }
  0x72   :  { %v228_v12 = vld [vmem:[#allocation7 + $0x3a0] sm:$0xff]  ;;  %1322 = vmatprep.subr.bf16.mxu0 %v5059_v8  ;;  %1388 = vmatprep.subr.bf16.mxu1 %v4997_v10  ;;  %v233_v8 = vld [vmem:[#allocation7 + $0x3c8] sm:$0xff]  ;;  %v5125_v13 = vcombine.high %v297_v6, %v301_v7 }
  0x73   :  { %v5051_v18 = vcombine.high %v224_v11, %v228_v12  ;;  %v216_v20 = vld [vmem:[#allocation7 + $0x340] sm:$0xff]  ;;  %1323 = vmatpush2.bf16.msra.mxu0 %v5058_v16  ;;  %v5050_v24 = vcombine.low %v224_v11, %v228_v12  ;;  %v237_v9 = vld [vmem:[#allocation7 + $0x3e8] sm:$0xff]  ;;  %v106_v11 = vld [vmem:[#allocation2] sm:$0xff]  ;;  %v4940_v12 = vcombine.low %v113_v63, %v117_v1 }
  0x74   :  { %v220_v21 = vld [vmem:[#allocation7 + $0x360] sm:$0xff]  ;;  %1380 = vmatmul.mubr.bf16.vlgmr.msra.gmra.mxu1 %v6174_v15  ;;  %v5061_v14 = vcombine.high %v233_v8, %v237_v9  ;;  %v289_v16 = vld [vmem:[#allocation7 + $0x588] sm:$0xff] }
  0x75   :  { %1389 = vmatpush1.bf16.msra.mxu1 %v4996_v17  ;;  %1324 = vmatprep.subr.bf16.mxu0 %v5051_v18  ;;  %v5043_v26 = vcombine.high %v216_v20, %v220_v21  ;;  %v208_v28 = vld [vmem:[#allocation7 + $0x300] sm:$0xff]  ;;  %v5042_v32 = vcombine.low %v216_v20, %v220_v21  ;;  %v293_v17 = vld [vmem:[#allocation7 + $0x5a8] sm:$0xff]  ;;  %v6178_v18 = vpack.c.bf16 %v106_v11, %v106_v11 }
  0x76   :  { %1390 = vmatprep.subr.bf16.mxu1 %v4989_v19  ;;  %v212_v29 = vld [vmem:[#allocation7 + $0x320] sm:$0xff]  ;;  %1420 = vmatprep.mubr.bf16.mxu1 %v6171_v58  ;;  %v225_v19 = vld [vmem:[#allocation7 + $0x388] sm:$0xff]  ;;  %v5124_v21 = vcombine.low %v297_v6, %v301_v7 }
  0x77   :  { %1325 = vmatpush2.bf16.msra.mxu0 %v5050_v24  ;;  %v5035_v34 = vcombine.high %v208_v28, %v212_v29  ;;  %v200_v36 = vld [vmem:[#allocation7 + $0x2c0] sm:$0xff]  ;;  %v5034_v40 = vcombine.low %v208_v28, %v212_v29  ;;  %v229_v20 = vld [vmem:[#allocation7 + $0x3a8] sm:$0xff]  ;;  %v5060_v24 = vcombine.low %v233_v8, %v237_v9  ;;  %v5116_v29 = vcombine.low %v289_v16, %v293_v17  ;;  %v170_v8 = vld [vmem:[#allocation7 + $0x1d0] sm:$0xff] }
  0x78   :  { %1326 = vmatprep.subr.bf16.mxu0 %v5043_v26  ;;  %v204_v37 = vld [vmem:[#allocation7 + $0x2e0] sm:$0xff]  ;;  %v217_v26 = vld [vmem:[#allocation7 + $0x348] sm:$0xff]  ;;  %v5053_v28 = vcombine.high %v225_v19, %v229_v20  ;;  %v174_v9 = vld [vmem:[#allocation7 + $0x1f0] sm:$0xff] }
  0x79   :  { %1391 = vmatpush1.bf16.msra.mxu1 %v4988_v25  ;;  %v5027_v42 = vcombine.high %v200_v36, %v204_v37  ;;  %v192_v44 = vld [vmem:[#allocation7 + $0x280] sm:$0xff]  ;;  %v5026_v48 = vcombine.low %v200_v36, %v204_v37  ;;  %v5117_v25 = vcombine.high %v289_v16, %v293_v17  ;;  %v5108_v37 = vcombine.low %v281_v22, %v285_v23  ;;  %v261_v47 = vld [vmem:[#allocation7 + $0x4a8] sm:$0xff]  ;;  %v162_v17 = vld [vmem:[#allocation7 + $0x190] sm:$0xff] }
  0x7a   :  { %1392 = vmatprep.subr.bf16.mxu1 %v4981_v27  ;;  %v196_v45 = vld [vmem:[#allocation7 + $0x2a0] sm:$0xff]  ;;  %v221_v27 = vld [vmem:[#allocation7 + $0x368] sm:$0xff] }
  0x7b   :  { %1327 = vmatpush2.bf16.msra.mxu0 %v5042_v32  ;;  %v5019_v50 = vcombine.high %v192_v44, %v196_v45  ;;  %v184_v52 = vld [vmem:[#allocation7 + $0x240] sm:$0xff]  ;;  %v5018_v56 = vcombine.low %v192_v44, %v196_v45  ;;  %v5052_v32 = vcombine.low %v225_v19, %v229_v20  ;;  %v5045_v36 = vcombine.high %v217_v26, %v221_v27  ;;  %v249_v54 = vld [vmem:[#allocation7 + $0x448] sm:$0xff]  ;;  %v166_v19 = vld [vmem:[#allocation7 + $0x1b0] sm:$0xff] }
  0x7c   :  { %1328 = vmatprep.subr.bf16.mxu0 %v5035_v34  ;;  %v188_v53 = vld [vmem:[#allocation7 + $0x260] sm:$0xff]  ;;  %v209_v34 = vld [vmem:[#allocation7 + $0x308] sm:$0xff]  ;;  %v5100_v45 = vcombine.low %v273_v30, %v277_v31 }
  0x7d   :  { %1393 = vmatpush1.bf16.msra.mxu1 %v4980_v33  ;;  %v5011_v59 = vcombine.high %v184_v52, %v188_v53  ;;  %v176_v61 = vld [vmem:[#allocation7 + $0x200] sm:$0xff]  ;;  %v5010_v2 = vcombine.low %v184_v52, %v188_v53  ;;  %v5109_v33 = vcombine.high %v281_v22, %v285_v23  ;;  %v5092_v53 = vcombine.low %v265_v38, %v269_v39  ;;  %v253_v55 = vld [vmem:[#allocation7 + $0x468] sm:$0xff]  ;;  %v290_v22 = vld [vmem:[#allocation7 + $0x590] sm:$0xff] }
  0x7e   :  { %1394 = vmatprep.subr.bf16.mxu1 %v4973_v35  ;;  %v180_v62 = vld [vmem:[#allocation7 + $0x220] sm:$0xff]  ;;  %v213_v35 = vld [vmem:[#allocation7 + $0x328] sm:$0xff]  ;;  %v5076_v7 = vcombine.low %v249_v54, %v253_v55  ;;  %v294_v23 = vld [vmem:[#allocation7 + $0x5b0] sm:$0xff] }
  0x7f   :  { %1329 = vmatpush2.bf16.msra.mxu0 %v5034_v40  ;;  %v5003_v4 = vcombine.high %v176_v61, %v180_v62  ;;  %v5002_v10 = vcombine.low %v176_v61, %v180_v62  ;;  %v5044_v40 = vcombine.low %v217_v26, %v221_v27  ;;  %v5037_v44 = vcombine.high %v209_v34, %v213_v35  ;;  %v241_v63 = vld [vmem:[#allocation7 + $0x408] sm:$0xff]  ;;  %v154_v26 = vld [vmem:[#allocation7 + $0x150] sm:$0xff] }
  0x80   :  { %1330 = vmatprep.subr.bf16.mxu0 %v5027_v42  ;;  %v201_v42 = vld [vmem:[#allocation7 + $0x2c8] sm:$0xff]  ;;  %v5084_v62 = vcombine.low %v257_v46, %v261_v47  ;;  %v158_v27 = vld [vmem:[#allocation7 + $0x170] sm:$0xff] }
  0x81   :  { %1395 = vmatpush1.bf16.msra.mxu1 %v4972_v41  ;;  %v5101_v41 = vcombine.high %v273_v30, %v277_v31  ;;  %v245_v1 = vld [vmem:[#allocation7 + $0x428] sm:$0xff]  ;;  %v282_v30 = vld [vmem:[#allocation7 + $0x550] sm:$0xff] }
  0x82   :  { %1396 = vmatprep.subr.bf16.mxu1 %v4965_v43  ;;  %v205_v43 = vld [vmem:[#allocation7 + $0x2e8] sm:$0xff]  ;;  %v5069_v11 = vcombine.high %v241_v63, %v245_v1  ;;  %v5068_v16 = vcombine.low %v241_v63, %v245_v1  ;;  %v286_v31 = vld [vmem:[#allocation7 + $0x570] sm:$0xff] }
  0x83   :  { %1331 = vmatpush2.bf16.msra.mxu0 %v5026_v48  ;;  %v5036_v48 = vcombine.low %v209_v34, %v213_v35  ;;  %v5029_v52 = vcombine.high %v201_v42, %v205_v43  ;;  %v146_v34 = vld [vmem:[#allocation7 + $0x110] sm:$0xff] }
  0x84   :  { %1332 = vmatprep.subr.bf16.mxu0 %v5019_v50  ;;  %v193_v50 = vld [vmem:[#allocation7 + $0x288] sm:$0xff]  ;;  %v150_v35 = vld [vmem:[#allocation7 + $0x130] sm:$0xff] }
  0x85   :  { %1397 = vmatpush1.bf16.msra.mxu1 %v4964_v49  ;;  %v5093_v49 = vcombine.high %v265_v38, %v269_v39  ;;  %v274_v38 = vld [vmem:[#allocation7 + $0x510] sm:$0xff] }
  0x86   :  { %1398 = vmatprep.subr.bf16.mxu1 %v4957_v51  ;;  %v197_v51 = vld [vmem:[#allocation7 + $0x2a8] sm:$0xff]  ;;  %v278_v39 = vld [vmem:[#allocation7 + $0x530] sm:$0xff] }
  0x87   :  { %1333 = vmatpush2.bf16.msra.mxu0 %v5018_v56  ;;  %v5028_v56 = vcombine.low %v201_v42, %v205_v43  ;;  %v5021_v61 = vcombine.high %v193_v50, %v197_v51  ;;  %v138_v42 = vld [vmem:[#allocation7 + $0xd0] sm:$0xff] }
  0x88   :  { %1334 = vmatprep.subr.bf16.mxu0 %v5011_v59  ;;  %v185_v59 = vld [vmem:[#allocation7 + $0x248] sm:$0xff]  ;;  %v142_v43 = vld [vmem:[#allocation7 + $0xf0] sm:$0xff] }
  0x89   :  { %1399 = vmatpush1.bf16.msra.mxu1 %v4956_v57  ;;  %v5085_v57 = vcombine.high %v257_v46, %v261_v47  ;;  %v266_v46 = vld [vmem:[#allocation7 + $0x4d0] sm:$0xff]  ;;  %v5103_v47 = vcombine.high %v274_v38, %v278_v39 }
  0x8a   :  { %1400 = vmatprep.subr.bf16.mxu1 %v4949_v60  ;;  %v189_v60 = vld [vmem:[#allocation7 + $0x268] sm:$0xff]  ;;  %v250_v63 = vld [vmem:[#allocation7 + $0x450] sm:$0xff] }
  0x8b   :  { %1335 = vmatpush2.bf16.msra.mxu0 %v5010_v2  ;;  %v5020_v2 = vcombine.low %v193_v50, %v197_v51  ;;  %v5013_v6 = vcombine.high %v185_v59, %v189_v60  ;;  %v130_v50 = vld [vmem:[#allocation7 + $0x90] sm:$0xff] }
  0x8c   :  { %1336 = vmatprep.subr.bf16.mxu0 %v5003_v4  ;;  %v177_v4 = vld [vmem:[#allocation7 + $0x208] sm:$0xff]  ;;  %v134_v51 = vld [vmem:[#allocation7 + $0xb0] sm:$0xff] }
  0x8d   :  { %1401 = vmatpush1.bf16.msra.mxu1 %v4948_v3  ;;  %v5077_v3 = vcombine.high %v249_v54, %v253_v55  ;;  %v258_v54 = vld [vmem:[#allocation7 + $0x490] sm:$0xff] }
  0x8e   :  { %1402 = vmatprep.subr.bf16.mxu1 %v4941_v5  ;;  %v181_v5 = vld [vmem:[#allocation7 + $0x228] sm:$0xff]  ;;  %v262_v55 = vld [vmem:[#allocation7 + $0x4b0] sm:$0xff] }
  0x8f   :  { %1337 = vmatpush2.bf16.msra.mxu0 %v5002_v10  ;;  %v5012_v10 = vcombine.low %v185_v59, %v189_v60  ;;  %v5004_v20 = vcombine.low %v177_v4, %v181_v5  ;;  %v122_v59 = vld [vmem:[#allocation7 + $0x50] sm:$0xff] }
  0x90   :  { %1429 = vmatprep.subr.bf16.mxu0 %v5125_v13  ;;  %v302_v13 = vld [vmem:[#allocation7 + $0x5f0] sm:$0xff] }
  0x91   :  { %1403 = vmatpush1.bf16.msra.mxu1 %v4940_v12  ;;  %v298_v12 = vld [vmem:[#allocation7 + $0x5d0] sm:$0xff] }
  0x92   :  { %1404 = vmatprep.subr.bf16.mxu1 %v5061_v14  ;;  %1339 = vmatmul.mubr.bf16.vlgmr.msra.gmra.mxu0 %v6178_v18  ;;  %v5005_v14 = vcombine.high %v177_v4, %v181_v5  ;;  %v126_v60 = vld [vmem:[#allocation7 + $0x70] sm:$0xff] }
  0x93   :  { %1430 = vmatpush1.bf16.msra.mxu0 %v5124_v21  ;;  %1461 = vmatprep.mubr.bf16.mxu0 %v6109_v0  ;;  %v4999_v21 = vcombine.high %v170_v8, %v174_v9  ;;  %v254_v1 = vld [vmem:[#allocation7 + $0x470] sm:$0xff] }
  0x94   :  { %1431 = vmatprep.subr.bf16.mxu0 %v5117_v25  ;;  %v4998_v25 = vcombine.low %v170_v8, %v174_v9  ;;  %v114_v4 = vld [vmem:[#allocation7 + $0x10] sm:$0xff] }
  0x95   :  { %1405 = vmatpush2.bf16.msra.mxu1 %v5060_v24  ;;  %v5127_v24 = vcombine.high %v298_v12, %v302_v13  ;;  %v118_v5 = vld [vmem:[#allocation7 + $0x30] sm:$0xff] }
  0x96   :  { %1406 = vmatprep.subr.bf16.mxu1 %v5053_v28  ;;  %v5126_v28 = vcombine.low %v298_v12, %v302_v13  ;;  %v242_v8 = vld [vmem:[#allocation7 + $0x410] sm:$0xff] }
  0x97   :  { %1432 = vmatpush1.bf16.msra.mxu0 %v5116_v29  ;;  %v4991_v29 = vcombine.high %v162_v17, %v166_v19  ;;  %v246_v9 = vld [vmem:[#allocation7 + $0x430] sm:$0xff] }
  0x98   :  { %1433 = vmatprep.subr.bf16.mxu0 %v5109_v33  ;;  %v4990_v33 = vcombine.low %v162_v17, %v166_v19  ;;  %v234_v12 = vld [vmem:[#allocation7 + $0x3d0] sm:$0xff]  ;;  %v171_v17 = vld [vmem:[#allocation7 + $0x1d8] sm:$0xff] }
  0x99   :  { %1407 = vmatpush2.bf16.msra.mxu1 %v5052_v32  ;;  %v5119_v32 = vcombine.high %v290_v22, %v294_v23  ;;  %v238_v13 = vld [vmem:[#allocation7 + $0x3f0] sm:$0xff]  ;;  %v175_v19 = vld [vmem:[#allocation7 + $0x1f8] sm:$0xff] }
  0x9a   :  { %1408 = vmatprep.subr.bf16.mxu1 %v5045_v36  ;;  %v5118_v36 = vcombine.low %v290_v22, %v294_v23  ;;  %v226_v22 = vld [vmem:[#allocation7 + $0x390] sm:$0xff] }
  0x9b   :  { %1434 = vmatpush1.bf16.msra.mxu0 %v5108_v37  ;;  %v4983_v37 = vcombine.high %v154_v26, %v158_v27  ;;  %v230_v23 = vld [vmem:[#allocation7 + $0x3b0] sm:$0xff] }
  0x9c   :  { %1435 = vmatprep.subr.bf16.mxu0 %v5101_v41  ;;  %v4982_v41 = vcombine.low %v154_v26, %v158_v27  ;;  %v163_v26 = vld [vmem:[#allocation7 + $0x198] sm:$0xff] }
  0x9d   :  { %1409 = vmatpush2.bf16.msra.mxu1 %v5044_v40  ;;  %v5111_v40 = vcombine.high %v282_v30, %v286_v31  ;;  %v167_v27 = vld [vmem:[#allocation7 + $0x1b8] sm:$0xff] }
  0x9e   :  { %1410 = vmatprep.subr.bf16.mxu1 %v5037_v44  ;;  %v5110_v44 = vcombine.low %v282_v30, %v286_v31  ;;  %v218_v30 = vld [vmem:[#allocation7 + $0x350] sm:$0xff] }
  0x9f   :  { %1436 = vmatpush1.bf16.msra.mxu0 %v5100_v45  ;;  %v4975_v45 = vcombine.high %v146_v34, %v150_v35  ;;  %v222_v31 = vld [vmem:[#allocation7 + $0x370] sm:$0xff] }
  0xa0   :  { %1437 = vmatprep.subr.bf16.mxu0 %v5093_v49  ;;  %v4974_v49 = vcombine.low %v146_v34, %v150_v35  ;;  %v155_v34 = vld [vmem:[#allocation7 + $0x158] sm:$0xff] }
  0xa1   :  { %1411 = vmatpush2.bf16.msra.mxu1 %v5036_v48  ;;  %v270_v48 = vld [vmem:[#allocation7 + $0x4f0] sm:$0xff]  ;;  %v159_v35 = vld [vmem:[#allocation7 + $0x178] sm:$0xff] }
  0xa2   :  { %1412 = vmatprep.subr.bf16.mxu1 %v5029_v52  ;;  %v5102_v52 = vcombine.low %v274_v38, %v278_v39  ;;  %v210_v38 = vld [vmem:[#allocation7 + $0x310] sm:$0xff] }
  0xa3   :  { %1438 = vmatpush1.bf16.msra.mxu0 %v5092_v53  ;;  %v4967_v53 = vcombine.high %v138_v42, %v142_v43  ;;  %v214_v39 = vld [vmem:[#allocation7 + $0x330] sm:$0xff] }
  0xa4   :  { %1439 = vmatprep.subr.bf16.mxu0 %v5085_v57  ;;  %v4966_v57 = vcombine.low %v138_v42, %v142_v43  ;;  %v147_v42 = vld [vmem:[#allocation7 + $0x118] sm:$0xff] }
  0xa5   :  { %1413 = vmatpush2.bf16.msra.mxu1 %v5028_v56  ;;  %v5095_v56 = vcombine.high %v266_v46, %v270_v48  ;;  %v151_v43 = vld [vmem:[#allocation7 + $0x138] sm:$0xff] }
  0xa6   :  { %1414 = vmatprep.subr.bf16.mxu1 %v5021_v61  ;;  %v5094_v61 = vcombine.low %v266_v46, %v270_v48  ;;  %v202_v46 = vld [vmem:[#allocation7 + $0x2d0] sm:$0xff]  ;;  %v4984_v48 = vcombine.low %v155_v34, %v159_v35 }
  0xa7   :  { %1440 = vmatpush1.bf16.msra.mxu0 %v5084_v62  ;;  %v4959_v62 = vcombine.high %v130_v50, %v134_v51 }
  0xa8   :  { %1441 = vmatprep.subr.bf16.mxu0 %v5077_v3  ;;  %v4958_v3 = vcombine.low %v130_v50, %v134_v51  ;;  %v139_v50 = vld [vmem:[#allocation7 + $0xd8] sm:$0xff] }
  0xa9   :  { %1415 = vmatpush2.bf16.msra.mxu1 %v5020_v2  ;;  %v5087_v2 = vcombine.high %v258_v54, %v262_v55  ;;  %v143_v51 = vld [vmem:[#allocation7 + $0xf8] sm:$0xff] }
  0xaa   :  { %1416 = vmatprep.subr.bf16.mxu1 %v5013_v6  ;;  %v5086_v6 = vcombine.low %v258_v54, %v262_v55  ;;  %v194_v54 = vld [vmem:[#allocation7 + $0x290] sm:$0xff] }
  0xab   :  { %1442 = vmatpush1.bf16.msra.mxu0 %v5076_v7  ;;  %v4951_v7 = vcombine.high %v122_v59, %v126_v60  ;;  %v198_v55 = vld [vmem:[#allocation7 + $0x2b0] sm:$0xff] }
  0xac   :  { %1443 = vmatprep.subr.bf16.mxu0 %v5069_v11  ;;  %v4950_v11 = vcombine.low %v122_v59, %v126_v60  ;;  %v135_v59 = vld [vmem:[#allocation7 + $0xb8] sm:$0xff]  ;;  %v4969_v60 = vcombine.high %v139_v50, %v143_v51 }
  0xad   :  { %1417 = vmatpush2.bf16.msra.mxu1 %v5012_v10  ;;  %v5079_v10 = vcombine.high %v250_v63, %v254_v1 }
  0xae   :  { %1418 = vmatprep.subr.bf16.mxu1 %v5005_v14  ;;  %v5078_v14 = vcombine.low %v250_v63, %v254_v1  ;;  %v190_v63 = vld [vmem:[#allocation7 + $0x270] sm:$0xff]  ;;  %v4968_v1 = vcombine.low %v139_v50, %v143_v51 }
  0xaf   :  { %1444 = vmatpush1.bf16.msra.mxu0 %v5068_v16  ;;  %v4943_v16 = vcombine.high %v114_v4, %v118_v5 }
  0xb0   :  { %1470 = vmatprep.subr.bf16.mxu0 %v4999_v21  ;;  %v4942_v21 = vcombine.low %v114_v4, %v118_v5  ;;  %v127_v4 = vld [vmem:[#allocation7 + $0x78] sm:$0xff] }
  0xb1   :  { %1419 = vmatpush2.bf16.msra.mxu1 %v5004_v20  ;;  %v5071_v20 = vcombine.high %v242_v8, %v246_v9 }
  0xb2   :  { %1511 = vmatprep.subr.bf16.mxu1 %v5127_v24  ;;  %1462 = vmatmul.mubr.bf16.vlgmr.msra.gmra.mxu0 %v6174_v15  ;;  %v5070_v24 = vcombine.low %v242_v8, %v246_v9 }
  0xb3   :  { %1471 = vmatpush1.bf16.msra.mxu0 %v4998_v25  ;;  %1502 = vmatprep.mubr.bf16.mxu0 %v6171_v58  ;;  %v5063_v25 = vcombine.high %v234_v12, %v238_v13 }
  0xb4   :  { %1421 = vmatmul.mubr.bf16.vlgmr.msra.gmra.mxu1 %v6178_v18  ;;  %1472 = vmatprep.subr.bf16.mxu0 %v4991_v29  ;;  %v5062_v29 = vcombine.low %v234_v12, %v238_v13  ;;  %v115_v12 = vld [vmem:[#allocation7 + $0x18] sm:$0xff] }
  0xb5   :  { %1512 = vmatpush1.bf16.msra.mxu1 %v5126_v28  ;;  %1543 = vmatprep.mubr.bf16.mxu1 %v6109_v0  ;;  %v5001_v28 = vcombine.high %v171_v17, %v175_v19  ;;  %v119_v13 = vld [vmem:[#allocation7 + $0x38] sm:$0xff] }
  0xb6   :  { %1513 = vmatprep.subr.bf16.mxu1 %v5119_v32  ;;  %v5000_v32 = vcombine.low %v171_v17, %v175_v19  ;;  %v4945_v19 = vcombine.high %v115_v12, %v119_v13 }
  0xb7   :  { %1473 = vmatpush1.bf16.msra.mxu0 %v4990_v33  ;;  %v5055_v33 = vcombine.high %v226_v22, %v230_v23 }
  0xb8   :  { %1474 = vmatprep.subr.bf16.mxu0 %v4983_v37  ;;  %v5054_v37 = vcombine.low %v226_v22, %v230_v23  ;;  %v235_v22 = vld [vmem:[#allocation7 + $0x3d8] sm:$0xff] }
  0xb9   :  { %1514 = vmatpush1.bf16.msra.mxu1 %v5118_v36  ;;  %v4993_v36 = vcombine.high %v163_v26, %v167_v27  ;;  %v239_v23 = vld [vmem:[#allocation7 + $0x3f8] sm:$0xff] }
  0xba   :  { %1515 = vmatprep.subr.bf16.mxu1 %v5111_v40  ;;  %v4992_v40 = vcombine.low %v163_v26, %v167_v27  ;;  %v5065_v27 = vcombine.high %v235_v22, %v239_v23 }
  0xbb   :  { %1475 = vmatpush1.bf16.msra.mxu0 %v4982_v41  ;;  %v5047_v41 = vcombine.high %v218_v30, %v222_v31 }
  0xbc   :  { %1476 = vmatprep.subr.bf16.mxu0 %v4975_v45  ;;  %v5046_v45 = vcombine.low %v218_v30, %v222_v31  ;;  %v227_v30 = vld [vmem:[#allocation7 + $0x398] sm:$0xff] }
  0xbd   :  { %1516 = vmatpush1.bf16.msra.mxu1 %v5110_v44  ;;  %v4985_v44 = vcombine.high %v155_v34, %v159_v35  ;;  %v231_v31 = vld [vmem:[#allocation7 + $0x3b8] sm:$0xff] }
  0xbe   :  { %1517 = vmatprep.subr.bf16.mxu1 %v5103_v47  ;;  %v206_v47 = vld [vmem:[#allocation7 + $0x2f0] sm:$0xff]  ;;  %v5057_v35 = vcombine.high %v227_v30, %v231_v31 }
  0xbf   :  { %1477 = vmatpush1.bf16.msra.mxu0 %v4974_v49  ;;  %v5039_v49 = vcombine.high %v210_v38, %v214_v39 }
  0xc0   :  { %1478 = vmatprep.subr.bf16.mxu0 %v4967_v53  ;;  %v5038_v53 = vcombine.low %v210_v38, %v214_v39  ;;  %v219_v38 = vld [vmem:[#allocation7 + $0x358] sm:$0xff] }
  0xc1   :  { %1518 = vmatpush1.bf16.msra.mxu1 %v5102_v52  ;;  %v4977_v52 = vcombine.high %v147_v42, %v151_v43  ;;  %v223_v39 = vld [vmem:[#allocation7 + $0x378] sm:$0xff] }
  0xc2   :  { %1519 = vmatprep.subr.bf16.mxu1 %v5095_v56  ;;  %v4976_v56 = vcombine.low %v147_v42, %v151_v43  ;;  %v5049_v43 = vcombine.high %v219_v38, %v223_v39 }
  0xc3   :  { %1479 = vmatpush1.bf16.msra.mxu0 %v4966_v57  ;;  %v131_v57 = vld [vmem:[#allocation7 + $0x98] sm:$0xff] }
  0xc4   :  { %1480 = vmatprep.subr.bf16.mxu0 %v4959_v62  ;;  %v186_v62 = vld [vmem:[#allocation7 + $0x250] sm:$0xff]  ;;  %v4961_v5 = vcombine.high %v131_v57, %v135_v59  ;;  %v4960_v8 = vcombine.low %v131_v57, %v135_v59 }
  0xc5   :  { %1520 = vmatpush1.bf16.msra.mxu1 %v5094_v61  ;;  %v5030_v61 = vcombine.low %v202_v46, %v206_v47  ;;  %v5015_v9 = vcombine.high %v186_v62, %v190_v63 }
  0xc6   :  { %1521 = vmatprep.subr.bf16.mxu1 %v5087_v2  ;;  %v5023_v2 = vcombine.high %v194_v54, %v198_v55 }
  0xc7   :  { %1481 = vmatpush1.bf16.msra.mxu0 %v4958_v3  ;;  %v123_v3 = vld [vmem:[#allocation7 + $0x58] sm:$0xff] }
  0xc8   :  { %1482 = vmatprep.subr.bf16.mxu0 %v4951_v7  ;;  %v178_v7 = vld [vmem:[#allocation7 + $0x210] sm:$0xff] }
  0xc9   :  { %1522 = vmatpush1.bf16.msra.mxu1 %v5086_v6  ;;  %v5022_v6 = vcombine.low %v194_v54, %v198_v55  ;;  %v203_v54 = vld [vmem:[#allocation7 + $0x2d8] sm:$0xff] }
  0xca   :  { %1523 = vmatprep.subr.bf16.mxu1 %v5079_v10  ;;  %v4953_v10 = vcombine.high %v123_v3, %v127_v4  ;;  %v207_v55 = vld [vmem:[#allocation7 + $0x2f8] sm:$0xff] }
  0xcb   :  { %1483 = vmatpush1.bf16.msra.mxu0 %v4950_v11  ;;  %v182_v11 = vld [vmem:[#allocation7 + $0x230] sm:$0xff]  ;;  %v5033_v59 = vcombine.high %v203_v54, %v207_v55 }
  0xcc   :  { %1484 = vmatprep.subr.bf16.mxu0 %v4943_v16  ;;  %v4952_v16 = vcombine.low %v123_v3, %v127_v4  ;;  %v5007_v17 = vcombine.high %v178_v7, %v182_v11 }
  0xcd   :  { %1524 = vmatpush1.bf16.msra.mxu1 %v5078_v14  ;;  %v5014_v14 = vcombine.low %v186_v62, %v190_v63  ;;  %v195_v62 = vld [vmem:[#allocation7 + $0x298] sm:$0xff] }
  0xce   :  { %1525 = vmatprep.subr.bf16.mxu1 %v5071_v20  ;;  %v299_v20 = vld [vmem:[#allocation7 + $0x5d8] sm:$0xff] }
  0xcf   :  { %1485 = vmatpush1.bf16.msra.mxu0 %v4942_v21  ;;  %v303_v21 = vld [vmem:[#allocation7 + $0x5f8] sm:$0xff] }
  0xd0   :  { %1486 = vmatprep.subr.bf16.mxu0 %v5063_v25  ;;  %v4944_v25 = vcombine.low %v115_v12, %v119_v13  ;;  %v5129_v26 = vcombine.high %v299_v20, %v303_v21  ;;  %v199_v63 = vld [vmem:[#allocation7 + $0x2b8] sm:$0xff] }
  0xd1   :  { %1526 = vmatpush1.bf16.msra.mxu1 %v5070_v24  ;;  %v5006_v24 = vcombine.low %v178_v7, %v182_v11  ;;  %v5025_v4 = vcombine.high %v195_v62, %v199_v63  ;;  %v187_v7 = vld [vmem:[#allocation7 + $0x258] sm:$0xff] }
  0xd2   :  { %1552 = vmatprep.subr.bf16.mxu1 %v5001_v28  ;;  %v291_v28 = vld [vmem:[#allocation7 + $0x598] sm:$0xff] }
  0xd3   :  { %1487 = vmatpush2.bf16.msra.mxu0 %v5062_v29  ;;  %v295_v29 = vld [vmem:[#allocation7 + $0x5b8] sm:$0xff] }
  0xd4   :  { %1544 = vmatmul.mubr.bf16.vlgmr.msra.gmra.mxu1 %v6174_v15  ;;  %1488 = vmatprep.subr.bf16.mxu0 %v5055_v33  ;;  %v5064_v33 = vcombine.low %v235_v22, %v239_v23  ;;  %v5121_v34 = vcombine.high %v291_v28, %v295_v29  ;;  %v243_v13 = vld [vmem:[#allocation7 + $0x418] sm:$0xff] }
  0xd5   :  { %1553 = vmatpush1.bf16.msra.mxu1 %v5000_v32  ;;  %1584 = vmatprep.mubr.bf16.mxu1 %v6171_v58  ;;  %v5031_v58 = vcombine.high %v202_v46, %v206_v47  ;;  %v5128_v32 = vcombine.low %v299_v20, %v303_v21  ;;  %v211_v46 = vld [vmem:[#allocation7 + $0x318] sm:$0xff] }
  0xd6   :  { %1554 = vmatprep.subr.bf16.mxu1 %v4993_v36  ;;  %v283_v36 = vld [vmem:[#allocation7 + $0x558] sm:$0xff] }
  0xd7   :  { %1489 = vmatpush2.bf16.msra.mxu0 %v5054_v37  ;;  %v287_v37 = vld [vmem:[#allocation7 + $0x578] sm:$0xff] }
  0xd8   :  { %1490 = vmatprep.subr.bf16.mxu0 %v5047_v41  ;;  %v5056_v41 = vcombine.low %v227_v30, %v231_v31  ;;  %v5113_v42 = vcombine.high %v283_v36, %v287_v37  ;;  %v215_v47 = vld [vmem:[#allocation7 + $0x338] sm:$0xff]  ;;  %v5625_v30 = vld [vmem:[#allocation10 + $0x78] ss:$12 sps:$4 sm:$0xff]  }
  0xd9   :  { %1555 = vmatpush1.bf16.msra.mxu1 %v4992_v40  ;;  %v5120_v40 = vcombine.low %v291_v28, %v295_v29  ;;  %v5041_v51 = vcombine.high %v211_v46, %v215_v47  ;;  %v5622_v28 = vld [vmem:[#allocation10 + $0x90] ss:$12 sps:$4 sm:$0xff]  }
  0xda   :  { %1556 = vmatprep.subr.bf16.mxu1 %v4985_v44  ;;  %v275_v44 = vld [vmem:[#allocation7 + $0x518] sm:$0xff]  ;;  %v5630_v31 = vld [vmem:[#allocation10 + $0x64] ss:$12 sps:$4 sm:$0xff]  }
  0xdb   :  { %1491 = vmatpush2.bf16.msra.mxu0 %v5046_v45  ;;  %v279_v45 = vld [vmem:[#allocation7 + $0x538] sm:$0xff] }
  0xdc   :  { %1492 = vmatprep.subr.bf16.mxu0 %v5039_v49  ;;  %v5048_v49 = vcombine.low %v219_v38, %v223_v39  ;;  %v5105_v50 = vcombine.high %v275_v44, %v279_v45  ;;  %v5627_v29 = vld [vmem:[#allocation10 + $0x7c] ss:$12 sps:$4 sm:$0xff]   ;;  %v5637_v39 = vld [vmem:[#allocation10 + $0x18] ss:$12 sps:$4 sm:$0xff]  }
  0xdd   :  { %1557 = vmatpush1.bf16.msra.mxu1 %v4984_v48  ;;  %v5112_v48 = vcombine.low %v283_v36, %v287_v37  ;;  %v5639_v37 = vld [vmem:[#allocation10 + $0x1c] ss:$12 sps:$4 sm:$0xff]  }
  0xde   :  { %1558 = vmatprep.subr.bf16.mxu1 %v4977_v52  ;;  %v267_v52 = vld [vmem:[#allocation7 + $0x4d8] sm:$0xff] }
  0xdf   :  { %1493 = vmatpush2.bf16.msra.mxu0 %v5038_v53  ;;  %v271_v53 = vld [vmem:[#allocation7 + $0x4f8] sm:$0xff] }
  0xe0   :  { %1494 = vmatprep.subr.bf16.mxu0 %v5031_v58  ;;  %v5040_v58 = vcombine.low %v211_v46, %v215_v47  ;;  %v5097_v57 = vcombine.high %v267_v52, %v271_v53  ;;  %v5646_v46 = vld [vmem:[#allocation10 + $0x228] ss:$12 sps:$4 sm:$0xff]  }
  0xe1   :  { %1559 = vmatpush1.bf16.msra.mxu1 %v4976_v56  ;;  %v5104_v56 = vcombine.low %v275_v44, %v279_v45  ;;  %v5648_v44 = vld [vmem:[#allocation10 + $0x22c] ss:$12 sps:$4 sm:$0xff]   ;;  %v5643_v45 = vld [vmem:[#allocation10 + $0x168] ss:$12 sps:$4 sm:$0xff]  }
  0xe2   :  { %1560 = vmatprep.subr.bf16.mxu1 %v4969_v60  ;;  %v259_v60 = vld [vmem:[#allocation7 + $0x498] sm:$0xff]  ;;  %v5651_v47 = vld [vmem:[#allocation10 + $0x154] ss:$12 sps:$4 sm:$0xff]  }
  0xe3   :  { %1495 = vmatpush2.bf16.msra.mxu0 %v5030_v61  ;;  %v263_v61 = vld [vmem:[#allocation7 + $0x4b8] sm:$0xff] }
  0xe4   :  { %1496 = vmatprep.subr.bf16.mxu0 %v5023_v2  ;;  %v5032_v2 = vcombine.low %v203_v54, %v207_v55  ;;  %v5089_v3 = vcombine.high %v259_v60, %v263_v61  ;;  %v5655_v55 = vld [vmem:[#allocation10 + $0x138] ss:$12 sps:$4 sm:$0xff]  }
  0xe5   :  { %1561 = vmatpush1.bf16.msra.mxu1 %v4968_v1  ;;  %v5096_v1 = vcombine.low %v267_v52, %v271_v53  ;;  %v5657_v52 = vld [vmem:[#allocation10 + $0x13c] ss:$12 sps:$4 sm:$0xff]  }
  0xe6   :  { %1562 = vmatprep.subr.bf16.mxu1 %v4961_v5  ;;  %v251_v5 = vld [vmem:[#allocation7 + $0x458] sm:$0xff] }
  0xe7   :  { %1497 = vmatpush2.bf16.msra.mxu0 %v5022_v6  ;;  %v255_v6 = vld [vmem:[#allocation7 + $0x478] sm:$0xff] }
  0xe8   :  { %1498 = vmatprep.subr.bf16.mxu0 %v5015_v9  ;;  %v5088_v9 = vcombine.low %v259_v60, %v263_v61  ;;  %v5081_v11 = vcombine.high %v251_v5, %v255_v6  ;;  %v5660_v53 = vld [vmem:[#allocation10 + $0x1fc] ss:$12 sps:$4 sm:$0xff]   ;;  %v5661_v60 = vld [vmem:[#allocation10 + $0x120] ss:$12 sps:$4 sm:$0xff]  }
  0xe9   :  { %1563 = vmatpush1.bf16.msra.mxu1 %v4960_v8  ;;  %v191_v8 = vld [vmem:[#allocation7 + $0x278] sm:$0xff] }
  0xea   :  { %1564 = vmatprep.subr.bf16.mxu1 %v4953_v10  ;;  %v5024_v10 = vcombine.low %v195_v62, %v199_v63  ;;  %v5017_v12 = vcombine.high %v187_v7, %v191_v8  ;;  %v5016_v20 = vcombine.low %v187_v7, %v191_v8  ;;  %v5664_v61 = vld [vmem:[#allocation10 + $0x1e0] ss:$12 sps:$4 sm:$0xff]   ;;  %v6201_v62 = vld [vmem:[#allocation8] sm:$0xff] }
  0xeb   :  { %1499 = vmatpush2.bf16.msra.mxu0 %v5014_v14  ;;  %v247_v14 = vld [vmem:[#allocation7 + $0x438] sm:$0xff]  ;;  %v5675_v8 = vld [vmem:[#allocation10 + $0xf4] ss:$12 sps:$4 sm:$0xff]  }
  0xec   :  { %1500 = vmatprep.subr.bf16.mxu0 %v5007_v17  ;;  %v183_v17 = vld [vmem:[#allocation7 + $0x238] sm:$0xff]  ;;  %v5073_v21 = vcombine.high %v243_v13, %v247_v14  ;;  %v5072_v23 = vcombine.low %v243_v13, %v247_v14 }
  0xed   :  { %1565 = vmatpush1.bf16.msra.mxu1 %v4952_v16  ;;  %v179_v16 = vld [vmem:[#allocation7 + $0x218] sm:$0xff] }
  0xee   :  { %1566 = vmatprep.subr.bf16.mxu1 %v4945_v19  ;;  %v5080_v19 = vcombine.low %v251_v5, %v255_v6  ;;  %v5009_v22 = vcombine.high %v179_v16, %v183_v17 }
  0xef   :  { %1501 = vmatpush2.bf16.msra.mxu0 %v5006_v24  ;;  %v5008_v24 = vcombine.low %v179_v16, %v183_v17 }
  0xf0   :  { %1593 = vmatprep.subr.bf16.mxu0 %v5129_v26  ;;  %v5621_v26 = vld [vmem:[#allocation10 + $0xac] ss:$12 sps:$4 sm:$0xff]  }
  0xf1   :  { %1567 = vmatpush1.bf16.msra.mxu1 %v4944_v25  ;;  %v5619_v25 = vld [vmem:[#allocation10 + $0xa8] ss:$12 sps:$4 sm:$0xff]  }
  0xf2   :  { %1568 = vmatprep.subr.bf16.mxu1 %v5065_v27  ;;  %1503 = vmatmul.mubr.bf16.vlgmr.msra.gmra.mxu0 %v6178_v18  ;;  %v5624_v27 = vld [vmem:[#allocation10 + $0x94] ss:$12 sps:$4 sm:$0xff]  }
  0xf3   :  { %1594 = vmatpush1.bf16.msra.mxu0 %v5128_v32  ;;  %1625 = vmatprep.mubr.bf16.mxu0 %v6109_v0  ;;  %v5628_v32 = vld [vmem:[#allocation10 + $0x60] ss:$12 sps:$4 sm:$0xff]  }
  0xf4   :  { %1595 = vmatprep.subr.bf16.mxu0 %v5121_v34 }
  0xf5   :  { %1569 = vmatpush2.bf16.msra.mxu1 %v5064_v33  ;;  %v5633_v33 = vld [vmem:[#allocation10 + $0x4c] ss:$12 sps:$4 sm:$0xff]  }
  0xf6   :  { %1570 = vmatprep.subr.bf16.mxu1 %v5057_v35  ;;  %v5634_v35 = vld [vmem:[#allocation10 + $0x30] ss:$12 sps:$4 sm:$0xff]  }
  0xf7   :  { %1596 = vmatpush1.bf16.msra.mxu0 %v5120_v40 }
  0xf8   :  { %1597 = vmatprep.subr.bf16.mxu0 %v5113_v42  ;;  %v5640_v42 = vld [vmem:[#allocation10] ss:$12 sps:$4 sm:$0xff]  }
  0xf9   :  { %1571 = vmatpush2.bf16.msra.mxu1 %v5056_v41  ;;  %v5642_v41 = vld [vmem:[#allocation10 + $0x4] ss:$12 sps:$4 sm:$0xff]  }
  0xfa   :  { %1572 = vmatprep.subr.bf16.mxu1 %v5049_v43  ;;  %v5645_v43 = vld [vmem:[#allocation10 + $0x16c] ss:$12 sps:$4 sm:$0xff]  }
  0xfb   :  { %1598 = vmatpush1.bf16.msra.mxu0 %v5112_v48  ;;  %v5654_v48 = vld [vmem:[#allocation10 + $0x214] ss:$12 sps:$4 sm:$0xff]  }
  0xfc   :  { %1599 = vmatprep.subr.bf16.mxu0 %v5105_v50  ;;  %v5649_v50 = vld [vmem:[#allocation10 + $0x150] ss:$12 sps:$4 sm:$0xff]  }
  0xfd   :  { %1573 = vmatpush2.bf16.msra.mxu1 %v5048_v49  ;;  %v306_v49 = vlaneseq }
  0xfe   :  { %1574 = vmatprep.subr.bf16.mxu1 %v5041_v51  ;;  %v5652_v51 = vld [vmem:[#allocation10 + $0x210] ss:$12 sps:$4 sm:$0xff]  }
  0xff   :  { %1600 = vmatpush1.bf16.msra.mxu0 %v5104_v56  ;;  %v6196_v54 = vshrl.u32 %v306_v49, 7  ;;  %v5658_v56 = vld [vmem:[#allocation10 + $0x1f8] ss:$12 sps:$4 sm:$0xff]   ;;  %v5723_v49 = vld [vmem:[#allocation10 + $0x25c] ss:$12 sps:$4 sm:$0xff]  }
 0x100   :  { %1601 = vmatprep.subr.bf16.mxu0 %v5097_v57  ;;  %v5666_v57 = vld [vmem:[#allocation10 + $0x1e4] ss:$12 sps:$4 sm:$0xff]  }
 0x101   :  { %1575 = vmatpush2.bf16.msra.mxu1 %v5040_v58  ;;  %v5663_v58 = vld [vmem:[#allocation10 + $0x124] ss:$12 sps:$4 sm:$0xff]   ;;  %v6204_v63 = vsub.s32 1, %v6196_v54 }
 0x102   :  { %1576 = vmatprep.subr.bf16.mxu1 %v5033_v59  ;;  %v6199_v59 = vsub.s32 0, %v6196_v54 }
 0x103   :  { %1602 = vmatpush1.bf16.msra.mxu0 %v5096_v1  ;;  %v5667_v1 = vld [vmem:[#allocation10 + $0x108] ss:$12 sps:$4 sm:$0xff]   ;;  %v313_v6 = vrot.slane %v6201_v62, %v6204_v63 }
 0x104   :  { %1603 = vmatprep.subr.bf16.mxu0 %v5089_v3  ;;  %v5670_v3 = vld [vmem:[#allocation10 + $0x1c8] ss:$12 sps:$4 sm:$0xff]   ;;  %v309_v5 = vrot.slane %v6201_v62, %v6199_v59 }
 0x105   :  { %1577 = vmatpush2.bf16.msra.mxu1 %v5032_v2  ;;  %v5669_v2 = vld [vmem:[#allocation10 + $0x10c] ss:$12 sps:$4 sm:$0xff]  }
 0x106   :  { %1578 = vmatprep.subr.bf16.mxu1 %v5025_v4  ;;  %v5672_v4 = vld [vmem:[#allocation10 + $0x1cc] ss:$12 sps:$4 sm:$0xff]  }
 0x107   :  { %1604 = vmatpush1.bf16.msra.mxu0 %v5088_v9  ;;  %v5678_v9 = vld [vmem:[#allocation10 + $0x1b4] ss:$12 sps:$4 sm:$0xff]  }
 0x108   :  { %1605 = vmatprep.subr.bf16.mxu0 %v5081_v11  ;;  %v5673_v11 = vld [vmem:[#allocation10 + $0xf0] ss:$12 sps:$4 sm:$0xff]  }
 0x109   :  { %1579 = vmatpush2.bf16.msra.mxu1 %v5024_v10 }
 0x10a   :  { %1580 = vmatprep.subr.bf16.mxu1 %v5017_v12  ;;  %v5676_v12 = vld [vmem:[#allocation10 + $0x1b0] ss:$12 sps:$4 sm:$0xff]  }
 0x10b   :  { %1606 = vmatpush1.bf16.msra.mxu0 %v5080_v19  ;;  %v5681_v19 = vld [vmem:[#allocation10 + $0xdc] ss:$12 sps:$4 sm:$0xff]  }
 0x10c   :  { %1607 = vmatprep.subr.bf16.mxu0 %v5073_v21 }
 0x10d   :  { %1581 = vmatpush2.bf16.msra.mxu1 %v5016_v20  ;;  %v5684_v20 = vld [vmem:[#allocation10 + $0x19c] ss:$12 sps:$4 sm:$0xff]  }
 0x10e   :  { %1582 = vmatprep.subr.bf16.mxu1 %v5009_v22  ;;  %v5679_v22 = vld [vmem:[#allocation10 + $0xd8] ss:$12 sps:$4 sm:$0xff]  }
 0x10f   :  { %1608 = vmatpush1.bf16.msra.mxu0 %v5072_v23 }
 0x110   :  { %2339 = vmatprep.subr.bf16.mxu0 %v5621_v26  ;;  %v5690_v26 = vld [vmem:[#allocation10 + $0x184] ss:$12 sps:$4 sm:$0xff]  }
 0x111   :  { %1583 = vmatpush2.bf16.msra.mxu1 %v5008_v24  ;;  %v5682_v24 = vld [vmem:[#allocation10 + $0x198] ss:$12 sps:$4 sm:$0xff]  }
 0x112   :  { %1626 = vmatmul.mubr.bf16.vlgmr.msra.gmra.mxu0 %v6174_v15  ;;  %v5631_v15 = vld [vmem:[#allocation10 + $0x48] ss:$12 sps:$4 sm:$0xff]   ;;  %2380 = vmatprep.subr.bf16.mxu1 %v5648_v44  ;;  %v5716_v44 = vld [vmem:[#allocation10 + $0x270] ss:$12 sps:$4 sm:$0xff]  }
 0x113   :  { %2340 = vmatpush1.bf16.msra.mxu0 %v5619_v25  ;;  %v5687_v25 = vld [vmem:[#allocation10 + $0xc4] ss:$12 sps:$4 sm:$0xff]  }
 0x114   :  { %1585 = vmatmul.mubr.bf16.vlgmr.msra.gmra.mxu1 %v6178_v18  ;;  %2341 = vmatprep.subr.bf16.mxu0 %v5624_v27  ;;  %v5636_v18 = vld [vmem:[#allocation10 + $0x34] ss:$12 sps:$4 sm:$0xff]  }
 0x115   :  { %2381 = vmatpush1.bf16.msra.mxu1 %v5646_v46  ;;  %v5685_v27 = vld [vmem:[#allocation10 + $0xc0] ss:$12 sps:$4 sm:$0xff]  }
 0x116   :  { %2382 = vmatprep.subr.bf16.mxu1 %v5654_v48 }
 0x117   :  { %2342 = vmatpush1.bf16.msra.mxu0 %v5622_v28  ;;  %v5688_v28 = vld [vmem:[#allocation10 + $0x180] ss:$12 sps:$4 sm:$0xff]  }
 0x118   :  { %2343 = vmatprep.subr.bf16.mxu0 %v5627_v29  ;;  %v5693_v29 = vld [vmem:[#allocation10 + $0x2ec] ss:$12 sps:$4 sm:$0xff]  }
 0x119   :  { %2383 = vmatpush1.bf16.msra.mxu1 %v5652_v51 }
 0x11a   :  { %2384 = vmatprep.subr.bf16.mxu1 %v5660_v53  ;;  %v5721_v53 = vld [vmem:[#allocation10 + $0x258] ss:$12 sps:$4 sm:$0xff]  }
 0x11b   :  { %2344 = vmatpush1.bf16.msra.mxu0 %v5625_v30  ;;  %v5694_v30 = vld [vmem:[#allocation10 + $0x170] ss:$12 sps:$4 sm:$0xff]  }
 0x11c   :  { %2345 = vmatprep.subr.bf16.mxu0 %v5630_v31  ;;  %v5691_v31 = vld [vmem:[#allocation10 + $0x2e8] ss:$12 sps:$4 sm:$0xff]  }
 0x11d   :  { %2385 = vmatpush1.bf16.msra.mxu1 %v5658_v56 }
 0x11e   :  { %2386 = vmatprep.subr.bf16.mxu1 %v5666_v57 }
 0x11f   :  { %2346 = vmatpush1.bf16.msra.mxu0 %v5628_v32  ;;  %v5698_v32 = vld [vmem:[#allocation10 + $0x2d4] ss:$12 sps:$4 sm:$0xff]  }
 0x120   :  { %2347 = vmatprep.subr.bf16.mxu0 %v5633_v33  ;;  %v5696_v33 = vld [vmem:[#allocation10 + $0x2d0] ss:$12 sps:$4 sm:$0xff]  }
 0x121   :  { %2387 = vmatpush1.bf16.msra.mxu1 %v5664_v61  ;;  %v5726_v61 = vld [vmem:[#allocation10 + $0x240] ss:$12 sps:$4 sm:$0xff]  }
 0x122   :  { %2388 = vmatprep.subr.bf16.mxu1 %v5672_v4 }
 0x123   :  { %2348 = vmatpush1.bf16.msra.mxu0 %v5631_v15  ;;  %v5703_v15 = vld [vmem:[#allocation10 + $0x2bc] ss:$12 sps:$4 sm:$0xff]  }
 0x124   :  { %2349 = vmatprep.subr.bf16.mxu0 %v5636_v18  ;;  %v5701_v18 = vld [vmem:[#allocation10 + $0x2b8] ss:$12 sps:$4 sm:$0xff]  }
 0x125   :  { %2389 = vmatpush1.bf16.msra.mxu1 %v5670_v3 }
 0x126   :  { %2390 = vmatprep.subr.bf16.mxu1 %v5678_v9 }
 0x127   :  { %2350 = vmatpush1.bf16.msra.mxu0 %v5634_v35  ;;  %v5706_v35 = vld [vmem:[#allocation10 + $0x2a0] ss:$12 sps:$4 sm:$0xff]  }
 0x128   :  { %2351 = vmatprep.subr.bf16.mxu0 %v5639_v37  ;;  %v320_v37 = vsub.s32 3, %v6196_v54 }
 0x129   :  { %2391 = vmatpush1.bf16.msra.mxu1 %v5676_v12 }
 0x12a   :  { %2392 = vmatprep.subr.bf16.mxu1 %v5684_v20 }
 0x12b   :  { %2352 = vmatpush1.bf16.msra.mxu0 %v5637_v39  ;;  %v5713_v39 = vld [vmem:[#allocation10 + $0x28c] ss:$12 sps:$4 sm:$0xff]  }
 0x12c   :  { %2353 = vmatprep.subr.bf16.mxu0 %v5642_v41  ;;  %v5718_v41 = vld [vmem:[#allocation10 + $0x274] ss:$12 sps:$4 sm:$0xff]  }
 0x12d   :  { %2393 = vmatpush1.bf16.msra.mxu1 %v5682_v24 }
 0x12e   :  { %2394 = vmatprep.subr.bf16.mxu1 %v5690_v26 }
 0x12f   :  { %2354 = vmatpush1.bf16.msra.mxu0 %v5640_v42 }
 0x130   :  { %2355 = vmatprep.subr.bf16.mxu0 %v5645_v43  ;;  %v321_v43 = vrot.slane %v6201_v62, %v320_v37 }
 0x131   :  { %2395 = vmatpush1.bf16.msra.mxu1 %v5688_v28 }
 0x132   :  { %2396 = vmatprep.subr.bf16.mxu1 %v5693_v29 }
 0x133   :  { %2356 = vmatpush2.bf16.msra.mxu0 %v5643_v45 }
 0x134   :  { %v6192_v34 = vpop.f32.mrf.mxu1  ;;  %2357 = vmatprep.subr.bf16.mxu0 %v5651_v47 }
 0x135   :  { %2397 = vmatpush2.bf16.msra.mxu1 %v5691_v31 }
 0x136   :  { %v6194_v36 = vpop.f32.mrf.mxu1  ;;  %2398 = vmatprep.subr.bf16.mxu1 %v5698_v32  ;;  %v332_v32 = vsub.s32 6, %v6196_v54 }
 0x137   :  { %2358 = vmatpush2.bf16.msra.mxu0 %v5649_v50 }
 0x138   :  { %v1385_v38 = vpop.f32.mrf.mxu1  ;;  %2359 = vmatprep.subr.bf16.mxu0 %v5657_v52 }
 0x139   :  { %2399 = vmatpush2.bf16.msra.mxu1 %v5696_v33  ;;  %v5711_v38 = vld [vmem:[#allocation10 + $0x288] ss:$12 sps:$4 sm:$0xff]   ;;  %v336_v33 = vsub.s32 7, %v6196_v54 }
 0x13a   :  { %v1386_v40 = vpop.f32.mrf.mxu1  ;;  %2400 = vmatprep.subr.bf16.mxu1 %v5703_v15  ;;  %v333_v15 = vrot.slane %v6201_v62, %v332_v32 }
 0x13b   :  { %2360 = vmatpush2.bf16.msra.mxu0 %v5655_v55 }
 0x13c   :  { %2361 = vmatprep.subr.bf16.mxu0 %v5663_v58 }
 0x13d   :  { %2401 = vmatpush2.bf16.msra.mxu1 %v5701_v18 }
 0x13f   :  { %2362 = vmatpush2.bf16.msra.mxu0 %v5661_v60  ;;  %v5728_v60 = vld [vmem:[#allocation10 + $0x244] ss:$12 sps:$4 sm:$0xff]  }
 0x140   :  { %2363 = vmatprep.subr.bf16.mxu0 %v5669_v2 }
 0x143   :  { %2364 = vmatpush2.bf16.msra.mxu0 %v5667_v1  ;;  %v5731_v1 = vld [vmem:[#allocation10 + $0x2f0] ss:$12 sps:$4 sm:$0xff]  }
 0x144   :  { %2365 = vmatprep.subr.bf16.mxu0 %v5675_v8 }
 0x147   :  { %2366 = vmatpush2.bf16.msra.mxu0 %v5673_v11 }
 0x148   :  { %2367 = vmatprep.subr.bf16.mxu0 %v5681_v19 }
 0x14b   :  { %2368 = vmatpush2.bf16.msra.mxu0 %v5679_v22 }
 0x14c   :  { %2369 = vmatprep.subr.bf16.mxu0 %v5687_v25 }
 0x14f   :  { %2370 = vmatpush2.bf16.msra.mxu0 %v5685_v27 }
 0x150   :  { %5514 = vmatprep.subr.bf16.mxu0 %v5694_v30 }
 0x152   :  { %v1340_v7 = vpop.f32.mrf.mxu0 }
 0x153   :  { %v1341_v10 = vadd.f32 %v1340_v7, %v309_v5  ;;  %v328_v7 = vsub.s32 5, %v6196_v54 }
 0x154   :  { %v1342_v13 = vpop.f32.mrf.mxu0 }
 0x155   :  { %v6211_v14 = vadd.f32 %v6192_v34, %v1341_v10  ;;  %v1343_v16 = vadd.f32 %v1342_v13, %v313_v6  ;;  %v5708_v34 = vld [vmem:[#allocation10 + $0x2a4] ss:$12 sps:$4 sm:$0xff]   ;;  %v324_v6 = vsub.s32 4, %v6196_v54  ;;  %v329_v9 = vrot.slane %v6201_v62, %v328_v7 }
 0x156   :  { %v1344_v17 = vpop.f32.mrf.mxu0  ;;  %2402 = vmatprep.subr.bf16.mxu1 %v5708_v34 }
 0x157   :  { %v6214_v21 = vadd.f32 %v6194_v36, %v1343_v16  ;;  %v6217_v36 = vsub.s32 2, %v6196_v54  ;;  %2403 = vmatpush2.bf16.msra.mxu1 %v5706_v35  ;;  %v325_v8 = vrot.slane %v6201_v62, %v324_v6  ;;  %v1638_v26 = vmul.f32 0.70710677, %v6211_v14 }
 0x158   :  { %v1345_v23 = vpop.f32.mrf.mxu0  ;;  %2404 = vmatprep.subr.bf16.mxu1 %v5713_v39 }
 0x159   :  { %v317_v40 = vrot.slane %v6201_v62, %v6217_v36  ;;  %v1639_v27 = vmul.f32 0.70710677, %v6214_v21 }
 0x15b   :  { %2405 = vmatpush2.bf16.msra.mxu1 %v5711_v38  ;;  %v337_v38 = vrot.slane %v6201_v62, %v336_v33 }
 0x15c   :  { %2406 = vmatprep.subr.bf16.mxu1 %v5718_v41 }
 0x15f   :  { %2407 = vmatpush2.bf16.msra.mxu1 %v5716_v44 }
 0x160   :  { %2408 = vmatprep.subr.bf16.mxu1 %v5723_v49  ;;  %v1635_v49 = vmul.f32 0.5, %v6214_v21  ;;  %v5699_v21 = vld [vmem:[#allocation10 + $0x158] ss:$12 sps:$4 sm:$0xff]  }
 0x163   :  { %2409 = vmatpush2.bf16.msra.mxu1 %v5721_v53 }
 0x164   :  { %2410 = vmatprep.subr.bf16.mxu1 %v5728_v60 }
 0x167   :  { %2411 = vmatpush2.bf16.msra.mxu1 %v5726_v61 }
 0x168   :  { %5536 = vmatprep.subr.bf16.mxu1 %v5731_v1 }
 0x172   :  { %v1463_v42 = vpop.f32.mrf.mxu0 }
 0x174   :  { %v1422_v45 = vpop.f32.mrf.mxu1  ;;  %v1465_v47 = vpop.f32.mrf.mxu0 }
 0x175   :  { %v1423_v46 = vadd.f32 %v1422_v45, %v317_v40  ;;  %v1634_v45 = vmul.f32 0.5, %v6211_v14 }
 0x176   :  { %v1424_v48 = vpop.f32.mrf.mxu1  ;;  %v1467_v52 = vpop.f32.mrf.mxu0 }
 0x177   :  { %v6225_v50 = vadd.f32 %v1463_v42, %v1423_v46  ;;  %v1425_v51 = vadd.f32 %v1424_v48, %v321_v43 }
 0x178   :  { %v1426_v55 = vpop.f32.mrf.mxu1  ;;  %v1468_v58 = vpop.f32.mrf.mxu0 }
 0x179   :  { %v6227_v56 = vadd.f32 %v1465_v47, %v1425_v51 }
 0x17a   :  { %v1427_v57 = vpop.f32.mrf.mxu1 }
 0x194   :  { %v1545_v2 = vpop.f32.mrf.mxu1 }
 0x196   :  { %v1547_v3 = vpop.f32.mrf.mxu1 }
 0x198   :  { %v1549_v4 = vpop.f32.mrf.mxu1 }
 0x19a   :  { %v1550_v5 = vpop.f32.mrf.mxu1 }
 0x1b2   :  { %v1504_v10 = vpop.f32.mrf.mxu0 }
 0x1b3   :  { %v1505_v11 = vadd.f32 %v1504_v10, %v325_v8  ;;  %v5695_v8 = vld [vmem:[#allocation10 + $0xb0] ss:$12 sps:$4 sm:$0xff]   ;;  %v1640_v10 = vmul.f32 0.70710677, %v6225_v50 }
 0x1b4   :  { %v1506_v12 = vpop.f32.mrf.mxu0 }
 0x1b5   :  { %v1546_v13 = vadd.f32 %v1545_v2, %v1505_v11  ;;  %v1507_v16 = vadd.f32 %v1506_v12, %v329_v9  ;;  %v5700_v11 = vld [vmem:[#allocation10 + $0x98] ss:$12 sps:$4 sm:$0xff]   ;;  %v1641_v12 = vmul.f32 0.70710677, %v6227_v56 }
 0x1b6   :  { %v1508_v17 = vpop.f32.mrf.mxu0 }
 0x1b7   :  { %v1654_v19 = vsub.f32 0.0, %v1546_v13  ;;  %v1548_v20 = vadd.f32 %v1547_v3, %v1507_v16  ;;  %v5704_v13 = vld [vmem:[#allocation10 + $0x140] ss:$12 sps:$4 sm:$0xff]   ;;  %v5709_v17 = vld [vmem:[#allocation10 + $0x128] ss:$12 sps:$4 sm:$0xff]  }
 0x1b8   :  { %v1509_v22 = vpop.f32.mrf.mxu0  ;;  %v5705_v16 = vld [vmem:[#allocation10 + $0x80] ss:$12 sps:$4 sm:$0xff]  }
 0x1b9   :  { %v1658_v23 = vmul.f32 1.442695, %v1654_v19  ;;  %v1655_v24 = vsub.f32 0.0, %v1548_v20  ;;  %v5710_v20 = vld [vmem:[#allocation10 + $0x68] ss:$12 sps:$4 sm:$0xff]  }
 0x1bb   :  { %5875 = vpow2.f32 %v1658_v23  ;;  %v1660_v25 = vmul.f32 1.442695, %v1655_v24  ;;  %v5714_v23 = vld [vmem:[#allocation10 + $0x110] ss:$12 sps:$4 sm:$0xff]  }
 0x1bd   :  { %5877 = vpow2.f32 %v1660_v25 }
 0x1be   :  { %5879 = verf.f32 %v1638_v26  ;;  %v5715_v26 = vld [vmem:[#allocation10 + $0x50] ss:$12 sps:$4 sm:$0xff]  }
 0x1bf   :  { %5881 = verf.f32 %v1639_v27  ;;  %v5719_v27 = vld [vmem:[#allocation10 + $0xf8] ss:$12 sps:$4 sm:$0xff]  }
 0x1c8   :  { %v5876_v28 = vpop.eup %5875 }
 0x1c9   :  { %v1666_v29 = vadd.f32 1.0, %v5876_v28  ;;  %v5720_v28 = vld [vmem:[#allocation10 + $0x38] ss:$12 sps:$4 sm:$0xff]  }
 0x1ca   :  { %v5878_v30 = vpop.eup %5877 }
 0x1cb   :  { %5883 = vrcp.f32 %v1666_v29  ;;  %v1667_v31 = vadd.f32 1.0, %v5878_v30  ;;  %v5880_v18 = vpop.eup %5879  ;;  %v5724_v30 = vld [vmem:[#allocation10 + $0xe0] ss:$12 sps:$4 sm:$0xff]  }
 0x1cc   :  { %v5882_v34 = vpop.eup %5881  ;;  %v1646_v40 = vadd.f32 1.0, %v5880_v18  ;;  %v5725_v18 = vld [vmem:[#allocation10 + $0x20] ss:$12 sps:$4 sm:$0xff]  }
 0x1cd   :  { %5885 = vrcp.f32 %v1667_v31  ;;  %v1647_v44 = vadd.f32 1.0, %v5882_v34 }
 0x1ce   :  { %v1650_v53 = vmul.f32 %v1646_v40, %v1634_v45  ;;  %v2571_v40 = vld [vmem:[#allocation7 + $0x7e0] sm:$0xff] }
 0x1cf   :  { %v1651_v60 = vmul.f32 %v1647_v44, %v1635_v49  ;;  %v5730_v44 = vld [vmem:[#allocation10 + $0x8] ss:$12 sps:$4 sm:$0xff]  }
 0x1d2   :  { %v1627_v35 = vpop.f32.mrf.mxu0 }
 0x1d4   :  { %v1586_v39 = vpop.f32.mrf.mxu1  ;;  %v1629_v42 = vpop.f32.mrf.mxu0 }
 0x1d5   :  { %v1587_v41 = vadd.f32 %v1586_v39, %v333_v15  ;;  %v2567_v39 = vld [vmem:[#allocation7 + $0x7c0] sm:$0xff] }
 0x1d6   :  { %v1588_v43 = vpop.f32.mrf.mxu1  ;;  %v1631_v48 = vpop.f32.mrf.mxu0 }
 0x1d7   :  { %v1628_v46 = vadd.f32 %v1627_v35, %v1587_v41  ;;  %v1589_v47 = vadd.f32 %v1588_v43, %v337_v38  ;;  %v5729_v35 = vld [vmem:[#allocation10 + $0xc8] ss:$12 sps:$4 sm:$0xff]   ;;  %v1636_v38 = vmul.f32 0.5, %v6225_v50  ;;  %v1637_v41 = vmul.f32 0.5, %v6227_v56  ;;  %v5733_v56 = vld [vmem:[#allocation10 + $0x2d8] ss:$12 sps:$4 sm:$0xff]  }
 0x1d8   :  { %v1590_v51 = vpop.f32.mrf.mxu1  ;;  %v5884_v52 = vpop.eup %5883 }
 0x1d9   :  { %v1656_v55 = vsub.f32 0.0, %v1628_v46  ;;  %v1630_v58 = vadd.f32 %v1629_v42, %v1589_v47  ;;  %v1632_v57 = vpop.f32.mrf.mxu0  ;;  %v1674_v3 = vmul.f32 %v5884_v52, %v1650_v53  ;;  %v5283_v46 = vcombine.high %v2567_v39, %v2571_v40  ;;  %v2559_v51 = vld [vmem:[#allocation7 + $0x780] sm:$0xff] }
 0x1da   :  { %v1591_v62 = vpop.f32.mrf.mxu1  ;;  %v5886_v61 = vpop.eup %5885  ;;  %v2563_v52 = vld [vmem:[#allocation7 + $0x7a0] sm:$0xff]  ;;  %v5282_v53 = vcombine.low %v2567_v39, %v2571_v40  ;;  %v5744_v39 = vld [vmem:[#allocation10 + $0x1a0] ss:$12 sps:$4 sm:$0xff]  }
 0x1db   :  { %v1662_v1 = vmul.f32 1.442695, %v1656_v55  ;;  %v1657_v2 = vsub.f32 0.0, %v1630_v58  ;;  %v1675_v4 = vmul.f32 %v5886_v61, %v1651_v60  ;;  %v6249_v9 = vpack.c.bf16 %v1674_v3, %v1674_v3  ;;  %v2505_v55 = vld [vmem:[#allocation5 + $0x8] sm:$0xff]  ;;  %v5732_v58 = vld [vmem:[#allocation10 + $0x230] ss:$12 sps:$4 sm:$0xff]  }
 0x1dc   :  { %v5275_v62 = vcombine.high %v2559_v51, %v2563_v52  ;;  %v2551_v60 = vld [vmem:[#allocation7 + $0x740] sm:$0xff]  ;;  %v5734_v3 = vld [vmem:[#allocation10 + $0x218] ss:$12 sps:$4 sm:$0xff]  }
 0x1dd   :  { %5887 = vpow2.f32 %v1662_v1  ;;  %v1664_v14 = vmul.f32 1.442695, %v1657_v2  ;;  %v1679_v5 = vpack.c.bf16 %v1675_v4, %v1675_v4  ;;  %v2555_v61 = vld [vmem:[#allocation7 + $0x760] sm:$0xff]  ;;  %v6259_v1 = vpack.c.bf16 %v2505_v55, %v2505_v55 }
 0x1de   :  { %v5274_v2 = vcombine.low %v2559_v51, %v2563_v52  ;;  %v5267_v4 = vcombine.high %v2551_v60, %v2555_v61  ;;  %v2623_v51 = vld [vmem:[#allocation7 + $0x980] sm:$0xff] }
 0x1df   :  { %5889 = vpow2.f32 %v1664_v14  ;;  %2371 = vmatprep.mubr.bf16.mxu0 %v1679_v5  ;;  %v5735_v14 = vld [vmem:[#allocation10 + $0x2c0] ss:$12 sps:$4 sm:$0xff]   ;;  %v2627_v52 = vld [vmem:[#allocation7 + $0x9a0] sm:$0xff] }
 0x1e0   :  { %2372 = vmatmul.mubr.bf16.vlgmr.msra.gmra.mxu0 %v6249_v9  ;;  %5891 = verf.f32 %v1640_v10  ;;  %v2691_v55 = vld [vmem:[#allocation7 + $0xba0] sm:$0xff] }
 0x1e1   :  { %5515 = vmatpush3.bf16.msra.mxu0 %v5695_v8  ;;  %2453 = vmatprep.mubr.bf16.mxu0 %v1679_v5  ;;  %5893 = verf.f32 %v1641_v12  ;;  %v2543_v5 = vld [vmem:[#allocation7 + $0x700] sm:$0xff] }
 0x1e2   :  { %5516 = vmatprep.subr.bf16.mxu0 %v5699_v21  ;;  %v2547_v8 = vld [vmem:[#allocation7 + $0x720] sm:$0xff]  ;;  %v5266_v21 = vcombine.low %v2551_v60, %v2555_v61 }
 0x1e3   :  { %v5259_v10 = vcombine.high %v2543_v5, %v2547_v8  ;;  %v2535_v12 = vld [vmem:[#allocation7 + $0x6c0] sm:$0xff] }
 0x1e4   :  { %v2615_v60 = vld [vmem:[#allocation7 + $0x940] sm:$0xff] }
 0x1e5   :  { %5517 = vmatpush3.bf16.msra.mxu0 %v5700_v11  ;;  %v5737_v11 = vld [vmem:[#allocation10 + $0x2a8] ss:$12 sps:$4 sm:$0xff]  }
 0x1e6   :  { %5518 = vmatprep.subr.bf16.mxu0 %v5704_v13  ;;  %v2539_v13 = vld [vmem:[#allocation7 + $0x6e0] sm:$0xff] }
 0x1e7   :  { %v2619_v61 = vld [vmem:[#allocation7 + $0x960] sm:$0xff] }
 0x1e9   :  { %5519 = vmatpush3.bf16.msra.mxu0 %v5705_v16  ;;  %v5258_v16 = vcombine.low %v2543_v5, %v2547_v8  ;;  %v5331_v5 = vcombine.high %v2615_v60, %v2619_v61 }
 0x1ea   :  { %v5888_v19 = vpop.eup %5887  ;;  %5520 = vmatprep.subr.bf16.mxu0 %v5709_v17  ;;  %v5738_v17 = vld [vmem:[#allocation10 + $0x1e8] ss:$12 sps:$4 sm:$0xff]  }
 0x1eb   :  { %v1668_v22 = vadd.f32 1.0, %v5888_v19  ;;  %v5251_v19 = vcombine.high %v2535_v12, %v2539_v13 }
 0x1ec   :  { %v5890_v24 = vpop.eup %5889 }
 0x1ed   :  { %5895 = vrcp.f32 %v1668_v22  ;;  %v1669_v25 = vadd.f32 1.0, %v5890_v24  ;;  %5521 = vmatpush3.bf16.msra.mxu0 %v5710_v20  ;;  %v5892_v29 = vpop.eup %5891  ;;  %v5739_v20 = vld [vmem:[#allocation10 + $0x290] ss:$12 sps:$4 sm:$0xff]   ;;  %v5250_v24 = vcombine.low %v2535_v12, %v2539_v13  ;;  %v5330_v12 = vcombine.low %v2615_v60, %v2619_v61 }
 0x1ee   :  { %5522 = vmatprep.subr.bf16.mxu0 %v5714_v23  ;;  %v5894_v31 = vpop.eup %5893  ;;  %v1648_v15 = vadd.f32 1.0, %v5892_v29  ;;  %v2527_v22 = vld [vmem:[#allocation7 + $0x680] sm:$0xff]  ;;  %v2504_v60 = vld [vmem:[#allocation5] sm:$0xff] }
 0x1ef   :  { %5897 = vrcp.f32 %v1669_v25  ;;  %v1649_v34 = vadd.f32 1.0, %v5894_v31  ;;  %v2531_v23 = vld [vmem:[#allocation7 + $0x6a0] sm:$0xff]  ;;  %v5742_v31 = vld [vmem:[#allocation10 + $0x1b8] ss:$12 sps:$4 sm:$0xff]  }
 0x1f0   :  { %v1652_v43 = vmul.f32 %v1648_v15, %v1636_v38  ;;  %v5740_v25 = vld [vmem:[#allocation10 + $0x1d0] ss:$12 sps:$4 sm:$0xff]  }
 0x1f1   :  { %5523 = vmatpush3.bf16.msra.mxu0 %v5715_v26  ;;  %v1653_v45 = vmul.f32 %v1649_v34, %v1637_v41  ;;  %v5243_v26 = vcombine.high %v2527_v22, %v2531_v23  ;;  %v2523_v29 = vld [vmem:[#allocation7 + $0x660] sm:$0xff] }
 0x1f2   :  { %5524 = vmatprep.subr.bf16.mxu0 %v5719_v27  ;;  %v5741_v27 = vld [vmem:[#allocation10 + $0x278] ss:$12 sps:$4 sm:$0xff]   ;;  %v2511_v34 = vld [vmem:[#allocation7 + $0x600] sm:$0xff] }
 0x1f3   :  { %v5745_v41 = vld [vmem:[#allocation10 + $0x248] ss:$12 sps:$4 sm:$0xff]  }
 0x1f5   :  { %5525 = vmatpush3.bf16.msra.mxu0 %v5720_v28  ;;  %v2519_v28 = vld [vmem:[#allocation7 + $0x640] sm:$0xff] }
 0x1f6   :  { %5526 = vmatprep.subr.bf16.mxu0 %v5724_v30  ;;  %v5242_v30 = vcombine.low %v2527_v22, %v2531_v23  ;;  %v5235_v15 = vcombine.high %v2519_v28, %v2523_v29  ;;  %v5234_v38 = vcombine.low %v2519_v28, %v2523_v29  ;;  %v2667_v22 = vld [vmem:[#allocation7 + $0xae0] sm:$0xff] }
 0x1f7   :  { %v2595_v28 = vld [vmem:[#allocation7 + $0x8a0] sm:$0xff] }
 0x1f8   :  { %v2655_v29 = vld [vmem:[#allocation7 + $0xa80] sm:$0xff] }
 0x1f9   :  { %5527 = vmatpush3.bf16.msra.mxu0 %v5725_v18  ;;  %v5743_v18 = vld [vmem:[#allocation10 + $0x260] ss:$12 sps:$4 sm:$0xff]  }
 0x1fa   :  { %v5896_v42 = vpop.eup %5895  ;;  %5528 = vmatprep.subr.bf16.mxu0 %v5729_v35  ;;  %v2515_v35 = vld [vmem:[#allocation7 + $0x620] sm:$0xff] }
 0x1fb   :  { %v1676_v48 = vmul.f32 %v5896_v42, %v1652_v43  ;;  %v5227_v40 = vcombine.high %v2511_v34, %v2515_v35  ;;  %v2631_v42 = vld [vmem:[#allocation7 + $0x9c0] sm:$0xff] }
 0x1fc   :  { %v5898_v47 = vpop.eup %5897  ;;  %v2635_v43 = vld [vmem:[#allocation7 + $0x9e0] sm:$0xff] }
 0x1fd   :  { %v1677_v49 = vmul.f32 %v5898_v47, %v1653_v45  ;;  %5529 = vmatpush3.bf16.msra.mxu0 %v5730_v44  ;;  %v6256_v57 = vpack.c.bf16 %v1676_v48, %v1676_v48  ;;  %v2695_v44 = vld [vmem:[#allocation7 + $0xbc0] sm:$0xff]  ;;  %v5347_v48 = vcombine.high %v2631_v42, %v2635_v43 }
 0x1fe   :  { %3706 = vmatprep.subr.bf16.mxu0 %v5283_v46  ;;  %v2699_v45 = vld [vmem:[#allocation7 + $0xbe0] sm:$0xff]  ;;  %v5226_v46 = vcombine.low %v2511_v34, %v2515_v35 }
 0x1ff   :  { %v1681_v50 = vpack.c.bf16 %v1677_v49, %v1677_v49  ;;  %v5746_v47 = vld [vmem:[#allocation10 + $0x188] ss:$12 sps:$4 sm:$0xff]   ;;  %v5411_v49 = vcombine.high %v2695_v44, %v2699_v45 }
 0x200   :  { %2454 = vmatmul.mubr.bf16.vlgmr.msra.gmra.mxu0 %v6249_v9  ;;  %v5736_v9 = vld [vmem:[#allocation10 + $0x200] ss:$12 sps:$4 sm:$0xff]   ;;  %v2583_v35 = vld [vmem:[#allocation7 + $0x840] sm:$0xff] }
 0x201   :  { %2412 = vmatprep.mubr.bf16.mxu1 %v1681_v50  ;;  %3707 = vmatpush1.bf16.msra.mxu0 %v5282_v53  ;;  %v2687_v53 = vld [vmem:[#allocation7 + $0xb80] sm:$0xff] }
 0x202   :  { %2413 = vmatmul.mubr.bf16.vlgmr.msra.gmra.mxu1 %v6256_v57  ;;  %3708 = vmatprep.subr.bf16.mxu0 %v5275_v62  ;;  %v5403_v62 = vcombine.high %v2687_v53, %v2691_v55 }
 0x203   :  { %5537 = vmatpush3.bf16.msra.mxu1 %v5732_v58  ;;  %2493 = vmatprep.mubr.bf16.mxu1 %v1681_v50  ;;  %v5346_v50 = vcombine.low %v2631_v42, %v2635_v43  ;;  %v5410_v58 = vcombine.low %v2695_v44, %v2699_v45  ;;  %v2575_v45 = vld [vmem:[#allocation7 + $0x800] sm:$0xff] }
 0x204   :  { %5538 = vmatprep.subr.bf16.mxu1 %v5733_v56  ;;  %3738 = vmatprep.mubr.bf16.mxu0 %v6259_v1  ;;  %v5339_v56 = vcombine.high %v2623_v51, %v2627_v52 }
 0x205   :  { %3709 = vmatpush1.bf16.msra.mxu0 %v5274_v2  ;;  %v2679_v2 = vld [vmem:[#allocation7 + $0xb40] sm:$0xff] }
 0x206   :  { %3710 = vmatprep.subr.bf16.mxu0 %v5267_v4  ;;  %v5338_v4 = vcombine.low %v2623_v51, %v2627_v52 }
 0x207   :  { %5539 = vmatpush3.bf16.msra.mxu1 %v5734_v3  ;;  %v2683_v3 = vld [vmem:[#allocation7 + $0xb60] sm:$0xff] }
 0x208   :  { %5540 = vmatprep.subr.bf16.mxu1 %v5735_v14  ;;  %v5402_v14 = vcombine.low %v2687_v53, %v2691_v55  ;;  %v5395_v8 = vcombine.high %v2679_v2, %v2683_v3  ;;  %v5394_v13 = vcombine.low %v2679_v2, %v2683_v3  ;;  %v2696_v55 = vld [vmem:[#allocation7 + $0xbc8] sm:$0xff]  ;;  %v2506_v2 = vld [vmem:[#allocation5 + $0x10] sm:$0xff] }
 0x209   :  { %3711 = vmatpush1.bf16.msra.mxu0 %v5266_v21  ;;  %v2607_v21 = vld [vmem:[#allocation7 + $0x900] sm:$0xff] }
 0x20a   :  { %3712 = vmatprep.subr.bf16.mxu0 %v5259_v10  ;;  %v2671_v10 = vld [vmem:[#allocation7 + $0xb00] sm:$0xff] }
 0x20b   :  { %5541 = vmatpush3.bf16.msra.mxu1 %v5736_v9  ;;  %v2611_v9 = vld [vmem:[#allocation7 + $0x920] sm:$0xff] }
 0x20c   :  { %5542 = vmatprep.subr.bf16.mxu1 %v5737_v11  ;;  %v2675_v11 = vld [vmem:[#allocation7 + $0xb20] sm:$0xff]  ;;  %v5322_v23 = vcombine.low %v2607_v21, %v2611_v9 }
 0x20d   :  { %3713 = vmatpush1.bf16.msra.mxu0 %v5258_v16  ;;  %v5387_v16 = vcombine.high %v2671_v10, %v2675_v11 }
 0x20e   :  { %3714 = vmatprep.subr.bf16.mxu0 %v5251_v19  ;;  %v2603_v19 = vld [vmem:[#allocation7 + $0x8e0] sm:$0xff] }
 0x20f   :  { %5543 = vmatpush3.bf16.msra.mxu1 %v5738_v17  ;;  %v2599_v17 = vld [vmem:[#allocation7 + $0x8c0] sm:$0xff] }
 0x210   :  { %5544 = vmatprep.subr.bf16.mxu1 %v5739_v20  ;;  %v2663_v20 = vld [vmem:[#allocation7 + $0xac0] sm:$0xff] }
 0x211   :  { %3715 = vmatpush1.bf16.msra.mxu0 %v5250_v24  ;;  %v5386_v24 = vcombine.low %v2671_v10, %v2675_v11  ;;  %v6267_v10 = vpack.c.bf16 %v2506_v2, %v2506_v2  ;;  %v2640_v2 = vld [vmem:[#allocation7 + $0xa08] sm:$0xff] }
 0x212   :  { %3716 = vmatprep.subr.bf16.mxu0 %v5243_v26  ;;  %v5379_v26 = vcombine.high %v2663_v20, %v2667_v22 }
 0x213   :  { %5545 = vmatpush3.bf16.msra.mxu1 %v5740_v25  ;;  %v5315_v25 = vcombine.high %v2599_v17, %v2603_v19 }
 0x214   :  { %5546 = vmatprep.subr.bf16.mxu1 %v5741_v27  ;;  %v2591_v27 = vld [vmem:[#allocation7 + $0x880] sm:$0xff] }
 0x215   :  { %3717 = vmatpush1.bf16.msra.mxu0 %v5242_v30  ;;  %v2659_v30 = vld [vmem:[#allocation7 + $0xaa0] sm:$0xff] }
 0x216   :  { %3718 = vmatprep.subr.bf16.mxu0 %v5235_v15  ;;  %v5378_v15 = vcombine.low %v2663_v20, %v2667_v22  ;;  %v5371_v34 = vcombine.high %v2655_v29, %v2659_v30  ;;  %v5370_v42 = vcombine.low %v2655_v29, %v2659_v30  ;;  %v2556_v20 = vld [vmem:[#allocation7 + $0x768] sm:$0xff] }
 0x217   :  { %5547 = vmatpush3.bf16.msra.mxu1 %v5742_v31  ;;  %v5314_v31 = vcombine.low %v2599_v17, %v2603_v19  ;;  %v2684_v17 = vld [vmem:[#allocation7 + $0xb68] sm:$0xff] }
 0x218   :  { %5548 = vmatprep.subr.bf16.mxu1 %v5743_v18  ;;  %v5307_v18 = vcombine.high %v2591_v27, %v2595_v28  ;;  %v2552_v19 = vld [vmem:[#allocation7 + $0x748] sm:$0xff] }
 0x219   :  { %3719 = vmatpush1.bf16.msra.mxu0 %v5234_v38  ;;  %v2587_v38 = vld [vmem:[#allocation7 + $0x860] sm:$0xff]  ;;  %v2548_v29 = vld [vmem:[#allocation7 + $0x728] sm:$0xff] }
 0x21a   :  { %3720 = vmatprep.subr.bf16.mxu0 %v5227_v40  ;;  %v2651_v40 = vld [vmem:[#allocation7 + $0xa60] sm:$0xff]  ;;  %v5299_v43 = vcombine.high %v2583_v35, %v2587_v38 }
 0x21b   :  { %5549 = vmatpush3.bf16.msra.mxu1 %v5744_v39  ;;  %v2647_v39 = vld [vmem:[#allocation7 + $0xa40] sm:$0xff] }
 0x21c   :  { %5550 = vmatprep.subr.bf16.mxu1 %v5745_v41  ;;  %v5306_v41 = vcombine.low %v2591_v27, %v2595_v28  ;;  %v5363_v44 = vcombine.high %v2647_v39, %v2651_v40  ;;  %v5362_v51 = vcombine.low %v2647_v39, %v2651_v40  ;;  %v2676_v27 = vld [vmem:[#allocation7 + $0xb28] sm:$0xff] }
 0x21d   :  { %3721 = vmatpush1.bf16.msra.mxu0 %v5226_v46  ;;  %v2579_v46 = vld [vmem:[#allocation7 + $0x820] sm:$0xff]  ;;  %v2544_v28 = vld [vmem:[#allocation7 + $0x708] sm:$0xff] }
 0x21e   :  { %3722 = vmatprep.subr.bf16.mxu0 %v5347_v48  ;;  %v2643_v48 = vld [vmem:[#allocation7 + $0xa20] sm:$0xff]  ;;  %v5291_v52 = vcombine.high %v2575_v45, %v2579_v46  ;;  %v2540_v39 = vld [vmem:[#allocation7 + $0x6e8] sm:$0xff] }
 0x21f   :  { %5551 = vmatpush3.bf16.msra.mxu1 %v5746_v47  ;;  %v2639_v47 = vld [vmem:[#allocation7 + $0xa00] sm:$0xff] }
 0x220   :  { %3747 = vmatprep.subr.bf16.mxu1 %v5411_v49  ;;  %v5298_v49 = vcombine.low %v2583_v35, %v2587_v38  ;;  %v5355_v53 = vcombine.high %v2639_v47, %v2643_v48  ;;  %v5354_v61 = vcombine.low %v2639_v47, %v2643_v48  ;;  %v2668_v35 = vld [vmem:[#allocation7 + $0xae8] sm:$0xff] }
 0x221   :  { %3723 = vmatpush2.bf16.msra.mxu0 %v5346_v50  ;;  %v2700_v50 = vld [vmem:[#allocation7 + $0xbe8] sm:$0xff] }
 0x222   :  { %2494 = vmatmul.mubr.bf16.vlgmr.msra.gmra.mxu1 %v6256_v57  ;;  %3724 = vmatprep.subr.bf16.mxu0 %v5339_v56  ;;  %v5323_v57 = vcombine.high %v2607_v21, %v2611_v9  ;;  %v2572_v56 = vld [vmem:[#allocation7 + $0x7e8] sm:$0xff]  ;;  %v5413_v3 = vcombine.high %v2696_v55, %v2700_v50  ;;  %v5412_v11 = vcombine.low %v2696_v55, %v2700_v50 }
 0x223   :  { %3748 = vmatpush1.bf16.msra.mxu1 %v5410_v58  ;;  %3779 = vmatprep.mubr.bf16.mxu1 %v6109_v0  ;;  %v2568_v58 = vld [vmem:[#allocation7 + $0x7c8] sm:$0xff] }
 0x224   :  { %3749 = vmatprep.subr.bf16.mxu1 %v5403_v62  ;;  %v5290_v62 = vcombine.low %v2575_v45, %v2579_v46  ;;  %v2560_v21 = vld [vmem:[#allocation7 + $0x788] sm:$0xff] }
 0x225   :  { %3725 = vmatpush2.bf16.msra.mxu0 %v5338_v4  ;;  %v5285_v4 = vcombine.high %v2568_v58, %v2572_v56  ;;  %v2564_v9 = vld [vmem:[#allocation7 + $0x7a8] sm:$0xff] }
 0x226   :  { %3726 = vmatprep.subr.bf16.mxu0 %v5331_v5  ;;  %v2692_v5 = vld [vmem:[#allocation7 + $0xba8] sm:$0xff] }
 0x227   :  { %3750 = vmatpush1.bf16.msra.mxu1 %v5402_v14  ;;  %v2688_v14 = vld [vmem:[#allocation7 + $0xb88] sm:$0xff] }
 0x228   :  { %3751 = vmatprep.subr.bf16.mxu1 %v5395_v8  ;;  %v6265_v8 = vpack.c.bf16 %v2504_v60, %v2504_v60  ;;  %v5404_v22 = vcombine.low %v2688_v14, %v2692_v5  ;;  %v2536_v38 = vld [vmem:[#allocation7 + $0x6c8] sm:$0xff] }
 0x229   :  { %3727 = vmatpush2.bf16.msra.mxu0 %v5330_v12  ;;  %v5284_v12 = vcombine.low %v2568_v58, %v2572_v56  ;;  %v2660_v45 = vld [vmem:[#allocation7 + $0xaa8] sm:$0xff] }
 0x22a   :  { %3728 = vmatprep.subr.bf16.mxu0 %v5323_v57  ;;  %v5277_v57 = vcombine.high %v2560_v21, %v2564_v9  ;;  %v2528_v46 = vld [vmem:[#allocation7 + $0x688] sm:$0xff] }
 0x22b   :  { %3752 = vmatpush1.bf16.msra.mxu1 %v5394_v13  ;;  %v5405_v13 = vcombine.high %v2688_v14, %v2692_v5  ;;  %v2532_v47 = vld [vmem:[#allocation7 + $0x6a8] sm:$0xff] }
 0x22c   :  { %3753 = vmatprep.subr.bf16.mxu1 %v5387_v16  ;;  %v2680_v16 = vld [vmem:[#allocation7 + $0xb48] sm:$0xff] }
 0x22d   :  { %3729 = vmatpush2.bf16.msra.mxu0 %v5322_v23  ;;  %v5276_v23 = vcombine.low %v2560_v21, %v2564_v9  ;;  %v5396_v30 = vcombine.low %v2680_v16, %v2684_v17  ;;  %v2652_v55 = vld [vmem:[#allocation7 + $0xa68] sm:$0xff] }
 0x22e   :  { %3730 = vmatprep.subr.bf16.mxu0 %v5315_v25  ;;  %v5269_v25 = vcombine.high %v2552_v19, %v2556_v20  ;;  %v2520_v50 = vld [vmem:[#allocation7 + $0x648] sm:$0xff] }
 0x22f   :  { %3754 = vmatpush1.bf16.msra.mxu1 %v5386_v24  ;;  %v5397_v24 = vcombine.high %v2680_v16, %v2684_v17  ;;  %v2524_v58 = vld [vmem:[#allocation7 + $0x668] sm:$0xff] }
 0x230   :  { %3755 = vmatprep.subr.bf16.mxu1 %v5379_v26  ;;  %v2672_v26 = vld [vmem:[#allocation7 + $0xb08] sm:$0xff]  ;;  %v5236_v21 = vcombine.low %v2520_v50, %v2524_v58 }
 0x231   :  { %3731 = vmatpush2.bf16.msra.mxu0 %v5314_v31  ;;  %v5268_v31 = vcombine.low %v2552_v19, %v2556_v20  ;;  %v5388_v40 = vcombine.low %v2672_v26, %v2676_v27  ;;  %v2516_v14 = vld [vmem:[#allocation7 + $0x628] sm:$0xff] }
 0x232   :  { %3732 = vmatprep.subr.bf16.mxu0 %v5307_v18  ;;  %v5261_v18 = vcombine.high %v2544_v28, %v2548_v29  ;;  %v2636_v16 = vld [vmem:[#allocation7 + $0x9e8] sm:$0xff] }
 0x233   :  { %3756 = vmatpush1.bf16.msra.mxu1 %v5378_v15  ;;  %v5389_v15 = vcombine.high %v2672_v26, %v2676_v27  ;;  %v2628_v26 = vld [vmem:[#allocation7 + $0x9a8] sm:$0xff] }
 0x234   :  { %3757 = vmatprep.subr.bf16.mxu1 %v5371_v34  ;;  %v2664_v34 = vld [vmem:[#allocation7 + $0xac8] sm:$0xff] }
 0x235   :  { %3733 = vmatpush2.bf16.msra.mxu0 %v5306_v41  ;;  %v5260_v41 = vcombine.low %v2544_v28, %v2548_v29  ;;  %v5380_v48 = vcombine.low %v2664_v34, %v2668_v35 }
 0x236   :  { %3734 = vmatprep.subr.bf16.mxu0 %v5299_v43  ;;  %v5253_v43 = vcombine.high %v2536_v38, %v2540_v39 }
 0x237   :  { %3758 = vmatpush1.bf16.msra.mxu1 %v5370_v42  ;;  %v5381_v42 = vcombine.high %v2664_v34, %v2668_v35  ;;  %v2620_v34 = vld [vmem:[#allocation7 + $0x968] sm:$0xff] }
 0x238   :  { %3759 = vmatprep.subr.bf16.mxu1 %v5363_v44  ;;  %v2656_v44 = vld [vmem:[#allocation7 + $0xa88] sm:$0xff] }
 0x239   :  { %3735 = vmatpush2.bf16.msra.mxu0 %v5298_v49  ;;  %v5252_v49 = vcombine.low %v2536_v38, %v2540_v39  ;;  %v5372_v56 = vcombine.low %v2656_v44, %v2660_v45 }
 0x23a   :  { %3736 = vmatprep.subr.bf16.mxu0 %v5291_v52  ;;  %v5245_v52 = vcombine.high %v2528_v46, %v2532_v47 }
 0x23b   :  { %3760 = vmatpush1.bf16.msra.mxu1 %v5362_v51  ;;  %v5373_v51 = vcombine.high %v2656_v44, %v2660_v45  ;;  %v2612_v44 = vld [vmem:[#allocation7 + $0x928] sm:$0xff] }
 0x23c   :  { %3761 = vmatprep.subr.bf16.mxu1 %v5355_v53  ;;  %v2648_v53 = vld [vmem:[#allocation7 + $0xa48] sm:$0xff] }
 0x23d   :  { %3737 = vmatpush2.bf16.msra.mxu0 %v5290_v62  ;;  %v5244_v62 = vcombine.low %v2528_v46, %v2532_v47  ;;  %v5365_v60 = vcombine.high %v2648_v53, %v2652_v55  ;;  %v5364_v5 = vcombine.low %v2648_v53, %v2652_v55  ;;  %v2604_v53 = vld [vmem:[#allocation7 + $0x8e8] sm:$0xff] }
 0x23e   :  { %3829 = vmatprep.subr.bf16.mxu0 %v5413_v3  ;;  %v2644_v3 = vld [vmem:[#allocation7 + $0xa28] sm:$0xff] }
 0x23f   :  { %3762 = vmatpush1.bf16.msra.mxu1 %v5354_v61  ;;  %v5237_v61 = vcombine.high %v2520_v50, %v2524_v58  ;;  %v5357_v9 = vcombine.high %v2640_v2, %v2644_v3  ;;  %v5356_v17 = vcombine.low %v2640_v2, %v2644_v3  ;;  %v2596_v2 = vld [vmem:[#allocation7 + $0x8a8] sm:$0xff] }
 0x240   :  { %3788 = vmatprep.subr.bf16.mxu1 %v5285_v4  ;;  %3739 = vmatmul.mubr.bf16.vlgmr.msra.gmra.mxu0 %v6265_v8  ;;  %v2512_v4 = vld [vmem:[#allocation7 + $0x608] sm:$0xff] }
 0x241   :  { %3830 = vmatpush1.bf16.msra.mxu0 %v5412_v11  ;;  %3861 = vmatprep.mubr.bf16.mxu0 %v6109_v0  ;;  %v5229_v11 = vcombine.high %v2512_v4, %v2516_v14  ;;  %v5228_v19 = vcombine.low %v2512_v4, %v2516_v14 }
 0x242   :  { %3780 = vmatmul.mubr.bf16.vlgmr.msra.gmra.mxu1 %v6267_v10  ;;  %3831 = vmatprep.subr.bf16.mxu0 %v5405_v13  ;;  %v2573_v13 = vld [vmem:[#allocation7 + $0x7f0] sm:$0xff] }
 0x243   :  { %3789 = vmatpush1.bf16.msra.mxu1 %v5284_v12  ;;  %3820 = vmatprep.mubr.bf16.mxu1 %v6259_v1  ;;  %v2569_v12 = vld [vmem:[#allocation7 + $0x7d0] sm:$0xff] }
 0x244   :  { %3790 = vmatprep.subr.bf16.mxu1 %v5277_v57  ;;  %v2632_v57 = vld [vmem:[#allocation7 + $0x9c8] sm:$0xff]  ;;  %v5287_v20 = vcombine.high %v2569_v12, %v2573_v13  ;;  %v5286_v27 = vcombine.low %v2569_v12, %v2573_v13 }
 0x245   :  { %3832 = vmatpush1.bf16.msra.mxu0 %v5404_v22  ;;  %v5349_v22 = vcombine.high %v2632_v57, %v2636_v16  ;;  %v5348_v28 = vcombine.low %v2632_v57, %v2636_v16  ;;  %v2588_v12 = vld [vmem:[#allocation7 + $0x868] sm:$0xff] }
 0x246   :  { %3833 = vmatprep.subr.bf16.mxu0 %v5397_v24  ;;  %v2565_v24 = vld [vmem:[#allocation7 + $0x7b0] sm:$0xff] }
 0x247   :  { %3791 = vmatpush1.bf16.msra.mxu1 %v5276_v23  ;;  %v2561_v23 = vld [vmem:[#allocation7 + $0x790] sm:$0xff] }
 0x248   :  { %3792 = vmatprep.subr.bf16.mxu1 %v5269_v25  ;;  %v2624_v25 = vld [vmem:[#allocation7 + $0x988] sm:$0xff]  ;;  %v5279_v29 = vcombine.high %v2561_v23, %v2565_v24  ;;  %v5278_v35 = vcombine.low %v2561_v23, %v2565_v24 }
 0x249   :  { %3834 = vmatpush1.bf16.msra.mxu0 %v5396_v30  ;;  %v5341_v30 = vcombine.high %v2624_v25, %v2628_v26  ;;  %v5340_v38 = vcombine.low %v2624_v25, %v2628_v26  ;;  %v2580_v23 = vld [vmem:[#allocation7 + $0x828] sm:$0xff] }
 0x24a   :  { %3835 = vmatprep.subr.bf16.mxu0 %v5389_v15  ;;  %v2557_v15 = vld [vmem:[#allocation7 + $0x770] sm:$0xff] }
 0x24b   :  { %3793 = vmatpush1.bf16.msra.mxu1 %v5268_v31  ;;  %v2553_v31 = vld [vmem:[#allocation7 + $0x750] sm:$0xff] }
 0x24c   :  { %3794 = vmatprep.subr.bf16.mxu1 %v5261_v18  ;;  %v2616_v18 = vld [vmem:[#allocation7 + $0x948] sm:$0xff]  ;;  %v5271_v39 = vcombine.high %v2553_v31, %v2557_v15  ;;  %v5270_v45 = vcombine.low %v2553_v31, %v2557_v15  ;;  %v2701_v31 = vld [vmem:[#allocation7 + $0xbf0] sm:$0xff] }
 0x24d   :  { %3836 = vmatpush1.bf16.msra.mxu0 %v5388_v40  ;;  %v5333_v40 = vcombine.high %v2616_v18, %v2620_v34  ;;  %v5332_v46 = vcombine.low %v2616_v18, %v2620_v34 }
 0x24e   :  { %3837 = vmatprep.subr.bf16.mxu0 %v5381_v42  ;;  %v2549_v42 = vld [vmem:[#allocation7 + $0x730] sm:$0xff] }
 0x24f   :  { %3795 = vmatpush1.bf16.msra.mxu1 %v5260_v41  ;;  %v2545_v41 = vld [vmem:[#allocation7 + $0x710] sm:$0xff] }
 0x250   :  { %3796 = vmatprep.subr.bf16.mxu1 %v5253_v43  ;;  %v2608_v43 = vld [vmem:[#allocation7 + $0x908] sm:$0xff]  ;;  %v5263_v47 = vcombine.high %v2545_v41, %v2549_v42  ;;  %v5262_v55 = vcombine.low %v2545_v41, %v2549_v42  ;;  %v2693_v41 = vld [vmem:[#allocation7 + $0xbb0] sm:$0xff] }
 0x251   :  { %3838 = vmatpush1.bf16.msra.mxu0 %v5380_v48  ;;  %v5325_v48 = vcombine.high %v2608_v43, %v2612_v44  ;;  %v5324_v50 = vcombine.low %v2608_v43, %v2612_v44 }
 0x252   :  { %3839 = vmatprep.subr.bf16.mxu0 %v5373_v51  ;;  %v2541_v51 = vld [vmem:[#allocation7 + $0x6f0] sm:$0xff] }
 0x253   :  { %3797 = vmatpush1.bf16.msra.mxu1 %v5252_v49  ;;  %v2537_v49 = vld [vmem:[#allocation7 + $0x6d0] sm:$0xff] }
 0x254   :  { %3798 = vmatprep.subr.bf16.mxu1 %v5245_v52  ;;  %v2600_v52 = vld [vmem:[#allocation7 + $0x8c8] sm:$0xff]  ;;  %v5255_v58 = vcombine.high %v2537_v49, %v2541_v51  ;;  %v5254_v3 = vcombine.low %v2537_v49, %v2541_v51  ;;  %v2685_v49 = vld [vmem:[#allocation7 + $0xb70] sm:$0xff] }
 0x255   :  { %3840 = vmatpush1.bf16.msra.mxu0 %v5372_v56  ;;  %v5317_v56 = vcombine.high %v2600_v52, %v2604_v53  ;;  %v5316_v4 = vcombine.low %v2600_v52, %v2604_v53 }
 0x256   :  { %3841 = vmatprep.subr.bf16.mxu0 %v5365_v60  ;;  %v2533_v60 = vld [vmem:[#allocation7 + $0x6b0] sm:$0xff] }
 0x257   :  { %3799 = vmatpush1.bf16.msra.mxu1 %v5244_v62  ;;  %v2529_v62 = vld [vmem:[#allocation7 + $0x690] sm:$0xff] }
 0x258   :  { %3800 = vmatprep.subr.bf16.mxu1 %v5237_v61  ;;  %v2592_v61 = vld [vmem:[#allocation7 + $0x888] sm:$0xff]  ;;  %v5247_v14 = vcombine.high %v2529_v62, %v2533_v60  ;;  %v5246_v13 = vcombine.low %v2529_v62, %v2533_v60  ;;  %v2677_v62 = vld [vmem:[#allocation7 + $0xb30] sm:$0xff] }
 0x259   :  { %3842 = vmatpush1.bf16.msra.mxu0 %v5364_v5  ;;  %v5309_v5 = vcombine.high %v2592_v61, %v2596_v2  ;;  %v5308_v57 = vcombine.low %v2592_v61, %v2596_v2 }
 0x25a   :  { %3843 = vmatprep.subr.bf16.mxu0 %v5357_v9  ;;  %v2525_v9 = vld [vmem:[#allocation7 + $0x670] sm:$0xff] }
 0x25b   :  { %3801 = vmatpush1.bf16.msra.mxu1 %v5236_v21  ;;  %v2521_v21 = vld [vmem:[#allocation7 + $0x650] sm:$0xff] }
 0x25c   :  { %3802 = vmatprep.subr.bf16.mxu1 %v5229_v11  ;;  %v2584_v11 = vld [vmem:[#allocation7 + $0x848] sm:$0xff]  ;;  %v5239_v16 = vcombine.high %v2521_v21, %v2525_v9  ;;  %v5238_v24 = vcombine.low %v2521_v21, %v2525_v9  ;;  %v2669_v21 = vld [vmem:[#allocation7 + $0xaf0] sm:$0xff] }
 0x25d   :  { %3844 = vmatpush1.bf16.msra.mxu0 %v5356_v17  ;;  %v5301_v17 = vcombine.high %v2584_v11, %v2588_v12  ;;  %v5300_v25 = vcombine.low %v2584_v11, %v2588_v12 }
 0x25e   :  { %3870 = vmatprep.subr.bf16.mxu0 %v5287_v20  ;;  %v2517_v20 = vld [vmem:[#allocation7 + $0x630] sm:$0xff] }
 0x25f   :  { %3803 = vmatpush1.bf16.msra.mxu1 %v5228_v19  ;;  %v2513_v19 = vld [vmem:[#allocation7 + $0x610] sm:$0xff] }
 0x260   :  { %3804 = vmatprep.subr.bf16.mxu1 %v5349_v22  ;;  %3862 = vmatmul.mubr.bf16.vlgmr.msra.gmra.mxu0 %v6267_v10  ;;  %v2576_v22 = vld [vmem:[#allocation7 + $0x808] sm:$0xff]  ;;  %v5231_v26 = vcombine.high %v2513_v19, %v2517_v20  ;;  %v5230_v15 = vcombine.low %v2513_v19, %v2517_v20  ;;  %v2661_v19 = vld [vmem:[#allocation7 + $0xab0] sm:$0xff] }
 0x261   :  { %3871 = vmatpush1.bf16.msra.mxu0 %v5286_v27  ;;  %3902 = vmatprep.mubr.bf16.mxu0 %v6259_v1  ;;  %v5293_v27 = vcombine.high %v2576_v22, %v2580_v23  ;;  %v5292_v18 = vcombine.low %v2576_v22, %v2580_v23 }
 0x262   :  { %3872 = vmatprep.subr.bf16.mxu0 %v5279_v29  ;;  %v2637_v29 = vld [vmem:[#allocation7 + $0x9f0] sm:$0xff] }
 0x263   :  { %3805 = vmatpush2.bf16.msra.mxu1 %v5348_v28  ;;  %v2633_v28 = vld [vmem:[#allocation7 + $0x9d0] sm:$0xff] }
 0x264   :  { %3806 = vmatprep.subr.bf16.mxu1 %v5341_v30  ;;  %v2697_v30 = vld [vmem:[#allocation7 + $0xbd0] sm:$0xff]  ;;  %v5351_v34 = vcombine.high %v2633_v28, %v2637_v29  ;;  %v5350_v42 = vcombine.low %v2633_v28, %v2637_v29 }
 0x265   :  { %3873 = vmatpush1.bf16.msra.mxu0 %v5278_v35  ;;  %v5415_v35 = vcombine.high %v2697_v30, %v2701_v31  ;;  %v5414_v43 = vcombine.low %v2697_v30, %v2701_v31  ;;  %v2653_v28 = vld [vmem:[#allocation7 + $0xa70] sm:$0xff] }
 0x266   :  { %3874 = vmatprep.subr.bf16.mxu0 %v5271_v39  ;;  %v2629_v39 = vld [vmem:[#allocation7 + $0x9b0] sm:$0xff] }
 0x267   :  { %3807 = vmatpush2.bf16.msra.mxu1 %v5340_v38  ;;  %v2625_v38 = vld [vmem:[#allocation7 + $0x990] sm:$0xff] }
 0x268   :  { %3808 = vmatprep.subr.bf16.mxu1 %v5333_v40  ;;  %v2689_v40 = vld [vmem:[#allocation7 + $0xb90] sm:$0xff]  ;;  %v5343_v44 = vcombine.high %v2625_v38, %v2629_v39  ;;  %v5342_v51 = vcombine.low %v2625_v38, %v2629_v39 }
 0x269   :  { %3875 = vmatpush1.bf16.msra.mxu0 %v5270_v45  ;;  %v5407_v45 = vcombine.high %v2689_v40, %v2693_v41  ;;  %v5406_v52 = vcombine.low %v2689_v40, %v2693_v41  ;;  %v2645_v38 = vld [vmem:[#allocation7 + $0xa30] sm:$0xff] }
 0x26a   :  { %3876 = vmatprep.subr.bf16.mxu0 %v5263_v47  ;;  %v2621_v47 = vld [vmem:[#allocation7 + $0x970] sm:$0xff] }
 0x26b   :  { %3809 = vmatpush2.bf16.msra.mxu1 %v5332_v46  ;;  %v2617_v46 = vld [vmem:[#allocation7 + $0x950] sm:$0xff] }
 0x26c   :  { %3810 = vmatprep.subr.bf16.mxu1 %v5325_v48  ;;  %v2681_v48 = vld [vmem:[#allocation7 + $0xb50] sm:$0xff]  ;;  %v5335_v53 = vcombine.high %v2617_v46, %v2621_v47  ;;  %v5334_v60 = vcombine.low %v2617_v46, %v2621_v47  ;;  %v2574_v46 = vld [vmem:[#allocation7 + $0x7f8] sm:$0xff] }
 0x26d   :  { %3877 = vmatpush1.bf16.msra.mxu0 %v5262_v55  ;;  %v5399_v55 = vcombine.high %v2681_v48, %v2685_v49  ;;  %v5398_v61 = vcombine.low %v2681_v48, %v2685_v49 }
 0x26e   :  { %3878 = vmatprep.subr.bf16.mxu0 %v5255_v58  ;;  %v2613_v58 = vld [vmem:[#allocation7 + $0x930] sm:$0xff] }
 0x26f   :  { %3811 = vmatpush2.bf16.msra.mxu1 %v5324_v50  ;;  %v2609_v50 = vld [vmem:[#allocation7 + $0x910] sm:$0xff] }
 0x270   :  { %3812 = vmatprep.subr.bf16.mxu1 %v5317_v56  ;;  %v2673_v56 = vld [vmem:[#allocation7 + $0xb10] sm:$0xff]  ;;  %v5327_v2 = vcombine.high %v2609_v50, %v2613_v58  ;;  %v5326_v9 = vcombine.low %v2609_v50, %v2613_v58  ;;  %v2566_v50 = vld [vmem:[#allocation7 + $0x7b8] sm:$0xff] }
 0x271   :  { %3879 = vmatpush1.bf16.msra.mxu0 %v5254_v3  ;;  %v5391_v3 = vcombine.high %v2673_v56, %v2677_v62  ;;  %v5390_v11 = vcombine.low %v2673_v56, %v2677_v62 }
 0x272   :  { %3880 = vmatprep.subr.bf16.mxu0 %v5247_v14  ;;  %v2605_v14 = vld [vmem:[#allocation7 + $0x8f0] sm:$0xff] }
 0x273   :  { %3813 = vmatpush2.bf16.msra.mxu1 %v5316_v4  ;;  %v2601_v4 = vld [vmem:[#allocation7 + $0x8d0] sm:$0xff] }
 0x274   :  { %3814 = vmatprep.subr.bf16.mxu1 %v5309_v5  ;;  %v2665_v5 = vld [vmem:[#allocation7 + $0xad0] sm:$0xff]  ;;  %v5319_v12 = vcombine.high %v2601_v4, %v2605_v14  ;;  %v5318_v20 = vcombine.low %v2601_v4, %v2605_v14  ;;  %v2554_v4 = vld [vmem:[#allocation7 + $0x758] sm:$0xff] }
 0x275   :  { %3881 = vmatpush1.bf16.msra.mxu0 %v5246_v13  ;;  %v5383_v13 = vcombine.high %v2665_v5, %v2669_v21  ;;  %v5382_v22 = vcombine.low %v2665_v5, %v2669_v21  ;;  %v2558_v14 = vld [vmem:[#allocation7 + $0x778] sm:$0xff] }
 0x276   :  { %3882 = vmatprep.subr.bf16.mxu0 %v5239_v16  ;;  %v2597_v16 = vld [vmem:[#allocation7 + $0x8b0] sm:$0xff] }
 0x277   :  { %3815 = vmatpush2.bf16.msra.mxu1 %v5308_v57  ;;  %v2593_v57 = vld [vmem:[#allocation7 + $0x890] sm:$0xff] }
 0x278   :  { %3816 = vmatprep.subr.bf16.mxu1 %v5301_v17  ;;  %v2657_v17 = vld [vmem:[#allocation7 + $0xa90] sm:$0xff]  ;;  %v5311_v23 = vcombine.high %v2593_v57, %v2597_v16  ;;  %v5310_v29 = vcombine.low %v2593_v57, %v2597_v16  ;;  %v2678_v57 = vld [vmem:[#allocation7 + $0xb38] sm:$0xff] }
 0x279   :  { %3883 = vmatpush1.bf16.msra.mxu0 %v5238_v24  ;;  %v5375_v24 = vcombine.high %v2657_v17, %v2661_v19  ;;  %v5374_v30 = vcombine.low %v2657_v17, %v2661_v19  ;;  %v2546_v17 = vld [vmem:[#allocation7 + $0x718] sm:$0xff] }
 0x27a   :  { %3884 = vmatprep.subr.bf16.mxu0 %v5231_v26  ;;  %v2589_v26 = vld [vmem:[#allocation7 + $0x870] sm:$0xff]  ;;  %v2550_v19 = vld [vmem:[#allocation7 + $0x738] sm:$0xff] }
 0x27b   :  { %3817 = vmatpush2.bf16.msra.mxu1 %v5300_v25  ;;  %v2585_v25 = vld [vmem:[#allocation7 + $0x850] sm:$0xff] }
 0x27c   :  { %3818 = vmatprep.subr.bf16.mxu1 %v5293_v27  ;;  %v2649_v27 = vld [vmem:[#allocation7 + $0xa50] sm:$0xff]  ;;  %v5303_v31 = vcombine.high %v2585_v25, %v2589_v26  ;;  %v5302_v39 = vcombine.low %v2585_v25, %v2589_v26  ;;  %v5265_v25 = vcombine.high %v2546_v17, %v2550_v19  ;;  %v2666_v26 = vld [vmem:[#allocation7 + $0xad8] sm:$0xff] }
 0x27d   :  { %3885 = vmatpush1.bf16.msra.mxu0 %v5230_v15  ;;  %v5367_v15 = vcombine.high %v2649_v27, %v2653_v28  ;;  %v5366_v40 = vcombine.low %v2649_v27, %v2653_v28  ;;  %v2670_v27 = vld [vmem:[#allocation7 + $0xaf8] sm:$0xff] }
 0x27e   :  { %3886 = vmatprep.subr.bf16.mxu0 %v5351_v34  ;;  %v2581_v34 = vld [vmem:[#allocation7 + $0x830] sm:$0xff]  ;;  %v2538_v28 = vld [vmem:[#allocation7 + $0x6d8] sm:$0xff] }
 0x27f   :  { %3819 = vmatpush2.bf16.msra.mxu1 %v5292_v18  ;;  %v2577_v18 = vld [vmem:[#allocation7 + $0x810] sm:$0xff] }
 0x280   :  { %3911 = vmatprep.subr.bf16.mxu1 %v5415_v35  ;;  %v2641_v35 = vld [vmem:[#allocation7 + $0xa10] sm:$0xff]  ;;  %v5295_v41 = vcombine.high %v2577_v18, %v2581_v34  ;;  %v5294_v47 = vcombine.low %v2577_v18, %v2581_v34  ;;  %v2662_v18 = vld [vmem:[#allocation7 + $0xab8] sm:$0xff] }
 0x281   :  { %3887 = vmatpush2.bf16.msra.mxu0 %v5350_v42  ;;  %v5359_v42 = vcombine.high %v2641_v35, %v2645_v38  ;;  %v5358_v48 = vcombine.low %v2641_v35, %v2645_v38  ;;  %v2530_v34 = vld [vmem:[#allocation7 + $0x698] sm:$0xff]  ;;  %v5384_v38 = vcombine.low %v2666_v26, %v2670_v27 }
 0x282   :  { %3821 = vmatmul.mubr.bf16.vlgmr.msra.gmra.mxu1 %v6265_v8  ;;  %3888 = vmatprep.subr.bf16.mxu0 %v5343_v44  ;;  %v2702_v44 = vld [vmem:[#allocation7 + $0xbf8] sm:$0xff] }
 0x283   :  { %3912 = vmatpush1.bf16.msra.mxu1 %v5414_v43  ;;  %3943 = vmatprep.mubr.bf16.mxu1 %v6109_v0  ;;  %v2698_v43 = vld [vmem:[#allocation7 + $0xbd8] sm:$0xff] }
 0x284   :  { %3913 = vmatprep.subr.bf16.mxu1 %v5407_v45  ;;  %v2570_v45 = vld [vmem:[#allocation7 + $0x7d8] sm:$0xff]  ;;  %v5417_v49 = vcombine.high %v2698_v43, %v2702_v44  ;;  %v5416_v58 = vcombine.low %v2698_v43, %v2702_v44 }
 0x285   :  { %3889 = vmatpush2.bf16.msra.mxu0 %v5342_v51  ;;  %v5289_v51 = vcombine.high %v2570_v45, %v2574_v46  ;;  %v5288_v56 = vcombine.low %v2570_v45, %v2574_v46  ;;  %v2534_v35 = vld [vmem:[#allocation7 + $0x6b8] sm:$0xff] }
 0x286   :  { %3890 = vmatprep.subr.bf16.mxu0 %v5335_v53  ;;  %v2694_v53 = vld [vmem:[#allocation7 + $0xbb8] sm:$0xff] }
 0x287   :  { %3914 = vmatpush1.bf16.msra.mxu1 %v5406_v52  ;;  %v2690_v52 = vld [vmem:[#allocation7 + $0xb98] sm:$0xff] }
 0x288   :  { %3915 = vmatprep.subr.bf16.mxu1 %v5399_v55  ;;  %v2562_v55 = vld [vmem:[#allocation7 + $0x798] sm:$0xff]  ;;  %v5409_v62 = vcombine.high %v2690_v52, %v2694_v53  ;;  %v5408_v5 = vcombine.low %v2690_v52, %v2694_v53 }
 0x289   :  { %3891 = vmatpush2.bf16.msra.mxu0 %v5334_v60  ;;  %v5281_v60 = vcombine.high %v2562_v55, %v2566_v50  ;;  %v2654_v43 = vld [vmem:[#allocation7 + $0xa78] sm:$0xff] }
 0x28a   :  { %3892 = vmatprep.subr.bf16.mxu0 %v5327_v2  ;;  %v2686_v2 = vld [vmem:[#allocation7 + $0xb78] sm:$0xff] }
 0x28b   :  { %3916 = vmatpush1.bf16.msra.mxu1 %v5398_v61  ;;  %v2682_v61 = vld [vmem:[#allocation7 + $0xb58] sm:$0xff] }
 0x28c   :  { %3917 = vmatprep.subr.bf16.mxu1 %v5391_v3  ;;  %v2522_v44 = vld [vmem:[#allocation7 + $0x658] sm:$0xff] }
 0x28d   :  { %3893 = vmatpush2.bf16.msra.mxu0 %v5326_v9  ;;  %v5280_v9 = vcombine.low %v2562_v55, %v2566_v50  ;;  %v2526_v45 = vld [vmem:[#allocation7 + $0x678] sm:$0xff] }
 0x28e   :  { %3894 = vmatprep.subr.bf16.mxu0 %v5319_v12  ;;  %v5273_v12 = vcombine.high %v2554_v4, %v2558_v14  ;;  %v2646_v52 = vld [vmem:[#allocation7 + $0xa38] sm:$0xff] }
 0x28f   :  { %3918 = vmatpush1.bf16.msra.mxu1 %v5390_v11  ;;  %v5401_v11 = vcombine.high %v2682_v61, %v2686_v2  ;;  %v2514_v53 = vld [vmem:[#allocation7 + $0x618] sm:$0xff] }
 0x290   :  { %3919 = vmatprep.subr.bf16.mxu1 %v5383_v13  ;;  %v2674_v13 = vld [vmem:[#allocation7 + $0xb18] sm:$0xff] }
 0x291   :  { %3895 = vmatpush2.bf16.msra.mxu0 %v5318_v20  ;;  %v5400_v20 = vcombine.low %v2682_v61, %v2686_v2  ;;  %v2518_v55 = vld [vmem:[#allocation7 + $0x638] sm:$0xff]  ;;  %v6285_v2 = vld [vmem:[#allocation11] sm:$0x7] }
 0x292   :  { %3896 = vmatprep.subr.bf16.mxu0 %v5311_v23  ;;  %v5272_v23 = vcombine.low %v2554_v4, %v2558_v14  ;;  %v2638_v61 = vld [vmem:[#allocation7 + $0x9f8] sm:$0xff]  ;;  %v5232_v14 = vcombine.low %v2514_v53, %v2518_v55 }
 0x293   :  { %3920 = vmatpush1.bf16.msra.mxu1 %v5382_v22 }
 0x294   :  { %3921 = vmatprep.subr.bf16.mxu1 %v5375_v24  ;;  %v5393_v24 = vcombine.high %v2674_v13, %v2678_v57 }
 0x295   :  { %3897 = vmatpush2.bf16.msra.mxu0 %v5310_v29  ;;  %v2542_v29 = vld [vmem:[#allocation7 + $0x6f8] sm:$0xff] }
 0x296   :  { %3898 = vmatprep.subr.bf16.mxu0 %v5303_v31  ;;  %v5385_v31 = vcombine.high %v2666_v26, %v2670_v27 }
 0x297   :  { %3922 = vmatpush1.bf16.msra.mxu1 %v5374_v30  ;;  %v5264_v30 = vcombine.low %v2546_v17, %v2550_v19 }
 0x298   :  { %3923 = vmatprep.subr.bf16.mxu1 %v5367_v15  ;;  %v2658_v15 = vld [vmem:[#allocation7 + $0xa98] sm:$0xff] }
 0x299   :  { %3899 = vmatpush2.bf16.msra.mxu0 %v5302_v39  ;;  %v5256_v39 = vcombine.low %v2538_v28, %v2542_v29  ;;  %v5376_v46 = vcombine.low %v2658_v15, %v2662_v18 }
 0x29a   :  { %3900 = vmatprep.subr.bf16.mxu0 %v5295_v41  ;;  %v5249_v41 = vcombine.high %v2530_v34, %v2534_v35 }
 0x29b   :  { %3924 = vmatpush1.bf16.msra.mxu1 %v5366_v40  ;;  %v5377_v40 = vcombine.high %v2658_v15, %v2662_v18 }
 0x29c   :  { %3925 = vmatprep.subr.bf16.mxu1 %v5359_v42  ;;  %v2650_v42 = vld [vmem:[#allocation7 + $0xa58] sm:$0xff] }
 0x29d   :  { %3901 = vmatpush2.bf16.msra.mxu0 %v5294_v47  ;;  %v5248_v47 = vcombine.low %v2530_v34, %v2534_v35  ;;  %v5368_v50 = vcombine.low %v2650_v42, %v2654_v43  ;;  %v2602_v34 = vld [vmem:[#allocation7 + $0x8d8] sm:$0xff] }
 0x29e   :  { %3993 = vmatprep.subr.bf16.mxu0 %v5417_v49  ;;  %v5241_v49 = vcombine.high %v2522_v44, %v2526_v45  ;;  %v2606_v35 = vld [vmem:[#allocation7 + $0x8f8] sm:$0xff] }
 0x29f   :  { %3926 = vmatpush1.bf16.msra.mxu1 %v5358_v48  ;;  %v5369_v48 = vcombine.high %v2650_v42, %v2654_v43  ;;  %v5749_v42 = vld [vmem:[#allocation10 + $0x3ac] ss:$12 sps:$4 sm:$0xff]   ;;  %v5747_v43 = vld [vmem:[#allocation10 + $0x3a8] ss:$12 sps:$4 sm:$0xff]  }
 0x2a0   :  { %3952 = vmatprep.subr.bf16.mxu1 %v5289_v51  ;;  %3903 = vmatmul.mubr.bf16.vlgmr.msra.gmra.mxu0 %v6265_v8  ;;  %v6278_v3 = vpop.f32.mrf.mxu0  ;;  %v2642_v51 = vld [vmem:[#allocation7 + $0xa18] sm:$0xff] }
 0x2a1   :  { %3994 = vmatpush1.bf16.msra.mxu0 %v5416_v58  ;;  %4025 = vmatprep.mubr.bf16.mxu0 %v6109_v0  ;;  %v5392_v0 = vcombine.low %v2674_v13, %v2678_v57  ;;  %v5240_v58 = vcombine.low %v2522_v44, %v2526_v45  ;;  %v5360_v4 = vcombine.low %v2642_v51, %v2646_v52 }
 0x2a2   :  { %3944 = vmatmul.mubr.bf16.vlgmr.msra.gmra.mxu1 %v6267_v10  ;;  %v6281_v21 = vpop.f32.mrf.mxu0  ;;  %3995 = vmatprep.subr.bf16.mxu0 %v5409_v62  ;;  %v5233_v62 = vcombine.high %v2514_v53, %v2518_v55  ;;  %v1819_v13 = vrot.slane %v6285_v2, %v6204_v63  ;;  %v5320_v44 = vcombine.low %v2602_v34, %v2606_v35  ;;  %v2578_v53 = vld [vmem:[#allocation7 + $0x818] sm:$0xff] }
 0x2a3   :  { %3953 = vmatpush1.bf16.msra.mxu1 %v5288_v56  ;;  %3984 = vmatprep.mubr.bf16.mxu1 %v6259_v1  ;;  %v5257_v1 = vcombine.high %v2538_v28, %v2542_v29  ;;  %v5361_v56 = vcombine.high %v2642_v51, %v2646_v52  ;;  %v2582_v55 = vld [vmem:[#allocation7 + $0x838] sm:$0xff] }
 0x2a4   :  { %3954 = vmatprep.subr.bf16.mxu1 %v5281_v60  ;;  %v2377_v16 = vpop.f32.mrf.mxu0  ;;  %v2634_v60 = vld [vmem:[#allocation7 + $0x9d8] sm:$0xff] }
 0x2a5   :  { %3996 = vmatpush1.bf16.msra.mxu0 %v5408_v5  ;;  %v5353_v5 = vcombine.high %v2634_v60, %v2638_v61  ;;  %v5352_v57 = vcombine.low %v2634_v60, %v2638_v61  ;;  %v5756_v60 = vld [vmem:[#allocation10 + $0x360] ss:$12 sps:$4 sm:$0xff]   ;;  %v5758_v61 = vld [vmem:[#allocation10 + $0x364] ss:$12 sps:$4 sm:$0xff]  }
 0x2a6   :  { %v2378_v22 = vpop.f32.mrf.mxu0  ;;  %3997 = vmatprep.subr.bf16.mxu0 %v5401_v11  ;;  %v2626_v11 = vld [vmem:[#allocation7 + $0x998] sm:$0xff] }
 0x2a7   :  { %3955 = vmatpush1.bf16.msra.mxu1 %v5280_v9  ;;  %v1815_v9 = vrot.slane %v6285_v2, %v6199_v59  ;;  %v2622_v22 = vld [vmem:[#allocation7 + $0x978] sm:$0xff] }
 0x2a8   :  { %3956 = vmatprep.subr.bf16.mxu1 %v5273_v12  ;;  %v2630_v12 = vld [vmem:[#allocation7 + $0x9b8] sm:$0xff] }
 0x2a9   :  { %3998 = vmatpush1.bf16.msra.mxu0 %v5400_v20  ;;  %v5345_v16 = vcombine.high %v2626_v11, %v2630_v12  ;;  %v2374_v17 = vadd.f32 %v6278_v3, %v1815_v9  ;;  %v2618_v20 = vld [vmem:[#allocation7 + $0x958] sm:$0xff]  ;;  %v5344_v27 = vcombine.low %v2626_v11, %v2630_v12  ;;  %v1823_v9 = vrot.slane %v6285_v2, %v6217_v36  ;;  %v5764_v12 = vld [vmem:[#allocation10 + $0x334] ss:$12 sps:$4 sm:$0xff]   ;;  %v5770_v2 = vld [vmem:[#allocation10 + $0x304] ss:$12 sps:$4 sm:$0xff]  }
 0x2aa   :  { %3999 = vmatprep.subr.bf16.mxu0 %v5393_v24  ;;  %v2376_v24 = vadd.f32 %v6281_v21, %v1819_v13  ;;  %v5337_v29 = vcombine.high %v2618_v20, %v2622_v22  ;;  %v5336_v15 = vcombine.low %v2618_v20, %v2622_v22  ;;  %v5767_v22 = vld [vmem:[#allocation10 + $0x31c] ss:$12 sps:$4 sm:$0xff]  }
 0x2ab   :  { %3957 = vmatpush1.bf16.msra.mxu1 %v5272_v23 }
 0x2ac   :  { %3958 = vmatprep.subr.bf16.mxu1 %v5265_v25 }
 0x2ad   :  { %4000 = vmatpush1.bf16.msra.mxu0 %v5392_v0 }
 0x2ae   :  { %4001 = vmatprep.subr.bf16.mxu0 %v5385_v31  ;;  %v2614_v31 = vld [vmem:[#allocation7 + $0x938] sm:$0xff] }
 0x2af   :  { %3959 = vmatpush1.bf16.msra.mxu1 %v5264_v30  ;;  %v2610_v30 = vld [vmem:[#allocation7 + $0x918] sm:$0xff] }
 0x2b0   :  { %3960 = vmatprep.subr.bf16.mxu1 %v5257_v1  ;;  %v5329_v21 = vcombine.high %v2610_v30, %v2614_v31 }
 0x2b1   :  { %4002 = vmatpush1.bf16.msra.mxu0 %v5384_v38  ;;  %v5328_v38 = vcombine.low %v2610_v30, %v2614_v31  ;;  %v5782_v30 = vld [vmem:[#allocation10 + $0x424] ss:$12 sps:$4 sm:$0xff]   ;;  %v5780_v31 = vld [vmem:[#allocation10 + $0x420] ss:$12 sps:$4 sm:$0xff]  }
 0x2b2   :  { %4003 = vmatprep.subr.bf16.mxu0 %v5377_v40  ;;  %v2594_v40 = vld [vmem:[#allocation7 + $0x898] sm:$0xff] }
 0x2b3   :  { %3961 = vmatpush1.bf16.msra.mxu1 %v5256_v39  ;;  %v5321_v39 = vcombine.high %v2602_v34, %v2606_v35  ;;  %v5786_v35 = vld [vmem:[#allocation10 + $0x3f0] ss:$12 sps:$4 sm:$0xff]  }
 0x2b4   :  { %3962 = vmatprep.subr.bf16.mxu1 %v5249_v41  ;;  %v2598_v41 = vld [vmem:[#allocation7 + $0x8b8] sm:$0xff] }
 0x2b5   :  { %4004 = vmatpush1.bf16.msra.mxu0 %v5376_v46  ;;  %v5313_v45 = vcombine.high %v2594_v40, %v2598_v41  ;;  %v2586_v46 = vld [vmem:[#allocation7 + $0x858] sm:$0xff]  ;;  %v5312_v51 = vcombine.low %v2594_v40, %v2598_v41 }
 0x2b6   :  { %4005 = vmatprep.subr.bf16.mxu0 %v5369_v48  ;;  %v5752_v48 = vld [vmem:[#allocation10 + $0x394] ss:$12 sps:$4 sm:$0xff]  }
 0x2b7   :  { %3963 = vmatpush1.bf16.msra.mxu1 %v5248_v47  ;;  %v2590_v47 = vld [vmem:[#allocation7 + $0x878] sm:$0xff] }
 0x2b8   :  { %3964 = vmatprep.subr.bf16.mxu1 %v5241_v49  ;;  %v5750_v49 = vld [vmem:[#allocation10 + $0x390] ss:$12 sps:$4 sm:$0xff]   ;;  %v5305_v52 = vcombine.high %v2586_v46, %v2590_v47 }
 0x2b9   :  { %4006 = vmatpush1.bf16.msra.mxu0 %v5368_v50  ;;  %v5755_v50 = vld [vmem:[#allocation10 + $0x37c] ss:$12 sps:$4 sm:$0xff]  }
 0x2ba   :  { %4007 = vmatprep.subr.bf16.mxu0 %v5361_v56  ;;  %v5304_v56 = vcombine.low %v2586_v46, %v2590_v47  ;;  %v5789_v46 = vld [vmem:[#allocation10 + $0x3d8] ss:$12 sps:$4 sm:$0xff]  }
 0x2bb   :  { %3965 = vmatpush1.bf16.msra.mxu1 %v5240_v58  ;;  %v5753_v58 = vld [vmem:[#allocation10 + $0x378] ss:$12 sps:$4 sm:$0xff]  }
 0x2bc   :  { %3966 = vmatprep.subr.bf16.mxu1 %v5233_v62  ;;  %v5297_v62 = vcombine.high %v2578_v53, %v2582_v55 }
 0x2bd   :  { %4008 = vmatpush1.bf16.msra.mxu0 %v5360_v4  ;;  %v5761_v4 = vld [vmem:[#allocation10 + $0x34c] ss:$12 sps:$4 sm:$0xff]  }
 0x2be   :  { %4741 = vmatprep.subr.bf16.mxu0 %v5749_v42 }
 0x2bf   :  { %3967 = vmatpush1.bf16.msra.mxu1 %v5232_v14  ;;  %v5296_v14 = vcombine.low %v2578_v53, %v2582_v55  ;;  %v5792_v55 = vld [vmem:[#allocation10 + $0x3c0] ss:$12 sps:$4 sm:$0xff]  }
 0x2c0   :  { %3968 = vmatprep.subr.bf16.mxu1 %v5353_v5  ;;  %v6292_v19 = vpop.f32.mrf.mxu0  ;;  %4026 = vmatmul.mubr.bf16.vlgmr.msra.gmra.mxu0 %v6267_v10  ;;  %v5759_v5 = vld [vmem:[#allocation10 + $0x348] ss:$12 sps:$4 sm:$0xff]  }
 0x2c1   :  { %4742 = vmatpush1.bf16.msra.mxu0 %v5747_v43 }
 0x2c2   :  { %v2414_v23 = vpop.f32.mrf.mxu1  ;;  %v6296_v26 = vpop.f32.mrf.mxu0  ;;  %4743 = vmatprep.subr.bf16.mxu0 %v5752_v48  ;;  %v5794_v48 = vld [vmem:[#allocation10 + $0x3c4] ss:$12 sps:$4 sm:$0xff]  }
 0x2c3   :  { %v2415_v25 = vadd.f32 %v2414_v23, %v2374_v17  ;;  %3969 = vmatpush2.bf16.msra.mxu1 %v5352_v57  ;;  %v5532_v11 = vadd.f32 %v6296_v26, %v6292_v19  ;;  %v5762_v57 = vld [vmem:[#allocation10 + $0x330] ss:$12 sps:$4 sm:$0xff]   ;;  %v5768_v19 = vld [vmem:[#allocation10 + $0x300] ss:$12 sps:$4 sm:$0xff]  }
 0x2c4   :  { %v2416_v28 = vpop.f32.mrf.mxu1  ;;  %3970 = vmatprep.subr.bf16.mxu1 %v5345_v16  ;;  %v5533_v3 = vpop.f32.mrf.mxu0  ;;  %v5773_v26 = vld [vmem:[#allocation10 + $0x46c] ss:$12 sps:$4 sm:$0xff]  }
 0x2c5   :  { %2501 = vst [vmem:[#allocation13] sm:$0xff] %v2415_v25  ;;  %v2417_v0 = vadd.f32 %v2416_v28, %v2376_v24  ;;  %4744 = vmatpush1.bf16.msra.mxu0 %v5750_v49  ;;  %v2456_v17 = vadd.f32 %v5532_v11, %v1823_v9  ;;  %v5765_v24 = vld [vmem:[#allocation10 + $0x318] ss:$12 sps:$4 sm:$0xff]   ;;  %v5776_v28 = vld [vmem:[#allocation10 + $0x454] ss:$12 sps:$4 sm:$0xff]  }
 0x2c6   :  { %v2418_v1 = vpop.f32.mrf.mxu1  ;;  %v5534_v10 = vpop.f32.mrf.mxu0  ;;  %4745 = vmatprep.subr.bf16.mxu0 %v5755_v50  ;;  %v5777_v3 = vld [vmem:[#allocation10 + $0x438] ss:$12 sps:$4 sm:$0xff]   ;;  %v5815_v9 = vld [vmem:[#allocation10 + $0x4c8] ss:$12 sps:$4 sm:$0xff]  }
 0x2c7   :  { %2502 = vst [vmem:[#allocation13 + $0x8] sm:$0xff] %v2417_v0  ;;  %3971 = vmatpush2.bf16.msra.mxu1 %v5344_v27  ;;  %v5779_v0 = vld [vmem:[#allocation10 + $0x43c] ss:$12 sps:$4 sm:$0xff]   ;;  %v5797_v50 = vld [vmem:[#allocation10 + $0x52c] ss:$12 sps:$4 sm:$0xff]  }
 0x2c8   :  { %v2419_v18 = vpop.f32.mrf.mxu1  ;;  %3972 = vmatprep.subr.bf16.mxu1 %v5337_v29  ;;  %v5774_v29 = vld [vmem:[#allocation10 + $0x450] ss:$12 sps:$4 sm:$0xff]   ;;  %v5783_v10 = vld [vmem:[#allocation10 + $0x408] ss:$12 sps:$4 sm:$0xff]   ;;  %v5817_v11 = vld [vmem:[#allocation10 + $0x4cc] ss:$12 sps:$4 sm:$0xff]  }
 0x2c9   :  { %4746 = vmatpush1.bf16.msra.mxu0 %v5753_v58  ;;  %v6303_v1 = vld [vmem:[#allocation8 + $0x8] sm:$0xff]  ;;  %v5788_v18 = vld [vmem:[#allocation10 + $0x3f4] ss:$12 sps:$4 sm:$0xff]  }
 0x2ca   :  { %4747 = vmatprep.subr.bf16.mxu0 %v5758_v61  ;;  %v2713_v34 = vrot.slane %v6303_v1, %v6204_v63  ;;  %v5798_v58 = vld [vmem:[#allocation10 + $0x470] ss:$12 sps:$4 sm:$0xff]   ;;  %v5805_v61 = vld [vmem:[#allocation10 + $0x4f8] ss:$12 sps:$4 sm:$0xff]  }
 0x2cb   :  { %3973 = vmatpush2.bf16.msra.mxu1 %v5336_v15  ;;  %v5785_v15 = vld [vmem:[#allocation10 + $0x40c] ss:$12 sps:$4 sm:$0xff]  }
 0x2cc   :  { %3974 = vmatprep.subr.bf16.mxu1 %v5329_v21  ;;  %v2709_v21 = vrot.slane %v6303_v1, %v6199_v59 }
 0x2cd   :  { %4748 = vmatpush1.bf16.msra.mxu0 %v5756_v60  ;;  %v5802_v60 = vld [vmem:[#allocation10 + $0x514] ss:$12 sps:$4 sm:$0xff]  }
 0x2ce   :  { %4749 = vmatprep.subr.bf16.mxu0 %v5761_v4  ;;  %v5807_v4 = vld [vmem:[#allocation10 + $0x4fc] ss:$12 sps:$4 sm:$0xff]  }
 0x2cf   :  { %3975 = vmatpush2.bf16.msra.mxu1 %v5328_v38 }
 0x2d0   :  { %3976 = vmatprep.subr.bf16.mxu1 %v5321_v39  ;;  %v5791_v39 = vld [vmem:[#allocation10 + $0x3dc] ss:$12 sps:$4 sm:$0xff]  }
 0x2d1   :  { %4750 = vmatpush1.bf16.msra.mxu0 %v5759_v5  ;;  %v5812_v5 = vld [vmem:[#allocation10 + $0x4e4] ss:$12 sps:$4 sm:$0xff]  }
 0x2d2   :  { %4751 = vmatprep.subr.bf16.mxu0 %v5764_v12 }
 0x2d3   :  { %3977 = vmatpush2.bf16.msra.mxu1 %v5320_v44 }
 0x2d4   :  { %3978 = vmatprep.subr.bf16.mxu1 %v5313_v45 }
 0x2d5   :  { %4752 = vmatpush1.bf16.msra.mxu0 %v5762_v57  ;;  %v5820_v57 = vld [vmem:[#allocation10 + $0x4b0] ss:$12 sps:$4 sm:$0xff]  }
 0x2d6   :  { %4753 = vmatprep.subr.bf16.mxu0 %v5767_v22  ;;  %v5825_v22 = vld [vmem:[#allocation10 + $0x498] ss:$12 sps:$4 sm:$0xff]  }
 0x2d7   :  { %3979 = vmatpush2.bf16.msra.mxu1 %v5312_v51 }
 0x2d8   :  { %3980 = vmatprep.subr.bf16.mxu1 %v5305_v52 }
 0x2d9   :  { %4754 = vmatpush1.bf16.msra.mxu0 %v5765_v24  ;;  %v5832_v24 = vld [vmem:[#allocation10 + $0x484] ss:$12 sps:$4 sm:$0xff]  }
 0x2da   :  { %4755 = vmatprep.subr.bf16.mxu0 %v5770_v2  ;;  %v5835_v2 = vld [vmem:[#allocation10 + $0x5e8] ss:$12 sps:$4 sm:$0xff]  }
 0x2db   :  { %3981 = vmatpush2.bf16.msra.mxu1 %v5304_v56  ;;  %v5795_v56 = vld [vmem:[#allocation10 + $0x528] ss:$12 sps:$4 sm:$0xff]  }
 0x2dc   :  { %3982 = vmatprep.subr.bf16.mxu1 %v5297_v62  ;;  %v5800_v62 = vld [vmem:[#allocation10 + $0x510] ss:$12 sps:$4 sm:$0xff]  }
 0x2dd   :  { %4756 = vmatpush1.bf16.msra.mxu0 %v5768_v19  ;;  %v5840_v19 = vld [vmem:[#allocation10 + $0x5d4] ss:$12 sps:$4 sm:$0xff]  }
 0x2de   :  { %4757 = vmatprep.subr.bf16.mxu0 %v5773_v26  ;;  %v5838_v26 = vld [vmem:[#allocation10 + $0x5d0] ss:$12 sps:$4 sm:$0xff]  }
 0x2df   :  { %3983 = vmatpush2.bf16.msra.mxu1 %v5296_v14  ;;  %v5810_v14 = vld [vmem:[#allocation10 + $0x4e0] ss:$12 sps:$4 sm:$0xff]  }
 0x2e0   :  { %4782 = vmatprep.subr.bf16.mxu1 %v5797_v50 }
 0x2e2   :  { %v5552_v13 = vpop.f32.mrf.mxu1  ;;  %3985 = vmatmul.mubr.bf16.vlgmr.msra.gmra.mxu1 %v6265_v8  ;;  %v5771_v8 = vld [vmem:[#allocation10 + $0x468] ss:$12 sps:$4 sm:$0xff]  }
 0x2e3   :  { %4758 = vmatpush2.bf16.msra.mxu0 %v5771_v8  ;;  %4783 = vmatpush1.bf16.msra.mxu1 %v5795_v56  ;;  %v5843_v8 = vld [vmem:[#allocation10 + $0x5bc] ss:$12 sps:$4 sm:$0xff]  }
 0x2e4   :  { %v5553_v16 = vpop.f32.mrf.mxu1  ;;  %4759 = vmatprep.subr.bf16.mxu0 %v5776_v28  ;;  %4784 = vmatprep.subr.bf16.mxu1 %v5802_v60  ;;  %v5841_v28 = vld [vmem:[#allocation10 + $0x5b8] ss:$12 sps:$4 sm:$0xff]  }
 0x2e5   :  { %v5554_v20 = vadd.f32 %v5553_v16, %v5552_v13  ;;  %v5822_v13 = vld [vmem:[#allocation10 + $0x4b4] ss:$12 sps:$4 sm:$0xff]  }
 0x2e6   :  { %v5555_v23 = vpop.f32.mrf.mxu1 }
 0x2e7   :  { %v2496_v25 = vadd.f32 %v5554_v20, %v2456_v17  ;;  %4760 = vmatpush2.bf16.msra.mxu0 %v5774_v29  ;;  %4785 = vmatpush1.bf16.msra.mxu1 %v5800_v62  ;;  %v5827_v20 = vld [vmem:[#allocation10 + $0x49c] ss:$12 sps:$4 sm:$0xff]   ;;  %v5846_v29 = vld [vmem:[#allocation10 + $0x5a4] ss:$12 sps:$4 sm:$0xff]  }
 0x2e8   :  { %v5556_v27 = vpop.f32.mrf.mxu1  ;;  %4761 = vmatprep.subr.bf16.mxu0 %v5779_v0  ;;  %4786 = vmatprep.subr.bf16.mxu1 %v5807_v4  ;;  %v5844_v0 = vld [vmem:[#allocation10 + $0x5a0] ss:$12 sps:$4 sm:$0xff]  }
 0x2e9   :  { %2503 = vst [vmem:[#allocation13 + $0x10] sm:$0xff] %v2496_v25  ;;  %v5830_v25 = vld [vmem:[#allocation10 + $0x480] ss:$12 sps:$4 sm:$0xff]  }
 0x2ea   :  { %v5837_v27 = vld [vmem:[#allocation10 + $0x5ec] ss:$12 sps:$4 sm:$0xff]  }
 0x2eb   :  { %4762 = vmatpush2.bf16.msra.mxu0 %v5777_v3  ;;  %4787 = vmatpush1.bf16.msra.mxu1 %v5805_v61  ;;  %v5847_v3 = vld [vmem:[#allocation10 + $0x588] ss:$12 sps:$4 sm:$0xff]  }
 0x2ec   :  { %4763 = vmatprep.subr.bf16.mxu0 %v5782_v30  ;;  %4788 = vmatprep.subr.bf16.mxu1 %v5812_v5  ;;  %v5849_v30 = vld [vmem:[#allocation10 + $0x58c] ss:$12 sps:$4 sm:$0xff]  }
 0x2ef   :  { %4764 = vmatpush2.bf16.msra.mxu0 %v5780_v31  ;;  %4789 = vmatpush1.bf16.msra.mxu1 %v5810_v14  ;;  %v5852_v31 = vld [vmem:[#allocation10 + $0x574] ss:$12 sps:$4 sm:$0xff]  }
 0x2f0   :  { %4765 = vmatprep.subr.bf16.mxu0 %v5785_v15  ;;  %4790 = vmatprep.subr.bf16.mxu1 %v5817_v11  ;;  %v5850_v15 = vld [vmem:[#allocation10 + $0x570] ss:$12 sps:$4 sm:$0xff]  }
 0x2f3   :  { %4766 = vmatpush2.bf16.msra.mxu0 %v5783_v10  ;;  %4791 = vmatpush1.bf16.msra.mxu1 %v5815_v9  ;;  %v2717_v10 = vrot.slane %v6303_v1, %v6217_v36 }
 0x2f4   :  { %4767 = vmatprep.subr.bf16.mxu0 %v5788_v18  ;;  %4792 = vmatprep.subr.bf16.mxu1 %v5822_v13  ;;  %v2721_v18 = vrot.slane %v6303_v1, %v320_v37  ;;  %v5859_v37 = vld [vmem:[#allocation10 + $0x5f0] ss:$12 sps:$4 sm:$0xff]  }
 0x2f7   :  { %4768 = vmatpush2.bf16.msra.mxu0 %v5786_v35  ;;  %4793 = vmatpush1.bf16.msra.mxu1 %v5820_v57 }
 0x2f8   :  { %4769 = vmatprep.subr.bf16.mxu0 %v5791_v39  ;;  %4794 = vmatprep.subr.bf16.mxu1 %v5827_v20  ;;  %v5853_v39 = vld [vmem:[#allocation10 + $0x558] ss:$12 sps:$4 sm:$0xff]  }
 0x2fb   :  { %4770 = vmatpush2.bf16.msra.mxu0 %v5789_v46  ;;  %4795 = vmatpush1.bf16.msra.mxu1 %v5825_v22 }
 0x2fc   :  { %4771 = vmatprep.subr.bf16.mxu0 %v5794_v48  ;;  %4796 = vmatprep.subr.bf16.mxu1 %v5832_v24  ;;  %v2725_v48 = vrot.slane %v6303_v1, %v324_v6 }
 0x2ff   :  { %4772 = vmatpush2.bf16.msra.mxu0 %v5792_v55  ;;  %4797 = vmatpush1.bf16.msra.mxu1 %v5830_v25 }
 0x300   :  { %v3740_v38 = vpop.f32.mrf.mxu0  ;;  %5558 = vmatprep.subr.bf16.mxu0 %v5798_v58  ;;  %4798 = vmatprep.subr.bf16.mxu1 %v5837_v27 }
 0x301   :  { %v3741_v40 = vadd.f32 %v3740_v38, %v2709_v21  ;;  %v5855_v21 = vld [vmem:[#allocation10 + $0x55c] ss:$12 sps:$4 sm:$0xff]  }
 0x302   :  { %v3781_v41 = vpop.f32.mrf.mxu1  ;;  %v3742_v42 = vpop.f32.mrf.mxu0 }
 0x303   :  { %v6309_v43 = vadd.f32 %v3781_v41, %v3741_v40  ;;  %v3743_v44 = vadd.f32 %v3742_v42, %v2713_v34  ;;  %4799 = vmatpush2.bf16.msra.mxu1 %v5835_v2  ;;  %v5858_v42 = vld [vmem:[#allocation10 + $0x544] ss:$12 sps:$4 sm:$0xff]  }
 0x304   :  { %v3783_v45 = vpop.f32.mrf.mxu1  ;;  %v3744_v47 = vpop.f32.mrf.mxu0  ;;  %4800 = vmatprep.subr.bf16.mxu1 %v5840_v19 }
 0x305   :  { %v6311_v49 = vadd.f32 %v3783_v45, %v3743_v44  ;;  %v5856_v47 = vld [vmem:[#allocation10 + $0x540] ss:$12 sps:$4 sm:$0xff]   ;;  %v4034_v19 = vmul.f32 0.5, %v6309_v43 }
 0x306   :  { %v3785_v51 = vpop.f32.mrf.mxu1  ;;  %v3745_v52 = vpop.f32.mrf.mxu0 }
 0x307   :  { %4801 = vmatpush2.bf16.msra.mxu1 %v5838_v26  ;;  %v2729_v51 = vrot.slane %v6303_v1, %v328_v7  ;;  %v4038_v7 = vmul.f32 0.70710677, %v6309_v43  ;;  %v4039_v13 = vmul.f32 0.70710677, %v6311_v49  ;;  %v5808_v43 = vld [vmem:[#allocation10 + $0x440] ss:$12 sps:$4 sm:$0xff]  }
 0x308   :  { %v3786_v53 = vpop.f32.mrf.mxu1  ;;  %4802 = vmatprep.subr.bf16.mxu1 %v5843_v8  ;;  %v4035_v8 = vmul.f32 0.5, %v6311_v49  ;;  %v5809_v49 = vld [vmem:[#allocation10 + $0x380] ss:$12 sps:$4 sm:$0xff]  }
 0x30b   :  { %4803 = vmatpush2.bf16.msra.mxu1 %v5841_v28 }
 0x30c   :  { %4804 = vmatprep.subr.bf16.mxu1 %v5846_v29 }
 0x30f   :  { %4805 = vmatpush2.bf16.msra.mxu1 %v5844_v0 }
 0x310   :  { %4806 = vmatprep.subr.bf16.mxu1 %v5849_v30 }
 0x313   :  { %4807 = vmatpush2.bf16.msra.mxu1 %v5847_v3 }
 0x314   :  { %4808 = vmatprep.subr.bf16.mxu1 %v5852_v31 }
 0x317   :  { %4809 = vmatpush2.bf16.msra.mxu1 %v5850_v15 }
 0x318   :  { %4810 = vmatprep.subr.bf16.mxu1 %v5855_v21 }
 0x31b   :  { %4811 = vmatpush2.bf16.msra.mxu1 %v5853_v39  ;;  %v5814_v39 = vld [vmem:[#allocation10 + $0x368] ss:$12 sps:$4 sm:$0xff]  }
 0x31c   :  { %4812 = vmatprep.subr.bf16.mxu1 %v5858_v42  ;;  %v5819_v42 = vld [vmem:[#allocation10 + $0x350] ss:$12 sps:$4 sm:$0xff]  }
 0x31f   :  { %4813 = vmatpush2.bf16.msra.mxu1 %v5856_v47  ;;  %v5824_v47 = vld [vmem:[#allocation10 + $0x338] ss:$12 sps:$4 sm:$0xff]  }
 0x320   :  { %v3863_v12 = vpop.f32.mrf.mxu0  ;;  %5580 = vmatprep.subr.bf16.mxu1 %v5859_v37  ;;  %v2737_v37 = vrot.slane %v6303_v1, %v336_v33 }
 0x322   :  { %v3865_v16 = vpop.f32.mrf.mxu0 }
 0x324   :  { %v3867_v17 = vpop.f32.mrf.mxu0 }
 0x326   :  { %v3868_v23 = vpop.f32.mrf.mxu0 }
 0x342   :  { %v3822_v34 = vpop.f32.mrf.mxu1 }
 0x343   :  { %v3823_v35 = vadd.f32 %v3822_v34, %v2717_v10  ;;  %v5803_v34 = vld [vmem:[#allocation10 + $0x458] ss:$12 sps:$4 sm:$0xff]  }
 0x344   :  { %v3824_v38 = vpop.f32.mrf.mxu1 }
 0x345   :  { %v6318_v40 = vadd.f32 %v3863_v12, %v3823_v35  ;;  %v3825_v41 = vadd.f32 %v3824_v38, %v2721_v18  ;;  %v5799_v18 = vld [vmem:[#allocation10 + $0x3b0] ss:$12 sps:$4 sm:$0xff]   ;;  %v5804_v35 = vld [vmem:[#allocation10 + $0x398] ss:$12 sps:$4 sm:$0xff]   ;;  %v5813_v38 = vld [vmem:[#allocation10 + $0x428] ss:$12 sps:$4 sm:$0xff]  }
 0x346   :  { %v3826_v44 = vpop.f32.mrf.mxu1 }
 0x347   :  { %v6320_v45 = vadd.f32 %v3865_v16, %v3825_v41  ;;  %v5818_v41 = vld [vmem:[#allocation10 + $0x410] ss:$12 sps:$4 sm:$0xff]   ;;  %v5823_v44 = vld [vmem:[#allocation10 + $0x3f8] ss:$12 sps:$4 sm:$0xff]  }
 0x348   :  { %v3827_v46 = vpop.f32.mrf.mxu1 }
 0x349   :  { %v2733_v46 = vrot.slane %v6303_v1, %v332_v32  ;;  %v4040_v1 = vmul.f32 0.70710677, %v6318_v40 }
 0x360   :  { %v3904_v52 = vpop.f32.mrf.mxu0 }
 0x361   :  { %v3905_v53 = vadd.f32 %v3904_v52, %v2725_v48  ;;  %v5828_v48 = vld [vmem:[#allocation10 + $0x3e0] ss:$12 sps:$4 sm:$0xff]  }
 0x362   :  { %v3945_v55 = vpop.f32.mrf.mxu1  ;;  %v3906_v50 = vpop.f32.mrf.mxu0 }
 0x363   :  { %v3946_v58 = vadd.f32 %v3945_v55, %v3905_v53  ;;  %v3907_v56 = vadd.f32 %v3906_v50, %v2729_v51  ;;  %v5829_v55 = vld [vmem:[#allocation10 + $0x320] ss:$12 sps:$4 sm:$0xff]  }
 0x364   :  { %v3947_v62 = vpop.f32.mrf.mxu1  ;;  %v3908_v60 = vpop.f32.mrf.mxu0 }
 0x365   :  { %v4054_v61 = vsub.f32 0.0, %v3946_v58  ;;  %v3948_v4 = vadd.f32 %v3947_v62, %v3907_v56  ;;  %v5833_v56 = vld [vmem:[#allocation10 + $0x3c8] ss:$12 sps:$4 sm:$0xff]  }
 0x366   :  { %v3949_v14 = vpop.f32.mrf.mxu1  ;;  %v3909_v5 = vpop.f32.mrf.mxu0 }
 0x367   :  { %v4058_v9 = vmul.f32 1.442695, %v4054_v61  ;;  %v4055_v11 = vsub.f32 0.0, %v3948_v4  ;;  %v5834_v4 = vld [vmem:[#allocation10 + $0x308] ss:$12 sps:$4 sm:$0xff]  }
 0x368   :  { %v3950_v12 = vpop.f32.mrf.mxu1  ;;  %v4041_v5 = vmul.f32 0.70710677, %v6320_v45 }
 0x369   :  { %5899 = vpow2.f32 %v4058_v9  ;;  %v4060_v6 = vmul.f32 1.442695, %v4055_v11 }
 0x36b   :  { %5901 = vpow2.f32 %v4060_v6 }
 0x36c   :  { %5903 = verf.f32 %v4038_v7 }
 0x36d   :  { %5905 = verf.f32 %v4039_v13 }
 0x376   :  { %v5900_v57 = vpop.eup %5899 }
 0x377   :  { %v4066_v16 = vadd.f32 1.0, %v5900_v57 }
 0x378   :  { %v5902_v17 = vpop.eup %5901 }
 0x379   :  { %5907 = vrcp.f32 %v4066_v16  ;;  %v4067_v20 = vadd.f32 1.0, %v5902_v17  ;;  %v5904_v22 = vpop.eup %5903  ;;  %v4036_v17 = vmul.f32 0.5, %v6318_v40  ;;  %v5864_v40 = vld [vmem:[#allocation10 + $0x500] ss:$12 sps:$4 sm:$0xff]  }
 0x37a   :  { %v5906_v23 = vpop.eup %5905  ;;  %v4046_v25 = vadd.f32 1.0, %v5904_v22 }
 0x37b   :  { %5909 = vrcp.f32 %v4067_v20  ;;  %v4047_v2 = vadd.f32 1.0, %v5906_v23  ;;  %v4037_v20 = vmul.f32 0.5, %v6320_v45  ;;  %v5865_v45 = vld [vmem:[#allocation10 + $0x5a8] ss:$12 sps:$4 sm:$0xff]  }
 0x37c   :  { %v4050_v29 = vmul.f32 %v4046_v25, %v4034_v19 }
 0x37d   :  { %v4051_v3 = vmul.f32 %v4047_v2, %v4035_v8 }
 0x380   :  { %v4027_v24 = vpop.f32.mrf.mxu0 }
 0x382   :  { %v4029_v27 = vpop.f32.mrf.mxu0 }
 0x384   :  { %v4031_v26 = vpop.f32.mrf.mxu0 }
 0x385   :  { %v5860_v26 = vld [vmem:[#allocation10 + $0x530] ss:$12 sps:$4 sm:$0xff]  }
 0x386   :  { %v5908_v28 = vpop.eup %5907  ;;  %v4032_v0 = vpop.f32.mrf.mxu0 }
 0x387   :  { %v4074_v31 = vmul.f32 %v5908_v28, %v4050_v29  ;;  %v5861_v28 = vld [vmem:[#allocation10 + $0x5d8] ss:$12 sps:$4 sm:$0xff]   ;;  %v5863_v0 = vld [vmem:[#allocation10 + $0x5c0] ss:$12 sps:$4 sm:$0xff]  }
 0x388   :  { %v5910_v30 = vpop.eup %5909  ;;  %v5862_v29 = vld [vmem:[#allocation10 + $0x518] ss:$12 sps:$4 sm:$0xff]  }
 0x389   :  { %v4075_v10 = vmul.f32 %v5910_v30, %v4051_v3  ;;  %v4078_v21 = vpack.c.bf16 %v4074_v31, %v4074_v31  ;;  %v5866_v3 = vld [vmem:[#allocation10 + $0x4e8] ss:$12 sps:$4 sm:$0xff]   ;;  %v5867_v30 = vld [vmem:[#allocation10 + $0x590] ss:$12 sps:$4 sm:$0xff]  }
 0x38a   :  { %v5868_v31 = vld [vmem:[#allocation10 + $0x4d0] ss:$12 sps:$4 sm:$0xff]  }
 0x38b   :  { %v4079_v15 = vpack.c.bf16 %v4075_v10, %v4075_v10  ;;  %v5869_v10 = vld [vmem:[#allocation10 + $0x578] ss:$12 sps:$4 sm:$0xff]  }
 0x38d   :  { %4773 = vmatprep.mubr.bf16.mxu0 %v4079_v15 }
 0x38e   :  { %4774 = vmatmul.mubr.bf16.vlgmr.msra.gmra.mxu0 %v4078_v21 }
 0x38f   :  { %5559 = vmatpush3.bf16.msra.mxu0 %v5799_v18  ;;  %4855 = vmatprep.mubr.bf16.mxu0 %v4079_v15  ;;  %v5870_v15 = vld [vmem:[#allocation10 + $0x4b8] ss:$12 sps:$4 sm:$0xff]   ;;  %v5871_v18 = vld [vmem:[#allocation10 + $0x560] ss:$12 sps:$4 sm:$0xff]  }
 0x390   :  { %5560 = vmatprep.subr.bf16.mxu0 %v5803_v34  ;;  %v5873_v34 = vld [vmem:[#allocation10 + $0x548] ss:$12 sps:$4 sm:$0xff]  }
 0x393   :  { %5561 = vmatpush3.bf16.msra.mxu0 %v5804_v35  ;;  %v5874_v35 = vld [vmem:[#allocation10 + $0x488] ss:$12 sps:$4 sm:$0xff]  }
 0x394   :  { %5562 = vmatprep.subr.bf16.mxu0 %v5808_v43 }
 0x397   :  { %5563 = vmatpush3.bf16.msra.mxu0 %v5809_v49 }
 0x398   :  { %5564 = vmatprep.subr.bf16.mxu0 %v5813_v38 }
 0x39b   :  { %5565 = vmatpush3.bf16.msra.mxu0 %v5814_v39 }
 0x39c   :  { %5566 = vmatprep.subr.bf16.mxu0 %v5818_v41 }
 0x39f   :  { %5567 = vmatpush3.bf16.msra.mxu0 %v5819_v42 }
 0x3a0   :  { %5568 = vmatprep.subr.bf16.mxu0 %v5823_v44 }
 0x3a2   :  { %v3986_v51 = vpop.f32.mrf.mxu1 }
 0x3a3   :  { %v3987_v52 = vadd.f32 %v3986_v51, %v2733_v46  ;;  %5569 = vmatpush3.bf16.msra.mxu0 %v5824_v47 }
 0x3a4   :  { %v3988_v53 = vpop.f32.mrf.mxu1  ;;  %5570 = vmatprep.subr.bf16.mxu0 %v5828_v48 }
 0x3a5   :  { %v4028_v50 = vadd.f32 %v4027_v24, %v3987_v52  ;;  %v3989_v58 = vadd.f32 %v3988_v53, %v2737_v37 }
 0x3a6   :  { %v3990_v62 = vpop.f32.mrf.mxu1 }
 0x3a7   :  { %v4056_v60 = vsub.f32 0.0, %v4028_v50  ;;  %v4030_v32 = vadd.f32 %v4029_v27, %v3989_v58  ;;  %5571 = vmatpush3.bf16.msra.mxu0 %v5829_v55 }
 0x3a8   :  { %v3991_v61 = vpop.f32.mrf.mxu1  ;;  %5572 = vmatprep.subr.bf16.mxu0 %v5833_v56 }
 0x3a9   :  { %v4062_v14 = vmul.f32 1.442695, %v4056_v60  ;;  %v4057_v54 = vsub.f32 0.0, %v4030_v32 }
 0x3ab   :  { %5911 = vpow2.f32 %v4062_v14  ;;  %v4064_v33 = vmul.f32 1.442695, %v4057_v54  ;;  %5573 = vmatpush3.bf16.msra.mxu0 %v5834_v4 }
 0x3ad   :  { %5913 = vpow2.f32 %v4064_v33 }
 0x3ae   :  { %4856 = vmatmul.mubr.bf16.vlgmr.msra.gmra.mxu0 %v4078_v21  ;;  %5915 = verf.f32 %v4040_v1  ;;  %v5872_v21 = vld [vmem:[#allocation10 + $0x4a0] ss:$12 sps:$4 sm:$0xff]  }
 0x3af   :  { %5917 = verf.f32 %v4041_v5 }
 0x3b8   :  { %v5912_v9 = vpop.eup %5911 }
 0x3b9   :  { %v4068_v11 = vadd.f32 1.0, %v5912_v9 }
 0x3ba   :  { %v5914_v12 = vpop.eup %5913 }
 0x3bb   :  { %5919 = vrcp.f32 %v4068_v11  ;;  %v4069_v6 = vadd.f32 1.0, %v5914_v12  ;;  %v5916_v7 = vpop.eup %5915 }
 0x3bc   :  { %v5918_v13 = vpop.eup %5917  ;;  %v4048_v57 = vadd.f32 1.0, %v5916_v7 }
 0x3bd   :  { %5921 = vrcp.f32 %v4069_v6  ;;  %v4049_v16 = vadd.f32 1.0, %v5918_v13 }
 0x3be   :  { %v4052_v23 = vmul.f32 %v4048_v57, %v4036_v17 }
 0x3bf   :  { %v4053_v24 = vmul.f32 %v4049_v16, %v4037_v20 }
 0x3c8   :  { %v5920_v22 = vpop.eup %5919 }
 0x3c9   :  { %v4076_v27 = vmul.f32 %v5920_v22, %v4052_v23 }
 0x3ca   :  { %v5922_v25 = vpop.eup %5921 }
 0x3cb   :  { %v4077_v2 = vmul.f32 %v5922_v25, %v4053_v24  ;;  %v4080_v8 = vpack.c.bf16 %v4076_v27, %v4076_v27 }
 0x3cd   :  { %v4081_v19 = vpack.c.bf16 %v4077_v2, %v4077_v2 }
 0x3cf   :  { %4814 = vmatprep.mubr.bf16.mxu1 %v4081_v19 }
 0x3d0   :  { %4815 = vmatmul.mubr.bf16.vlgmr.msra.gmra.mxu1 %v4080_v8 }
 0x3d1   :  { %5581 = vmatpush3.bf16.msra.mxu1 %v5860_v26  ;;  %4895 = vmatprep.mubr.bf16.mxu1 %v4081_v19 }
 0x3d2   :  { %5582 = vmatprep.subr.bf16.mxu1 %v5861_v28 }
 0x3d5   :  { %5583 = vmatpush3.bf16.msra.mxu1 %v5862_v29 }
 0x3d6   :  { %5584 = vmatprep.subr.bf16.mxu1 %v5863_v0 }
 0x3d9   :  { %5585 = vmatpush3.bf16.msra.mxu1 %v5864_v40 }
 0x3da   :  { %5586 = vmatprep.subr.bf16.mxu1 %v5865_v45 }
 0x3dd   :  { %5587 = vmatpush3.bf16.msra.mxu1 %v5866_v3 }
 0x3de   :  { %5588 = vmatprep.subr.bf16.mxu1 %v5867_v30 }
 0x3e1   :  { %5589 = vmatpush3.bf16.msra.mxu1 %v5868_v31 }
 0x3e2   :  { %5590 = vmatprep.subr.bf16.mxu1 %v5869_v10 }
 0x3e5   :  { %5591 = vmatpush3.bf16.msra.mxu1 %v5870_v15 }
 0x3e6   :  { %5592 = vmatprep.subr.bf16.mxu1 %v5871_v18 }
 0x3e9   :  { %5593 = vmatpush3.bf16.msra.mxu1 %v5872_v21 }
 0x3ea   :  { %5594 = vmatprep.subr.bf16.mxu1 %v5873_v34 }
 0x3ed   :  { %5595 = vmatpush3.bf16.msra.mxu1 %v5874_v35 }
 0x3f0   :  { %4896 = vmatmul.mubr.bf16.vlgmr.msra.gmra.mxu1 %v4080_v8 }
 0x3f1   :  { %6054 = shalt.err (!%p6051_p6)
}
 0x3f2   :  { %4915 = dma.vmem_to_hbm [thread:$0]  %s4913_s5, 384, %s6357_s6, [#allocation4]   ;;  %v4212_v47 = vld [vmem:[#allocation11 + $0x3] sm:$0x7] }
 0x3f3   :  { %v4217_v37 = vrot.slane %v4212_v47, %v6199_v59  ;;  %v4221_v48 = vrot.slane %v4212_v47, %v6204_v63  ;;  %v4225_v60 = vrot.slane %v4212_v47, %v6217_v36  ;;  %s6111_s6 = smov [#allocation14]  }
 0x3f4   :  { %s4922_s15 = sshll.u32 %s6111_s6, 4  ;;  %s4923_s15 = int_to_ptr.vmem [resolvable:$true] %s4922_s15 }
 0x3f5   :  { %s6063_s16 = scalar_lea.vmem %s4923_s15, 384  ;;  %p6068_p8 = scmp.lt.s32.totalorder %s4923_s15, %s4923_s15 }
 0x3f6   :  { %p6064_p7 = scmp.ne.s32.totalorder %s4923_s15, %s6063_s16  ;;  %p6069_p9 = scmp.lt.s32.totalorder %s6063_s16, %s6063_s16 }
 0x3f8   :  { %p6070_p10 = por %p6069_p9, %p6068_p8 }
 0x3fa   :  { %p6071_p11 = pnand %p6070_p10, %p6064_p7 }
 0x44e   :  { %v4775_v43 = vpop.f32.mrf.mxu0 }
 0x44f   :  { %v4776_v51 = vadd.f32 %v4775_v43, %v4217_v37 }
 0x450   :  { %v4777_v49 = vpop.f32.mrf.mxu0 }
 0x451   :  { %v4778_v53 = vadd.f32 %v4777_v49, %v4221_v48 }
 0x452   :  { %v4779_v38 = vpop.f32.mrf.mxu0 }
 0x454   :  { %v4780_v39 = vpop.f32.mrf.mxu0 }
 0x46e   :  { %v5574_v41 = vpop.f32.mrf.mxu0 }
 0x470   :  { %v5575_v42 = vpop.f32.mrf.mxu0 }
 0x471   :  { %v5576_v32 = vadd.f32 %v5575_v42, %v5574_v41 }
 0x472   :  { %v5577_v44 = vpop.f32.mrf.mxu0 }
 0x473   :  { %v4858_v59 = vadd.f32 %v5576_v32, %v4225_v60 }
 0x474   :  { %v5578_v46 = vpop.f32.mrf.mxu0 }
 0x490   :  { %v4816_v52 = vpop.f32.mrf.mxu1 }
 0x491   :  { %v4817_v55 = vadd.f32 %v4816_v52, %v4776_v51 }
 0x492   :  { %v4818_v50 = vpop.f32.mrf.mxu1 }
 0x493   :  { %4903 = vst [vmem:[#allocation14] sm:$0xff] %v4817_v55  ;;  %v4819_v58 = vadd.f32 %v4818_v50, %v4778_v53 }
 0x494   :  { %v4820_v56 = vpop.f32.mrf.mxu1 }
 0x495   :  { %4904 = vst [vmem:[#allocation14 + $0x8] sm:$0xff] %v4819_v58 }
 0x496   :  { %v4821_v62 = vpop.f32.mrf.mxu1 }
 0x4b0   :  { %v5596_v61 = vpop.f32.mrf.mxu1 }
 0x4b2   :  { %v5597_v4 = vpop.f32.mrf.mxu1 }
 0x4b3   :  { %v5598_v14 = vadd.f32 %v5597_v4, %v5596_v61 }
 0x4b4   :  { %v5599_v63 = vpop.f32.mrf.mxu1 }
 0x4b5   :  { %v4898_v54 = vadd.f32 %v5598_v14, %v4858_v59 }
 0x4b6   :  { %v5600_v33 = vpop.f32.mrf.mxu1 }
 0x4b7   :  { %4905 = vst [vmem:[#allocation14 + $0x10] sm:$0xff] %v4898_v54 }
 0x4b8   :  { %6074 = shalt.err (!%p6071_p11)
}
 0x4b9   :  { %4925 = dma.vmem_to_hbm [thread:$0]  %s4923_s15, 384, %s6358_s7, [#allocation15]  }
 0x4ba   :  { %6091 = dma.done.wait [#allocation4], 384  }
 0x4bb   :  { %6092 = vsyncadd [#allocation4], 4294966912 }
 0x4bc   :  { %6093 = dma.done.wait [#allocation15], 384  }
 0x4bd   :  { %6094 = vsyncadd [#allocation15], 4294966912 }
 0x4be   :  { %4932 = vsyncpa [#allocation3], 1 }
 0x4bf   :  { %4933 = vsyncpa [#allocation6], 1 }
 0x4c0   :  { %4934 = vsyncpa [#allocation9], 1 }
 0x4c1   :  { %4935 = vsyncpa [#allocation12], 1 }
 0x4c2   :  { %4936 = vsyncpa [#allocation4], 1 }
 0x4c3   :  { %4937 = vsyncpa [#allocation15], 1 }

</bundles_post_ra>
